<compile_context>
chip_gen: v7x
topology: tpu7x:2x2x1
jax: 0.10.0
libtpu: 0.0.40
codegen_flags: <defaults>
</compile_context>

<pallas_src>
import functools

import jax
import jax.numpy as jnp
from jax import lax
from jax.experimental import pallas as pl
from jax.experimental.pallas import tpu as pltpu


# -----------------------------------------------------------------------------
# Tiling helpers (static Python; shapes are known under jit).
# -----------------------------------------------------------------------------
def _pick_patches_per_block(num_patches_per_image, n, max_lanes=4096,
                            max_group=16):
    """Largest divisor g of the per-image patch count with g*n <= max_lanes.

    max_group bounds the static unroll of the per-patch loops (3*g score
    blocks).  TODO(synk): switch to lax.fori_loop(unroll=True) if g must grow
    past this cap for other shapes.
    """
    g = 1
    for cand in range(1, num_patches_per_image + 1):
        if (num_patches_per_image % cand == 0 and cand * n <= max_lanes
                and cand <= max_group):
            g = cand
    return g


def _pick_lane_tile(hw, max_tile=16384):
    """Largest multiple-of-128 divisor of hw (capped).  The batch grid axis
    already provides >=2 grid steps for v7x's two TensorCores, so there is no
    forced split here — v5e/v6e get a single lane tile per batch."""
    if hw % 128 != 0:
        return hw                      # full extent (valid: equals array dim)
    best, t = 128, 128
    while t <= min(hw, max_tile):
        if hw % t == 0:
            best = t
        t += 128
    return best


# -----------------------------------------------------------------------------
# Pallas kernel 1: fused 3-branch self attention over a group of patches.
# -----------------------------------------------------------------------------
def _patch_attention_kernel(xc_ref, ms_ref, wqk_ref, bqk_ref, o_ref, *, n, g):
    # xc_ref : (1, C, 3*G*N) bf16   -- [x1 | x2 | x3] along lanes
    # ms_ref : (1, C, G*N)   bf16
    # wqk_ref: (2C, C) bf16  (wq stacked over wk) ; bqk_ref: (2C, 1) f32
    # o_ref  : (1, 3, C, G*N) bf16
    c = ms_ref.shape[1]
    gn = ms_ref.shape[2]
    scale = jnp.float32(1.0 / (float(c) ** 0.5))

    # --- one fused q/k projection for all 3 branches (single MXU pass) ------
    xc = xc_ref[0]                                               # (C, 3GN)
    qk = jnp.dot(wqk_ref[...], xc,
                 preferred_element_type=jnp.float32) + bqk_ref[...]  # (2C,3GN)
    q = (qk[:c, :] * scale).astype(jnp.bfloat16)   # fold 1/sqrt(C) into q
    k = qk[c:, :].astype(jnp.bfloat16)

    # --- all 3*g per-patch score blocks, stacked along sublanes -------------
    s_blocks = []
    for t in range(3 * g):                       # branch-major: t = b*g + i
        lo = t * n
        s_blocks.append(lax.dot_general(
            q[:, lo:lo + n], k[:, lo:lo + n],
            dimension_numbers=(((0,), (0,)), ((), ())),          # q_i^T @ k_i
            preferred_element_type=jnp.float32))                 # (N, N)
    s = jnp.concatenate(s_blocks, axis=0)                        # (3gN, N)

    # --- one batched, numerically-stable softmax pass (f32, row-wise) -------
    s = s - jnp.max(s, axis=-1, keepdims=True)
    e = jnp.exp(s)
    a = (e * pl.reciprocal(jnp.sum(e, axis=-1, keepdims=True), approx=True)
         ).astype(jnp.bfloat16)                                  # (3gN, N)

    # --- per-patch AV fused across branches: (C,N) x (N,3N) -----------------
    ms = ms_ref[0]                                               # (C, GN)
    per_branch = [[], [], []]
    for i in range(g):
        a_cat = jnp.concatenate(
            [a[(b * g + i) * n:(b * g + i + 1) * n, :] for b in range(3)],
            axis=1)                                              # (N, 3N)
        oi = jnp.dot(ms[:, i * n:(i + 1) * n], a_cat,
                     preferred_element_type=jnp.float32)         # (C, 3N)
        for b in range(3):
            per_branch[b].append(oi[:, b * n:(b + 1) * n])

    # --- one full-G*N-lane store per branch, bf16 ----------------------------
    for b in range(3):
        o_ref[0, b] = jnp.concatenate(per_branch[b], axis=1).astype(jnp.bfloat16)


def patch_attention(xc, msg, wqk, bqk, n, g):
    # xc: (ngroups, C, 3*G*N) bf16 ; msg: (ngroups, C, G*N) bf16
    # wqk: (2C, C) bf16 ; bqk: (2C, 1) f32
    ngroups, c, gn = msg.shape
    gn3 = xc.shape[2]
    return pl.pallas_call(
        functools.partial(_patch_attention_kernel, n=n, g=g),
        grid=(ngroups,),
        in_specs=[pl.BlockSpec((1, c, gn3), lambda i: (i, 0, 0)),
                  pl.BlockSpec((1, c, gn), lambda i: (i, 0, 0)),
                  pl.BlockSpec((2 * c, c), lambda i: (0, 0)),
                  pl.BlockSpec((2 * c, 1), lambda i: (0, 0))],
        out_specs=pl.BlockSpec((1, 3, c, gn), lambda i: (i, 0, 0, 0)),
        out_shape=jax.ShapeDtypeStruct((ngroups, 3, c, gn), jnp.bfloat16),
        compiler_params=pltpu.CompilerParams(
            dimension_semantics=("parallel",)),
    )(xc, msg, wqk, bqk)


# -----------------------------------------------------------------------------
# Pallas kernel 2: pointwise 1x1 conv (of depthwise_conv) + residual add.
# Grids over (batch, lane-tile) on free NCHW reshapes — no XLA transposes.
# -----------------------------------------------------------------------------
def _pointwise_residual_kernel(feat_ref, pan_ref, wp_ref, bp_ref, o_ref):
    # feat: (1, 3C, T) bf16 ; pan/o: (1, C, T) f32 ; wp: (C, 3C) bf16 ; bp: (C,1)
    y = jnp.dot(wp_ref[...], feat_ref[0], preferred_element_type=jnp.float32)
    o_ref[0] = y + bp_ref[...] + pan_ref[0]


def pointwise_residual(feat3, pan3, wp, bp):
    b, c3, hw = feat3.shape
    c = pan3.shape[1]
    t = _pick_lane_tile(hw)
    return pl.pallas_call(
        _pointwise_residual_kernel,
        grid=(b, hw // t),
        in_specs=[pl.BlockSpec((1, c3, t), lambda bi, i: (bi, 0, i)),
                  pl.BlockSpec((1, c, t), lambda bi, i: (bi, 0, i)),
                  pl.BlockSpec((c, c3), lambda bi, i: (0, 0)),
                  pl.BlockSpec((c, 1), lambda bi, i: (0, 0))],
        out_specs=pl.BlockSpec((1, c, t), lambda bi, i: (bi, 0, i)),
        out_shape=jax.ShapeDtypeStruct((b, c, hw), jnp.float32),
        compiler_params=pltpu.CompilerParams(
            dimension_semantics=("parallel", "parallel")),
    )(feat3, pan3, wp, bp)


# -----------------------------------------------------------------------------
# Plain-JAX glue: spatial convs (cross patch boundaries) and rearranges.
# TODO(synk): kxk spatial convolutions stay on lax.conv_general_dilated (XLA).
# -----------------------------------------------------------------------------
def conv2d(x, w, b, padding, groups=1):
    y = lax.conv_general_dilated(
        x, w, window_strides=(1, 1),
        padding=[(padding, padding), (padding, padding)],
        dimension_numbers=('NCHW', 'OIHW', 'NCHW'),
        feature_group_count=groups)
    return y + b[None, :, None, None]


def patchify(x, p):
    # 'b c (h p1) (w p2) -> b c (h w) (p1 p2)'  (patch pixels contiguous in lanes)
    b, c, hh, ww = x.shape
    h, w = hh // p, ww // p
    x = x.reshape(b, c, h, p, w, p).transpose(0, 1, 2, 4, 3, 5)
    return x.reshape(b, c, h * w, p * p)


def group_patches(xp, g):
    # (B, C, M, N) -> (B*M/g, C, g*N): g consecutive patches per lane-dense block.
    b, c, m, n = xp.shape
    xp = xp.reshape(b, c, m // g, g * n).transpose(0, 2, 1, 3)
    return xp.reshape(b * (m // g), c, g * n)


def ungroup_unpatchify(o, b, h, w, p, g):
    # (B*M/g, 3, C, g*N) -> (B, 3C, H, W)  (single un-patchify + branch concat)
    n = p * p
    m = h * w
    c = o.shape[2]
    o = o.reshape(b, m // g, 3, c, g, n).transpose(0, 2, 3, 1, 4, 5)
    o = o.reshape(b, 3 * c, h, w, p, p).transpose(0, 1, 2, 4, 3, 5)
    return o.reshape(b, 3 * c, h * p, w * p)


# -----------------------------------------------------------------------------
# Full PanAttBlock forward.
# -----------------------------------------------------------------------------
@functools.partial(jax.jit, static_argnames=("patch_size",))
def pan_att_block(ms, pan, params, patch_size):
    b, c, hh, ww = pan.shape
    p = patch_size
    h, w = hh // p, ww // p
    n = p * p
    m = h * w                                   # patches per image
    g = _pick_patches_per_block(m, n)           # patches per Pallas block

    # MultiHeadImageSelfAttention branch convs on pan (spatial, plain JAX).
    x1 = conv2d(pan, params["w1x1"], params["b1x1"], 0)
    x2 = conv2d(pan, params["w3x3"], params["b3x3"], 1)
    x3 = conv2d(pan, params["w5x5"], params["b5x5"], 2)

    def prep(x):   # lane-dense grouped patches, bf16 for the MXU / half the DMA
        return group_patches(patchify(x, p), g).astype(jnp.bfloat16)

    # Branch concat along lanes -> one fused q/k projection in the kernel.
    xc = jnp.concatenate([prep(x1), prep(x2), prep(x3)], axis=-1)  # (ngrp,C,3gN)
    msg = prep(ms)                                                 # (ngrp,C,gN)

    # Stack query/key 1x1-conv weights/biases: (2C, C) and (2C, 1).
    wqk = jnp.concatenate([params["wq"].reshape(c, c),
                           params["wk"].reshape(c, c)], axis=0).astype(jnp.bfloat16)
    bqk = jnp.concatenate([params["bq"], params["bk"]], axis=0).reshape(2 * c, 1)

    # Fused Pallas attention: projection, per-patch Q^T K, batched softmax,
    # fused ms @ [a1|a2|a3]; bf16 output.
    att = patch_attention(xc, msg, wqk, bqk, n, g)      # (ngroups, 3, C, g*n)
    cat = ungroup_unpatchify(att, b, h, w, p, g).astype(jnp.float32)  # (B,3C,H,W)

    # after_att: Conv2d(3C,3C,3) -> ReLU -> depthwise Conv2d(3C,3C,3,groups=3C)
    y = conv2d(cat, params["w_aft"], params["b_aft"], 1)
    y = jnp.maximum(y, 0.0)
    y = conv2d(y, params["w_dw"], params["b_dw"], 1, groups=3 * c)

    # pointwise 1x1 conv + residual add with pan, in Pallas.
    # Free reshapes only (NCHW is already channel-major over HW) — no transposes.
    hw = hh * ww
    feat3 = y.reshape(b, 3 * c, hw).astype(jnp.bfloat16)
    pan3 = pan.reshape(b, c, hw)
    wp = params["w_pw"].reshape(c, 3 * c).astype(jnp.bfloat16)
    bp = params["b_pw"].reshape(c, 1)
    out3 = pointwise_residual(feat3, pan3, wp, bp)      # (B, C, HW) f32
    return out3.reshape(b, c, hh, ww)


# -----------------------------------------------------------------------------
# Deterministic parameter init (synthetic weights; shapes from __init__).
# -----------------------------------------------------------------------------
def init_params(key, nin):
    ks = jax.random.split(key, 16)
    s = 0.1
    f32 = jnp.float32

    def rn(k, shape):
        return (s * jax.random.normal(k, shape)).astype(f32)

    return {
        # MultiHeadImageSelfAttention
        "w1x1": rn(ks[0], (nin, nin, 1, 1)), "b1x1": rn(ks[1], (nin,)),
        "w3x3": rn(ks[2], (nin, nin, 3, 3)), "b3x3": rn(ks[3], (nin,)),
        "w5x5": rn(ks[4], (nin, nin, 5, 5)), "b5x5": rn(ks[5], (nin,)),
        "wq": rn(ks[6], (nin, nin, 1, 1)),   "bq": rn(ks[7], (nin,)),
        "wk": rn(ks[8], (nin, nin, 1, 1)),   "bk": rn(ks[9], (nin,)),
        # after_att: Conv2d(3C,3C,3)
        "w_aft": rn(ks[10], (3 * nin, 3 * nin, 3, 3)), "b_aft": rn(ks[11], (3 * nin,)),
        # depthwise_conv: depthwise (3C,1,3,3) groups=3C, pointwise (C,3C,1,1)
        "w_dw": rn(ks[12], (3 * nin, 1, 3, 3)), "b_dw": rn(ks[13], (3 * nin,)),
        "w_pw": rn(ks[14], (nin, 3 * nin, 1, 1)), "b_pw": rn(ks[15], (nin,)),
    }


if __name__ == "__main__":
    key = jax.random.PRNGKey(0)
    k_ms, k_pan, k_par = jax.random.split(key, 3)

    B, C, H, W = 2, 4, 16, 16
    PATCH = 8  # H, W must be multiples of PATCH

    ms = jax.random.normal(k_ms, (B, C, H, W), dtype=jnp.float32)
    pan = jax.random.normal(k_pan, (B, C, H, W), dtype=jnp.float32)
    params = init_params(k_par, C)

    out = pan_att_block(ms, pan, params, patch_size=PATCH)
    out = jax.block_until_ready(out)
    assert out.shape == (B, C, H, W), out.shape
    assert bool(jnp.all(jnp.isfinite(out)))
    print("KERNEL_OK")
</pallas_src>

<mosaic_0001>
module attributes {stable_mosaic.version = 11 : i64} {
  func.func @_patch_attention_kernel(%arg0: i32, %arg1: memref<1x4x768xbf16, #tpu.memory_space<vmem>>, %arg2: memref<1x4x256xbf16, #tpu.memory_space<vmem>>, %arg3: memref<8x4xbf16, #tpu.memory_space<vmem>>, %arg4: memref<8x1xf32, #tpu.memory_space<vmem>>, %arg5: memref<1x3x4x256xbf16, #tpu.memory_space<vmem>>) attributes {dimension_semantics = [#tpu.dimension_semantics<parallel>], iteration_bounds = array<i64: 2>, scalar_prefetch = 0 : i64, scratch_operands = 0 : i64, tpu.core_type = #tpu.core_type<tc>, window_params = [{transform_indices = @transform_0, window_bounds = array<i64: 1, 4, 768>}, {transform_indices = @transform_1, window_bounds = array<i64: 1, 4, 256>}, {pipeline_mode = #tpu.pipeline_mode<synchronous>, transform_indices = @transform_2, window_bounds = array<i64: 8, 4>}, {pipeline_mode = #tpu.pipeline_mode<synchronous>, transform_indices = @transform_3, window_bounds = array<i64: 8, 1>}, {transform_indices = @transform_4, window_bounds = array<i64: 1, 3, 4, 256>}]} {
    %c0 = arith.constant 0 : index
    %c0_0 = arith.constant 0 : index
    %c0_1 = arith.constant 0 : index
    %0 = vector.load %arg1[%c0, %c0_0, %c0_1] : memref<1x4x768xbf16, #tpu.memory_space<vmem>>, vector<1x4x768xbf16>
    %1 = vector.shape_cast %0 : vector<1x4x768xbf16> to vector<4x768xbf16>
    %c0_2 = arith.constant 0 : index
    %c0_3 = arith.constant 0 : index
    %2 = vector.load %arg3[%c0_2, %c0_3] : memref<8x4xbf16, #tpu.memory_space<vmem>>, vector<8x4xbf16>
    %cst = arith.constant dense<0.000000e+00> : vector<8x768xf32>
    %3 = tpu.matmul %2, %1, %cst {dimension_numbers = #tpu.dot_dimension_numbers<[1], [0], [0], [1], [0, 0, 1, 1], [], []>} : vector<8x4xbf16>, vector<4x768xbf16>, vector<8x768xf32> -> vector<8x768xf32>
    %c0_4 = arith.constant 0 : index
    %c0_5 = arith.constant 0 : index
    %4 = vector.load %arg4[%c0_4, %c0_5] : memref<8x1xf32, #tpu.memory_space<vmem>>, vector<8x1xf32>
    %5 = vector.broadcast %4 : vector<8x1xf32> to vector<8x768xf32>
    %6 = arith.addf %3, %5 : vector<8x768xf32>
    %7 = vector.extract_strided_slice %6 {offsets = [0, 0], sizes = [4, 768], strides = [1, 1]} : vector<8x768xf32> to vector<4x768xf32>
    %cst_6 = arith.constant 5.000000e-01 : f32
    %8 = vector.broadcast %cst_6 : f32 to vector<4x768xf32>
    %9 = arith.mulf %7, %8 : vector<4x768xf32>
    %10 = arith.truncf %9 : vector<4x768xf32> to vector<4x768xbf16>
    %11 = vector.extract_strided_slice %6 {offsets = [4, 0], sizes = [4, 768], strides = [1, 1]} : vector<8x768xf32> to vector<4x768xf32>
    %12 = arith.truncf %11 : vector<4x768xf32> to vector<4x768xbf16>
    %13 = vector.extract_strided_slice %10 {offsets = [0, 0], sizes = [4, 64], strides = [1, 1]} : vector<4x768xbf16> to vector<4x64xbf16>
    %14 = vector.extract_strided_slice %12 {offsets = [0, 0], sizes = [4, 64], strides = [1, 1]} : vector<4x768xbf16> to vector<4x64xbf16>
    %cst_7 = arith.constant dense<0.000000e+00> : vector<64x64xf32>
    %15 = tpu.matmul %13, %14, %cst_7 {dimension_numbers = #tpu.dot_dimension_numbers<[0], [0], [1], [1], [0, 1, 1, 1], [], []>} : vector<4x64xbf16>, vector<4x64xbf16>, vector<64x64xf32> -> vector<64x64xf32>
    %16 = vector.extract_strided_slice %10 {offsets = [0, 64], sizes = [4, 64], strides = [1, 1]} : vector<4x768xbf16> to vector<4x64xbf16>
    %17 = vector.extract_strided_slice %12 {offsets = [0, 64], sizes = [4, 64], strides = [1, 1]} : vector<4x768xbf16> to vector<4x64xbf16>
    %cst_8 = arith.constant dense<0.000000e+00> : vector<64x64xf32>
    %18 = tpu.matmul %16, %17, %cst_8 {dimension_numbers = #tpu.dot_dimension_numbers<[0], [0], [1], [1], [0, 1, 1, 1], [], []>} : vector<4x64xbf16>, vector<4x64xbf16>, vector<64x64xf32> -> vector<64x64xf32>
    %19 = vector.extract_strided_slice %10 {offsets = [0, 128], sizes = [4, 64], strides = [1, 1]} : vector<4x768xbf16> to vector<4x64xbf16>
    %20 = vector.extract_strided_slice %12 {offsets = [0, 128], sizes = [4, 64], strides = [1, 1]} : vector<4x768xbf16> to vector<4x64xbf16>
    %cst_9 = arith.constant dense<0.000000e+00> : vector<64x64xf32>
    %21 = tpu.matmul %19, %20, %cst_9 {dimension_numbers = #tpu.dot_dimension_numbers<[0], [0], [1], [1], [0, 1, 1, 1], [], []>} : vector<4x64xbf16>, vector<4x64xbf16>, vector<64x64xf32> -> vector<64x64xf32>
    %22 = vector.extract_strided_slice %10 {offsets = [0, 192], sizes = [4, 64], strides = [1, 1]} : vector<4x768xbf16> to vector<4x64xbf16>
    %23 = vector.extract_strided_slice %12 {offsets = [0, 192], sizes = [4, 64], strides = [1, 1]} : vector<4x768xbf16> to vector<4x64xbf16>
    %cst_10 = arith.constant dense<0.000000e+00> : vector<64x64xf32>
    %24 = tpu.matmul %22, %23, %cst_10 {dimension_numbers = #tpu.dot_dimension_numbers<[0], [0], [1], [1], [0, 1, 1, 1], [], []>} : vector<4x64xbf16>, vector<4x64xbf16>, vector<64x64xf32> -> vector<64x64xf32>
    %25 = vector.extract_strided_slice %10 {offsets = [0, 256], sizes = [4, 64], strides = [1, 1]} : vector<4x768xbf16> to vector<4x64xbf16>
    %26 = vector.extract_strided_slice %12 {offsets = [0, 256], sizes = [4, 64], strides = [1, 1]} : vector<4x768xbf16> to vector<4x64xbf16>
    %cst_11 = arith.constant dense<0.000000e+00> : vector<64x64xf32>
    %27 = tpu.matmul %25, %26, %cst_11 {dimension_numbers = #tpu.dot_dimension_numbers<[0], [0], [1], [1], [0, 1, 1, 1], [], []>} : vector<4x64xbf16>, vector<4x64xbf16>, vector<64x64xf32> -> vector<64x64xf32>
    %28 = vector.extract_strided_slice %10 {offsets = [0, 320], sizes = [4, 64], strides = [1, 1]} : vector<4x768xbf16> to vector<4x64xbf16>
    %29 = vector.extract_strided_slice %12 {offsets = [0, 320], sizes = [4, 64], strides = [1, 1]} : vector<4x768xbf16> to vector<4x64xbf16>
    %cst_12 = arith.constant dense<0.000000e+00> : vector<64x64xf32>
    %30 = tpu.matmul %28, %29, %cst_12 {dimension_numbers = #tpu.dot_dimension_numbers<[0], [0], [1], [1], [0, 1, 1, 1], [], []>} : vector<4x64xbf16>, vector<4x64xbf16>, vector<64x64xf32> -> vector<64x64xf32>
    %31 = vector.extract_strided_slice %10 {offsets = [0, 384], sizes = [4, 64], strides = [1, 1]} : vector<4x768xbf16> to vector<4x64xbf16>
    %32 = vector.extract_strided_slice %12 {offsets = [0, 384], sizes = [4, 64], strides = [1, 1]} : vector<4x768xbf16> to vector<4x64xbf16>
    %cst_13 = arith.constant dense<0.000000e+00> : vector<64x64xf32>
    %33 = tpu.matmul %31, %32, %cst_13 {dimension_numbers = #tpu.dot_dimension_numbers<[0], [0], [1], [1], [0, 1, 1, 1], [], []>} : vector<4x64xbf16>, vector<4x64xbf16>, vector<64x64xf32> -> vector<64x64xf32>
    %34 = vector.extract_strided_slice %10 {offsets = [0, 448], sizes = [4, 64], strides = [1, 1]} : vector<4x768xbf16> to vector<4x64xbf16>
    %35 = vector.extract_strided_slice %12 {offsets = [0, 448], sizes = [4, 64], strides = [1, 1]} : vector<4x768xbf16> to vector<4x64xbf16>
    %cst_14 = arith.constant dense<0.000000e+00> : vector<64x64xf32>
    %36 = tpu.matmul %34, %35, %cst_14 {dimension_numbers = #tpu.dot_dimension_numbers<[0], [0], [1], [1], [0, 1, 1, 1], [], []>} : vector<4x64xbf16>, vector<4x64xbf16>, vector<64x64xf32> -> vector<64x64xf32>
    %37 = vector.extract_strided_slice %10 {offsets = [0, 512], sizes = [4, 64], strides = [1, 1]} : vector<4x768xbf16> to vector<4x64xbf16>
    %38 = vector.extract_strided_slice %12 {offsets = [0, 512], sizes = [4, 64], strides = [1, 1]} : vector<4x768xbf16> to vector<4x64xbf16>
    %cst_15 = arith.constant dense<0.000000e+00> : vector<64x64xf32>
    %39 = tpu.matmul %37, %38, %cst_15 {dimension_numbers = #tpu.dot_dimension_numbers<[0], [0], [1], [1], [0, 1, 1, 1], [], []>} : vector<4x64xbf16>, vector<4x64xbf16>, vector<64x64xf32> -> vector<64x64xf32>
    %40 = vector.extract_strided_slice %10 {offsets = [0, 576], sizes = [4, 64], strides = [1, 1]} : vector<4x768xbf16> to vector<4x64xbf16>
    %41 = vector.extract_strided_slice %12 {offsets = [0, 576], sizes = [4, 64], strides = [1, 1]} : vector<4x768xbf16> to vector<4x64xbf16>
    %cst_16 = arith.constant dense<0.000000e+00> : vector<64x64xf32>
    %42 = tpu.matmul %40, %41, %cst_16 {dimension_numbers = #tpu.dot_dimension_numbers<[0], [0], [1], [1], [0, 1, 1, 1], [], []>} : vector<4x64xbf16>, vector<4x64xbf16>, vector<64x64xf32> -> vector<64x64xf32>
    %43 = vector.extract_strided_slice %10 {offsets = [0, 640], sizes = [4, 64], strides = [1, 1]} : vector<4x768xbf16> to vector<4x64xbf16>
    %44 = vector.extract_strided_slice %12 {offsets = [0, 640], sizes = [4, 64], strides = [1, 1]} : vector<4x768xbf16> to vector<4x64xbf16>
    %cst_17 = arith.constant dense<0.000000e+00> : vector<64x64xf32>
    %45 = tpu.matmul %43, %44, %cst_17 {dimension_numbers = #tpu.dot_dimension_numbers<[0], [0], [1], [1], [0, 1, 1, 1], [], []>} : vector<4x64xbf16>, vector<4x64xbf16>, vector<64x64xf32> -> vector<64x64xf32>
    %46 = vector.extract_strided_slice %10 {offsets = [0, 704], sizes = [4, 64], strides = [1, 1]} : vector<4x768xbf16> to vector<4x64xbf16>
    %47 = vector.extract_strided_slice %12 {offsets = [0, 704], sizes = [4, 64], strides = [1, 1]} : vector<4x768xbf16> to vector<4x64xbf16>
    %cst_18 = arith.constant dense<0.000000e+00> : vector<64x64xf32>
    %48 = tpu.matmul %46, %47, %cst_18 {dimension_numbers = #tpu.dot_dimension_numbers<[0], [0], [1], [1], [0, 1, 1, 1], [], []>} : vector<4x64xbf16>, vector<4x64xbf16>, vector<64x64xf32> -> vector<64x64xf32>
    %49 = tpu.concatenate %15, %18, %21, %24, %27, %30, %33, %36, %39, %42, %45, %48 in 0 : vector<64x64xf32>, vector<64x64xf32>, vector<64x64xf32>, vector<64x64xf32>, vector<64x64xf32>, vector<64x64xf32>, vector<64x64xf32>, vector<64x64xf32>, vector<64x64xf32>, vector<64x64xf32>, vector<64x64xf32>, vector<64x64xf32> -> vector<768x64xf32>
    %cst_19 = arith.constant dense<0xFF800000> : vector<768xf32>
    %50 = vector.multi_reduction <maximumf>, %49, %cst_19 [1] : vector<768x64xf32> to vector<768xf32>
    %51 = vector.shape_cast %50 : vector<768xf32> to vector<768x1xf32>
    %52 = vector.broadcast %51 : vector<768x1xf32> to vector<768x64xf32>
    %53 = arith.subf %49, %52 : vector<768x64xf32>
    %54 = math.exp %53 : vector<768x64xf32>
    %cst_20 = arith.constant dense<0.000000e+00> : vector<768xf32>
    %55 = vector.multi_reduction <add>, %54, %cst_20 [1] : vector<768x64xf32> to vector<768xf32>
    %56 = vector.shape_cast %55 : vector<768xf32> to vector<768x1xf32>
    %57 = tpu.reciprocal %56 {approx = true} : vector<768x1xf32> -> vector<768x1xf32>
    %58 = vector.broadcast %57 : vector<768x1xf32> to vector<768x64xf32>
    %59 = arith.mulf %54, %58 : vector<768x64xf32>
    %60 = arith.truncf %59 : vector<768x64xf32> to vector<768x64xbf16>
    %c0_21 = arith.constant 0 : index
    %c0_22 = arith.constant 0 : index
    %c0_23 = arith.constant 0 : index
    %61 = vector.load %arg2[%c0_21, %c0_22, %c0_23] : memref<1x4x256xbf16, #tpu.memory_space<vmem>>, vector<1x4x256xbf16>
    %62 = vector.shape_cast %61 : vector<1x4x256xbf16> to vector<4x256xbf16>
    %63 = vector.extract_strided_slice %60 {offsets = [0, 0], sizes = [64, 64], strides = [1, 1]} : vector<768x64xbf16> to vector<64x64xbf16>
    %64 = vector.extract_strided_slice %60 {offsets = [256, 0], sizes = [64, 64], strides = [1, 1]} : vector<768x64xbf16> to vector<64x64xbf16>
    %65 = vector.extract_strided_slice %60 {offsets = [512, 0], sizes = [64, 64], strides = [1, 1]} : vector<768x64xbf16> to vector<64x64xbf16>
    %66 = tpu.concatenate %63, %64, %65 in 1 : vector<64x64xbf16>, vector<64x64xbf16>, vector<64x64xbf16> -> vector<64x192xbf16>
    %67 = vector.extract_strided_slice %62 {offsets = [0, 0], sizes = [4, 64], strides = [1, 1]} : vector<4x256xbf16> to vector<4x64xbf16>
    %cst_24 = arith.constant dense<0.000000e+00> : vector<4x192xf32>
    %68 = tpu.matmul %67, %66, %cst_24 {dimension_numbers = #tpu.dot_dimension_numbers<[1], [0], [0], [1], [0, 0, 1, 1], [], []>} : vector<4x64xbf16>, vector<64x192xbf16>, vector<4x192xf32> -> vector<4x192xf32>
    %69 = vector.extract_strided_slice %68 {offsets = [0, 0], sizes = [4, 64], strides = [1, 1]} : vector<4x192xf32> to vector<4x64xf32>
    %70 = vector.extract_strided_slice %68 {offsets = [0, 64], sizes = [4, 64], strides = [1, 1]} : vector<4x192xf32> to vector<4x64xf32>
    %71 = vector.extract_strided_slice %68 {offsets = [0, 128], sizes = [4, 64], strides = [1, 1]} : vector<4x192xf32> to vector<4x64xf32>
    %72 = vector.extract_strided_slice %60 {offsets = [64, 0], sizes = [64, 64], strides = [1, 1]} : vector<768x64xbf16> to vector<64x64xbf16>
    %73 = vector.extract_strided_slice %60 {offsets = [320, 0], sizes = [64, 64], strides = [1, 1]} : vector<768x64xbf16> to vector<64x64xbf16>
    %74 = vector.extract_strided_slice %60 {offsets = [576, 0], sizes = [64, 64], strides = [1, 1]} : vector<768x64xbf16> to vector<64x64xbf16>
    %75 = tpu.concatenate %72, %73, %74 in 1 : vector<64x64xbf16>, vector<64x64xbf16>, vector<64x64xbf16> -> vector<64x192xbf16>
    %76 = vector.extract_strided_slice %62 {offsets = [0, 64], sizes = [4, 64], strides = [1, 1]} : vector<4x256xbf16> to vector<4x64xbf16>
    %cst_25 = arith.constant dense<0.000000e+00> : vector<4x192xf32>
    %77 = tpu.matmul %76, %75, %cst_25 {dimension_numbers = #tpu.dot_dimension_numbers<[1], [0], [0], [1], [0, 0, 1, 1], [], []>} : vector<4x64xbf16>, vector<64x192xbf16>, vector<4x192xf32> -> vector<4x192xf32>
    %78 = vector.extract_strided_slice %77 {offsets = [0, 0], sizes = [4, 64], strides = [1, 1]} : vector<4x192xf32> to vector<4x64xf32>
    %79 = vector.extract_strided_slice %77 {offsets = [0, 64], sizes = [4, 64], strides = [1, 1]} : vector<4x192xf32> to vector<4x64xf32>
    %80 = vector.extract_strided_slice %77 {offsets = [0, 128], sizes = [4, 64], strides = [1, 1]} : vector<4x192xf32> to vector<4x64xf32>
    %81 = vector.extract_strided_slice %60 {offsets = [128, 0], sizes = [64, 64], strides = [1, 1]} : vector<768x64xbf16> to vector<64x64xbf16>
    %82 = vector.extract_strided_slice %60 {offsets = [384, 0], sizes = [64, 64], strides = [1, 1]} : vector<768x64xbf16> to vector<64x64xbf16>
    %83 = vector.extract_strided_slice %60 {offsets = [640, 0], sizes = [64, 64], strides = [1, 1]} : vector<768x64xbf16> to vector<64x64xbf16>
    %84 = tpu.concatenate %81, %82, %83 in 1 : vector<64x64xbf16>, vector<64x64xbf16>, vector<64x64xbf16> -> vector<64x192xbf16>
    %85 = vector.extract_strided_slice %62 {offsets = [0, 128], sizes = [4, 64], strides = [1, 1]} : vector<4x256xbf16> to vector<4x64xbf16>
    %cst_26 = arith.constant dense<0.000000e+00> : vector<4x192xf32>
    %86 = tpu.matmul %85, %84, %cst_26 {dimension_numbers = #tpu.dot_dimension_numbers<[1], [0], [0], [1], [0, 0, 1, 1], [], []>} : vector<4x64xbf16>, vector<64x192xbf16>, vector<4x192xf32> -> vector<4x192xf32>
    %87 = vector.extract_strided_slice %86 {offsets = [0, 0], sizes = [4, 64], strides = [1, 1]} : vector<4x192xf32> to vector<4x64xf32>
    %88 = vector.extract_strided_slice %86 {offsets = [0, 64], sizes = [4, 64], strides = [1, 1]} : vector<4x192xf32> to vector<4x64xf32>
    %89 = vector.extract_strided_slice %86 {offsets = [0, 128], sizes = [4, 64], strides = [1, 1]} : vector<4x192xf32> to vector<4x64xf32>
    %90 = vector.extract_strided_slice %60 {offsets = [192, 0], sizes = [64, 64], strides = [1, 1]} : vector<768x64xbf16> to vector<64x64xbf16>
    %91 = vector.extract_strided_slice %60 {offsets = [448, 0], sizes = [64, 64], strides = [1, 1]} : vector<768x64xbf16> to vector<64x64xbf16>
    %92 = vector.extract_strided_slice %60 {offsets = [704, 0], sizes = [64, 64], strides = [1, 1]} : vector<768x64xbf16> to vector<64x64xbf16>
    %93 = tpu.concatenate %90, %91, %92 in 1 : vector<64x64xbf16>, vector<64x64xbf16>, vector<64x64xbf16> -> vector<64x192xbf16>
    %94 = vector.extract_strided_slice %62 {offsets = [0, 192], sizes = [4, 64], strides = [1, 1]} : vector<4x256xbf16> to vector<4x64xbf16>
    %cst_27 = arith.constant dense<0.000000e+00> : vector<4x192xf32>
    %95 = tpu.matmul %94, %93, %cst_27 {dimension_numbers = #tpu.dot_dimension_numbers<[1], [0], [0], [1], [0, 0, 1, 1], [], []>} : vector<4x64xbf16>, vector<64x192xbf16>, vector<4x192xf32> -> vector<4x192xf32>
    %96 = vector.extract_strided_slice %95 {offsets = [0, 0], sizes = [4, 64], strides = [1, 1]} : vector<4x192xf32> to vector<4x64xf32>
    %97 = vector.extract_strided_slice %95 {offsets = [0, 64], sizes = [4, 64], strides = [1, 1]} : vector<4x192xf32> to vector<4x64xf32>
    %98 = vector.extract_strided_slice %95 {offsets = [0, 128], sizes = [4, 64], strides = [1, 1]} : vector<4x192xf32> to vector<4x64xf32>
    %99 = tpu.concatenate %69, %78, %87, %96 in 1 : vector<4x64xf32>, vector<4x64xf32>, vector<4x64xf32>, vector<4x64xf32> -> vector<4x256xf32>
    %100 = arith.truncf %99 : vector<4x256xf32> to vector<4x256xbf16>
    %c0_28 = arith.constant 0 : index
    %c0_29 = arith.constant 0 : index
    %c0_30 = arith.constant 0 : index
    %c0_31 = arith.constant 0 : index
    %101 = vector.load %arg5[%c0_28, %c0_29, %c0_30, %c0_31] : memref<1x3x4x256xbf16, #tpu.memory_space<vmem>>, vector<1x1x4x256xbf16>
    %102 = vector.shape_cast %101 : vector<1x1x4x256xbf16> to vector<4x256xbf16>
    %103 = vector.shape_cast %100 : vector<4x256xbf16> to vector<1x1x4x256xbf16>
    tpu.vector_store %arg5[%c0_28, %c0_29, %c0_30, %c0_31], %103 {strides = array<i32>} : memref<1x3x4x256xbf16, #tpu.memory_space<vmem>>, vector<1x1x4x256xbf16>,
    %104 = tpu.concatenate %70, %79, %88, %97 in 1 : vector<4x64xf32>, vector<4x64xf32>, vector<4x64xf32>, vector<4x64xf32> -> vector<4x256xf32>
    %105 = arith.truncf %104 : vector<4x256xf32> to vector<4x256xbf16>
    %c0_32 = arith.constant 0 : index
    %c1 = arith.constant 1 : index
    %c0_33 = arith.constant 0 : index
    %c0_34 = arith.constant 0 : index
    %106 = vector.load %arg5[%c0_32, %c1, %c0_33, %c0_34] : memref<1x3x4x256xbf16, #tpu.memory_space<vmem>>, vector<1x1x4x256xbf16>
    %107 = vector.shape_cast %106 : vector<1x1x4x256xbf16> to vector<4x256xbf16>
    %108 = vector.shape_cast %105 : vector<4x256xbf16> to vector<1x1x4x256xbf16>
    tpu.vector_store %arg5[%c0_32, %c1, %c0_33, %c0_34], %108 {strides = array<i32>} : memref<1x3x4x256xbf16, #tpu.memory_space<vmem>>, vector<1x1x4x256xbf16>,
    %109 = tpu.concatenate %71, %80, %89, %98 in 1 : vector<4x64xf32>, vector<4x64xf32>, vector<4x64xf32>, vector<4x64xf32> -> vector<4x256xf32>
    %110 = arith.truncf %109 : vector<4x256xf32> to vector<4x256xbf16>
    %c0_35 = arith.constant 0 : index
    %c2 = arith.constant 2 : index
    %c0_36 = arith.constant 0 : index
    %c0_37 = arith.constant 0 : index
    %111 = vector.load %arg5[%c0_35, %c2, %c0_36, %c0_37] : memref<1x3x4x256xbf16, #tpu.memory_space<vmem>>, vector<1x1x4x256xbf16>
    %112 = vector.shape_cast %111 : vector<1x1x4x256xbf16> to vector<4x256xbf16>
    %113 = vector.shape_cast %110 : vector<4x256xbf16> to vector<1x1x4x256xbf16>
    tpu.vector_store %arg5[%c0_35, %c2, %c0_36, %c0_37], %113 {strides = array<i32>} : memref<1x3x4x256xbf16, #tpu.memory_space<vmem>>, vector<1x1x4x256xbf16>,
    return
  }
  func.func @transform_0(%arg0: i32) -> (i32, i32, i32) {
    %c0_i32 = arith.constant 0 : i32
    %c0_i32_0 = arith.constant 0 : i32
    %c0_i32_1 = arith.constant 0 : i32
    return %arg0, %c0_i32, %c0_i32_0 : i32, i32, i32
  }
  func.func @transform_1(%arg0: i32) -> (i32, i32, i32) {
    %c0_i32 = arith.constant 0 : i32
    %c0_i32_0 = arith.constant 0 : i32
    %c0_i32_1 = arith.constant 0 : i32
    return %arg0, %c0_i32, %c0_i32_0 : i32, i32, i32
  }
  func.func @transform_2(%arg0: i32) -> (i32, i32) {
    %c0_i32 = arith.constant 0 : i32
    %c0_i32_0 = arith.constant 0 : i32
    %c0_i32_1 = arith.constant 0 : i32
    return %c0_i32, %c0_i32_0 : i32, i32
  }
  func.func @transform_3(%arg0: i32) -> (i32, i32) {
    %c0_i32 = arith.constant 0 : i32
    %c0_i32_0 = arith.constant 0 : i32
    %c0_i32_1 = arith.constant 0 : i32
    return %c0_i32, %c0_i32_0 : i32, i32
  }
  func.func @transform_4(%arg0: i32) -> (i32, i32, i32, i32) {
    %c0_i32 = arith.constant 0 : i32
    %c0_i32_0 = arith.constant 0 : i32
    %c0_i32_1 = arith.constant 0 : i32
    %c0_i32_2 = arith.constant 0 : i32
    return %arg0, %c0_i32, %c0_i32_0, %c0_i32_1 : i32, i32, i32, i32
  }
}

module attributes {stable_mosaic.version = 11 : i64} {
  func.func @_pointwise_residual_kernel(%arg0: i32, %arg1: i32, %arg2: memref<1x12x256xbf16, #tpu.memory_space<vmem>>, %arg3: memref<1x4x256xf32, #tpu.memory_space<vmem>>, %arg4: memref<4x12xbf16, #tpu.memory_space<vmem>>, %arg5: memref<4x1xf32, #tpu.memory_space<vmem>>, %arg6: memref<1x4x256xf32, #tpu.memory_space<vmem>>) attributes {dimension_semantics = [#tpu.dimension_semantics<parallel>, #tpu.dimension_semantics<parallel>], iteration_bounds = array<i64: 2, 1>, scalar_prefetch = 0 : i64, scratch_operands = 0 : i64, tpu.core_type = #tpu.core_type<tc>, window_params = [{transform_indices = @transform_0, window_bounds = array<i64: 1, 12, 256>}, {transform_indices = @transform_1, window_bounds = array<i64: 1, 4, 256>}, {pipeline_mode = #tpu.pipeline_mode<synchronous>, transform_indices = @transform_2, window_bounds = array<i64: 4, 12>}, {pipeline_mode = #tpu.pipeline_mode<synchronous>, transform_indices = @transform_3, window_bounds = array<i64: 4, 1>}, {transform_indices = @transform_4, window_bounds = array<i64: 1, 4, 256>}]} {
    %c0 = arith.constant 0 : index
    %c0_0 = arith.constant 0 : index
    %0 = vector.load %arg4[%c0, %c0_0] : memref<4x12xbf16, #tpu.memory_space<vmem>>, vector<4x12xbf16>
    %c0_1 = arith.constant 0 : index
    %c0_2 = arith.constant 0 : index
    %c0_3 = arith.constant 0 : index
    %1 = vector.load %arg2[%c0_1, %c0_2, %c0_3] : memref<1x12x256xbf16, #tpu.memory_space<vmem>>, vector<1x12x256xbf16>
    %2 = vector.shape_cast %1 : vector<1x12x256xbf16> to vector<12x256xbf16>
    %cst = arith.constant dense<0.000000e+00> : vector<4x256xf32>
    %3 = tpu.matmul %0, %2, %cst {dimension_numbers = #tpu.dot_dimension_numbers<[1], [0], [0], [1], [0, 0, 1, 1], [], []>} : vector<4x12xbf16>, vector<12x256xbf16>, vector<4x256xf32> -> vector<4x256xf32>
    %c0_4 = arith.constant 0 : index
    %c0_5 = arith.constant 0 : index
    %4 = vector.load %arg5[%c0_4, %c0_5] : memref<4x1xf32, #tpu.memory_space<vmem>>, vector<4x1xf32>
    %5 = vector.broadcast %4 : vector<4x1xf32> to vector<4x256xf32>
    %6 = arith.addf %3, %5 : vector<4x256xf32>
    %c0_6 = arith.constant 0 : index
    %c0_7 = arith.constant 0 : index
    %c0_8 = arith.constant 0 : index
    %7 = vector.load %arg3[%c0_6, %c0_7, %c0_8] : memref<1x4x256xf32, #tpu.memory_space<vmem>>, vector<1x4x256xf32>
    %8 = vector.shape_cast %7 : vector<1x4x256xf32> to vector<4x256xf32>
    %9 = arith.addf %6, %8 : vector<4x256xf32>
    %c0_9 = arith.constant 0 : index
    %c0_10 = arith.constant 0 : index
    %c0_11 = arith.constant 0 : index
    %10 = vector.load %arg6[%c0_9, %c0_10, %c0_11] : memref<1x4x256xf32, #tpu.memory_space<vmem>>, vector<1x4x256xf32>
    %11 = vector.shape_cast %10 : vector<1x4x256xf32> to vector<4x256xf32>
    %12 = vector.shape_cast %9 : vector<4x256xf32> to vector<1x4x256xf32>
    tpu.vector_store %arg6[%c0_9, %c0_10, %c0_11], %12 {strides = array<i32>} : memref<1x4x256xf32, #tpu.memory_space<vmem>>, vector<1x4x256xf32>,
    return
  }
  func.func @transform_0(%arg0: i32, %arg1: i32) -> (i32, i32, i32) {
    %c0_i32 = arith.constant 0 : i32
    %c0_i32_0 = arith.constant 0 : i32
    return %arg0, %c0_i32, %arg1 : i32, i32, i32
  }
  func.func @transform_1(%arg0: i32, %arg1: i32) -> (i32, i32, i32) {
    %c0_i32 = arith.constant 0 : i32
    %c0_i32_0 = arith.constant 0 : i32
    return %arg0, %c0_i32, %arg1 : i32, i32, i32
  }
  func.func @transform_2(%arg0: i32, %arg1: i32) -> (i32, i32) {
    %c0_i32 = arith.constant 0 : i32
    %c0_i32_0 = arith.constant 0 : i32
    %c0_i32_1 = arith.constant 0 : i32
    return %c0_i32, %c0_i32_0 : i32, i32
  }
  func.func @transform_3(%arg0: i32, %arg1: i32) -> (i32, i32) {
    %c0_i32 = arith.constant 0 : i32
    %c0_i32_0 = arith.constant 0 : i32
    %c0_i32_1 = arith.constant 0 : i32
    return %c0_i32, %c0_i32_0 : i32, i32
  }
  func.func @transform_4(%arg0: i32, %arg1: i32) -> (i32, i32, i32) {
    %c0_i32 = arith.constant 0 : i32
    %c0_i32_0 = arith.constant 0 : i32
    return %arg0, %c0_i32, %arg1 : i32, i32, i32
  }
}

</mosaic_0001>

<bundles_post_ra>
// kernel: pan_att_block.2
= control target key start
LH: loop header
LB: loop body
LE: loop exit
PB: predicated region body
PF: predicated region fallthrough
CT: control target
= control target key end

     0   :  { %s3887_s15 = smov 0   ;;  %s5556_s0 = inlined_call_operand.vmem [shape: bf16[2,4,768], index: 0, kind: input, shape index: {}]   ;;  %s5557_s1 = inlined_call_operand.vmem [shape: bf16[2,4,256], index: 1, kind: input, shape index: {}]   ;;  %s5558_s2 = inlined_call_operand.vmem [shape: bf16[8,4], index: 2, kind: input, shape index: {}]   ;;  %s5559_s3 = inlined_call_operand.vmem [shape: f32[8,1], index: 3, kind: input, shape index: {}]   ;;  %s5560_s4 = inlined_call_operand.vmem [shape: bf16[2,3,4,256], index: 4, kind: output, shape index: {}]  }
   0x1 LB: > { %s3167_s16 = sadd.s32 4294967295, %s3857_s15   ;;  %p3171_p0 = scmp.ge.s32.totalorder %s3857_s15, 1  ;;  %s3857_s15 = sphi %s3887_s15, %s14_s15  }
   0x2   : > { %p172_p1 = scmp.lt.s32.totalorder %s3857_s15, 3 }
   0x4   : > { %p173_p2 = pnand %p3171_p0, %p172_p1 }
   0x6   : > { %176 = sbr.rel (%p173_p2) target bundleno = 1680 (0x690), region = 36 }
   0xd   : > { %p203_p3 = scmp.lt.s32.totalorder %s3167_s16, 1  ;;  %v234_v0 = vlaneseq  ;;  %v222_v1 = vld [vmem:[%s5559_s3] sm:$0xff]  ;;  %v3859_v2 = vmov 1983009808   ;;  %v5561_v4 = vmov 0   ;;  %vm259_vm0 = vcmask 1041408  }
   0xe   : > { %v232_v3 = vunpack.c.l.s4 %v3859_v2  ;;  %310 = vmatprep.mubr.bf16.mxu0 %v5561_v4  ;;  %351 = vmatprep.mubr.bf16.mxu1 %v5561_v4  ;;  %v221_v18 = vld [vmem:[%s5558_s2] sm:$0xf]  ;;  %vm255_vm1 = vcmask 31744   ;;  %s3861_s25 = smov 64   ;;  %vm1619_vm2 = vcmask 523264  }
   0xf   : > { %s5949_s16 = smov (!%p203_p3, %s3167_s16), 1  ;;  %v235_v5 = vshrl.u32 %v234_v0, 7  ;;  %3450 = vset.pattern.permute.xlu0 %v5561_v4 }
  0x10   : > { %v233_v6 = vunpack.c.0.s8 %v232_v3  ;;  %225 = vperm.xlu0 %3450, %v222_v1   ;;  %s3438_s19 = smul.u32 12, %s5949_s16  ;;  %s3243_s26 = sshll.u32 %s5949_s16, 2 }
  0x11   : > { %s212_s29 = scalar_lea.vmem %s5557_s1, %s3243_s26 }
  0x12   : > { %v3904_v7 = vsub.s32 %v233_v6, %v235_v5  ;;  %s207_s22 = scalar_lea.vmem %s5556_s0, %s3438_s19  ;;  %s217_s6 = scalar_lea.vmem %s5560_s4, %s3438_s19 }
  0x13   : > { %v219_v8 = vld [vmem:[%s207_s22] sm:$0xff]  ;;  %v3176_v9 = vld.sshfl [vmem:[%s207_s22 + $0x8] sm:$0x33 pattern:$0x76325410] }
  0x14   : > { %5678 = vst [vmem:[#allocation2_spill] sm:$0xff] %v3904_v7  ;;  %v237_v10 = vrot.slane %v219_v8, %v3904_v7  ;;  %v230_v11 = vcombine.high %v219_v8, %v219_v8  ;;  %v254_v15 = vcombine.high %v3176_v9, %v3176_v9  ;;  %v273_v19 = vsel %vm259_vm0, %v3176_v9, 0 }
  0x16   : > { %v245_v12 = vcombine.high %v237_v10, %v237_v10  ;;  %v261_v13 = vsel %vm259_vm0, %v237_v10, 0  ;;  %v244_v14 = vrot.slane %v230_v11, %v3904_v7 }
  0x18   : > { %3177 = vmatprep.subr.msk.bf16.mxu0 %vm259_vm0, %v245_v12  ;;  %v246_v16 = vcombine.high %v244_v14, %v244_v14  ;;  %v267_v17 = vsel %vm259_vm0, %v244_v14, 0 }
  0x19   : > { %279 = vmatpush1.bf16.msra.mxu0 %v261_v13 }
  0x1a   : > { %3179 = vmatprep.subr.msk.bf16.mxu1 %vm259_vm0, %v246_v16  ;;  %3181 = vmatprep.subr.msk.bf16.mxu0 %vm259_vm0, %v254_v15 }
  0x1b   : > { %320 = vmatpush1.bf16.msra.mxu1 %v267_v17 }
  0x1c   : > { %3178 = vmatmul.mubr.msk.bf16.vlgmr.msra.gmra.mrb[0].mxu0 %vm255_vm1, %v221_v18 }
  0x1d   : > { %361 = vmatpush1.bf16.msra.mxu0 %v273_v19  ;;  %392 = vmatprep.mubr.bf16.mxu0 %v5561_v4 }
  0x1e   : > { %3180 = vmatmul.mubr.msk.bf16.vlgmr.msra.gmra.mrb[0].mxu1 %vm255_vm1, %v221_v18 }
  0x24   : > { %3182 = vmatmul.mubr.msk.bf16.vlgmr.msra.gmra.mrb[4].mxu0 %vm255_vm1, %v221_v18 }
  0x8f   : > { %v226_v20 = vpop.permute.xlu0 %225 }
  0xef   : > { %v312_v21 = vpop.f32.mrb[0].mxu0 }
  0xf0   : > { %v313_v22 = vadd.f32 %v312_v21, %v226_v20  ;;  %v314_v23 = vpop.f32.mrb[1].mxu0 }
  0xf1   : > { %v315_v24 = vadd.f32 %v314_v23, %v226_v20  ;;  %v316_v25 = vpop.f32.mrb[2].mxu0  ;;  %v353_v26 = vpop.f32.mrb[0].mxu1 }
  0xf2   : > { %v401_v27 = vmul.f32 0.5, %v313_v22  ;;  %v413_v28 = vpack.c.bf16 %v313_v22, %v313_v22  ;;  %v317_v29 = vpop.f32.mrb[3].mxu0  ;;  %v355_v30 = vpop.f32.mrb[1].mxu1  ;;  %v354_v44 = vadd.f32 %v353_v26, %v226_v20 }
  0xf3   : > { %v414_v31 = vpack.c.bf16 %v315_v24, %v315_v24  ;;  %v402_v32 = vmul.f32 0.5, %v315_v24  ;;  %v357_v33 = vpop.f32.mrb[2].mxu1  ;;  %v356_v48 = vadd.f32 %v355_v30, %v226_v20 }
  0xf4   : > { %v407_v34 = vpack.c.bf16 %v401_v27, %v401_v27  ;;  %v436_v35 = vrot.slane %v413_v28, 2  ;;  %v358_v36 = vpop.f32.mrb[3].mxu1  ;;  %v403_v45 = vmul.f32 0.5, %v354_v44  ;;  %v415_v47 = vpack.c.bf16 %v354_v44, %v354_v44 }
  0xf5   : > { %v636_v37 = vrot.slane %v414_v31, 2  ;;  %v408_v38 = vpack.c.bf16 %v402_v32, %v402_v32  ;;  %v416_v50 = vpack.c.bf16 %v356_v48, %v356_v48  ;;  %v404_v58 = vmul.f32 0.5, %v356_v48 }
  0xf6   : > { %518 = vrot.lane.b32.xlu0 %v407_v34, %s3861_s25  ;;  %3426 = vmatprep.subr.msk.bf16.mxu1 %vm259_vm0, %v436_v35  ;;  %v450_v39 = vsel %vm259_vm0, %v436_v35, 0  ;;  %v409_v46 = vpack.c.bf16 %v403_v45, %v403_v45  ;;  %v836_v49 = vrot.slane %v415_v47, 2 }
  0xf7   : > { %v394_v40 = vpop.f32.mrb[4].mxu0  ;;  %718 = vrot.lane.b32.xlu1 %v408_v38, %s3861_s25  ;;  %3307 = vmatpush3.bf16.msra.mxu1 %v450_v39  ;;  %v1036_v52 = vrot.slane %v416_v50, 2  ;;  %v410_v59 = vpack.c.bf16 %v404_v58, %v404_v58  ;;  %v650_v2 = vsel %vm259_vm0, %v636_v37, 0 }
  0xf8   : > { %v396_v41 = vpop.f32.mrb[5].mxu0  ;;  %3428 = vmatprep.subr.msk.bf16.mxu1 %vm259_vm0, %v636_v37  ;;  %v395_v51 = vadd.f32 %v394_v40, %v226_v20  ;;  %v850_v12 = vsel %vm259_vm0, %v836_v49, 0 }
  0xf9   : > { %v398_v42 = vpop.f32.mrb[6].mxu0  ;;  %v397_v54 = vadd.f32 %v396_v41, %v226_v20  ;;  %v1050_v18 = vsel %vm259_vm0, %v1036_v52, 0 }
  0xfa   : > { %537 = vrot.lane.b32.xlu0 %v436_v35, %s3861_s25  ;;  %v399_v43 = vpop.f32.mrb[7].mxu0  ;;  %v417_v53 = vpack.c.bf16 %v395_v51, %v395_v51  ;;  %v405_v6 = vmul.f32 0.5, %v395_v51 }
  0xfb   : > { %v406_v56 = vmul.f32 0.5, %v397_v54  ;;  %v418_v20 = vpack.c.bf16 %v397_v54, %v397_v54 }
  0xfc   : > { %v3936_v55 = vrot.slane %v417_v53, 2  ;;  %v411_v10 = vpack.c.bf16 %v405_v6, %v405_v6 }
  0xfd   : > { %v412_v57 = vpack.c.bf16 %v406_v56, %v406_v56  ;;  %v1436_v22 = vrot.slane %v418_v20, 2 }
  0xfe   : > { %v1250_v26 = vsel %vm259_vm0, %v3936_v55, 0 }
  0xff   : > { %v1450_v36 = vsel %vm259_vm0, %v1436_v22, 0 }
 0x118   : > { %419 = vxpose.xlu0.c.b16.start.end [1/1] (short) (narrow) %v407_v34, 64 }
 0x11a   : > { %619 = vxpose.xlu1.c.b16.start.end [1/1] (short) (narrow) %v408_v38, 64 }
 0x12a   : > { %918 = vrot.lane.b32.xlu1 %v409_v46, %s3861_s25 }
 0x12d   : > { %737 = vrot.lane.b32.xlu0 %v636_v37, %s3861_s25 }
 0x131   : > { %937 = vrot.lane.b32.xlu0 %v836_v49, %s3861_s25 }
 0x135   : > { %1137 = vrot.lane.b32.xlu0 %v1036_v52, %s3861_s25 }
 0x139   : > { %1337 = vrot.lane.b32.xlu0 %v3936_v55, %s3861_s25 }
 0x13d   : > { %1518 = vrot.lane.b32.xlu0 %v412_v57, %s3861_s25 }
 0x14d   : > { %819 = vxpose.xlu1.c.b16.start.end [1/1] (short) (narrow) %v409_v46, 64 }
 0x15b   : > { %1419 = vxpose.xlu0.c.b16.start.end [1/1] (short) (narrow) %v412_v57, 64 }
 0x15d   : > { %1118 = vrot.lane.b32.xlu1 %v410_v59, %s3861_s25 }
 0x168   : > { %v519_v60 = vpop.permute.xlu0 %518 }
 0x169   : > { %v719_v0 = vpop.permute.xlu1 %718 }
 0x16c   : > { %v538_v61 = vpop.permute.xlu0 %537 }
 0x16d   : > { %3427 = vmatprep.subr.msk.bf16.mxu0 %vm259_vm0, %v538_v61  ;;  %v552_v62 = vsel %vm259_vm0, %v538_v61, 0 }
 0x16e   : > { %3317 = vmatpush3.bf16.msra.mxu0 %v552_v62 }
 0x17e   : > { %v427_v63 = vpop.trf.xlu0 }
 0x17f   : > { %3308 = vmatprep.mubr.msk.bf16.mxu1 %vm255_vm1, %v427_v63 }
 0x180   : > { %1019 = vxpose.xlu1.c.b16.start.end [1/1] (short) (narrow) %v410_v59, 64  ;;  %v627_v3 = vpop.trf.xlu1 }
 0x182   : > { %v428_v1 = vpop.trf.xlu0 }
 0x183   : > { %3309 = vmatmul.mubr.msk.bf16.vlgmr.msra.gmra.mrb[4].mxu1 %vm255_vm1, %v428_v1 }
 0x184   : > { %3327 = vmatpush3.bf16.msra.mxu1 %v650_v2  ;;  %v628_v9 = vpop.trf.xlu1 }
 0x185   : > { %3430 = vmatprep.subr.msk.bf16.mxu1 %vm259_vm0, %v836_v49 }
 0x186   : > { %v429_v5 = vpop.trf.xlu0 }
 0x187   : > { %3312 = vmatprep.mubr.msk.bf16.mxu1 %vm255_vm1, %v429_v5 }
 0x188   : > { %v629_v11 = vpop.trf.xlu1 }
 0x18a   : > { %v430_v8 = vpop.trf.xlu0 }
 0x18b   : > { %3313 = vmatmul.mubr.msk.bf16.gmra.mrb[8].mxu1 %vm255_vm1, %v430_v8 }
 0x18c   : > { %3328 = vmatprep.mubr.msk.bf16.mxu1 %vm255_vm1, %v627_v3  ;;  %v630_v13 = vpop.trf.xlu1 }
 0x190   : > { %1318 = vrot.lane.b32.xlu1 %v411_v10, %s3861_s25 }
 0x193   : > { %3329 = vmatmul.mubr.msk.bf16.vlgmr.msra.gmra.mrb[12].mxu1 %vm255_vm1, %v628_v9 }
 0x194   : > { %3347 = vmatpush3.bf16.msra.mxu1 %v850_v12  ;;  %3332 = vmatprep.mubr.msk.bf16.mxu1 %vm255_vm1, %v629_v11 }
 0x195   : > { %3432 = vmatprep.subr.msk.bf16.mxu1 %vm259_vm0, %v1036_v52 }
 0x19b   : > { %3333 = vmatmul.mubr.msk.bf16.gmra.mrb[16].mxu1 %vm255_vm1, %v630_v13 }
 0x19c   : > { %v919_v14 = vpop.permute.xlu1 %918 }
 0x19d   : > { %921 = vxpose.xlu0.c.b16.start.end [1/1] (short) (narrow) %v919_v14, 64 }
 0x19f   : > { %v3957_v15 = vpop.permute.xlu0 %737 }
 0x1a0   : > { %3429 = vmatprep.subr.msk.bf16.mxu0 %vm259_vm0, %v3957_v15  ;;  %v752_v46 = vsel %vm259_vm0, %v3957_v15, 0 }
 0x1a3   : > { %v3976_v29 = vpop.permute.xlu0 %937 }
 0x1a4   : > { %v952_v2 = vsel %vm259_vm0, %v3976_v29, 0 }
 0x1a7   : > { %v3978_v31 = vpop.permute.xlu0 %1137 }
 0x1ab   : > { %v3980_v32 = vpop.permute.xlu0 %1337 }
 0x1af   : > { %v1519_v33 = vpop.permute.xlu0 %1518 }
 0x1b3   : > { %1219 = vxpose.xlu1.c.b16.start.end [1/1] (short) (narrow) %v411_v10, 64  ;;  %v827_v16 = vpop.trf.xlu1 }
 0x1b4   : > { %3348 = vmatprep.mubr.msk.bf16.mxu1 %vm255_vm1, %v827_v16 }
 0x1b7   : > { %v828_v17 = vpop.trf.xlu1 }
 0x1b8   : > { %3349 = vmatmul.mubr.msk.bf16.vlgmr.msra.gmra.mrb[20].mxu1 %vm255_vm1, %v828_v17 }
 0x1b9   : > { %3367 = vmatpush3.bf16.msra.mxu1 %v1050_v18 }
 0x1ba   : > { %3434 = vmatprep.subr.msk.bf16.mxu1 %vm259_vm0, %v3936_v55 }
 0x1bb   : > { %v829_v19 = vpop.trf.xlu1 }
 0x1bc   : > { %3352 = vmatprep.mubr.msk.bf16.mxu1 %vm255_vm1, %v829_v19 }
 0x1bf   : > { %v830_v21 = vpop.trf.xlu1 }
 0x1c0   : > { %3353 = vmatmul.mubr.msk.bf16.gmra.mrb[24].mxu1 %vm255_vm1, %v830_v21 }
 0x1c1   : > { %v1427_v38 = vpop.trf.xlu0 }
 0x1c3   : > { %1537 = vrot.lane.b32.xlu1 %v1436_v22, %s3861_s25 }
 0x1c5   : > { %v1428_v40 = vpop.trf.xlu0 }
 0x1c9   : > { %v1429_v41 = vpop.trf.xlu0 }
 0x1cd   : > { %v1430_v42 = vpop.trf.xlu0 }
 0x1cf   : > { %v1119_v23 = vpop.permute.xlu1 %1118 }
 0x1d0   : > { %1121 = vxpose.xlu0.c.b16.start.end [1/1] (short) (narrow) %v1119_v23, 64 }
 0x1e6   : > { %521 = vxpose.xlu1.c.b16.start.end [1/1] (short) (narrow) %v519_v60, 64  ;;  %v1027_v24 = vpop.trf.xlu1 }
 0x1e7   : > { %3368 = vmatprep.mubr.msk.bf16.mxu1 %vm255_vm1, %v1027_v24 }
 0x1ea   : > { %v1028_v25 = vpop.trf.xlu1 }
 0x1eb   : > { %3369 = vmatmul.mubr.msk.bf16.vlgmr.msra.gmra.mrb[28].mxu1 %vm255_vm1, %v1028_v25 }
 0x1ec   : > { %3387 = vmatpush3.bf16.msra.mxu1 %v1250_v26  ;;  %v1152_v26 = vsel %vm259_vm0, %v3978_v31, 0 }
 0x1ed   : > { %3436 = vmatprep.subr.msk.bf16.mxu1 %vm259_vm0, %v1436_v22 }
 0x1ee   : > { %v1029_v27 = vpop.trf.xlu1 }
 0x1ef   : > { %3372 = vmatprep.mubr.msk.bf16.mxu1 %vm255_vm1, %v1029_v27 }
 0x1f2   : > { %v1030_v28 = vpop.trf.xlu1 }
 0x1f3   : > { %721 = vxpose.xlu1.c.b16.start.end [1/1] (short) (narrow) %v719_v0, 64  ;;  %3373 = vmatmul.mubr.msk.bf16.gmra.mrb[32].mxu1 %vm255_vm1, %v1030_v28 }
 0x202   : > { %v1319_v30 = vpop.permute.xlu1 %1318 }
 0x203   : > { %1321 = vxpose.xlu0.c.b16.start.end [1/1] (short) (narrow) %v1319_v30, 64  ;;  %v929_v47 = vpop.trf.xlu0 }
 0x207   : > { %v930_v52 = vpop.trf.xlu0 }
 0x20b   : > { %v931_v61 = vpop.trf.xlu0 }
 0x20f   : > { %v932_v9 = vpop.trf.xlu0 }
 0x210   : > { %1521 = vxpose.xlu0.c.b16.start.end [1/1] (short) (narrow) %v1519_v33, 64 }
 0x219   : > { %v1227_v34 = vpop.trf.xlu1 }
 0x21a   : > { %3388 = vmatprep.mubr.msk.bf16.mxu1 %vm255_vm1, %v1227_v34  ;;  %v1352_v34 = vsel %vm259_vm0, %v3980_v32, 0 }
 0x21d   : > { %v1228_v35 = vpop.trf.xlu1 }
 0x21e   : > { %3389 = vmatmul.mubr.msk.bf16.vlgmr.msra.gmra.mrb[36].mxu1 %vm255_vm1, %v1228_v35 }
 0x21f   : > { %3407 = vmatpush3.bf16.msra.mxu1 %v1450_v36 }
 0x221   : > { %v1229_v37 = vpop.trf.xlu1 }
 0x222   : > { %3392 = vmatprep.mubr.msk.bf16.mxu1 %vm255_vm1, %v1229_v37 }
 0x225   : > { %v1230_v39 = vpop.trf.xlu1 }
 0x226   : > { %3393 = vmatmul.mubr.msk.bf16.gmra.mrb[40].mxu1 %vm255_vm1, %v1230_v39 }
 0x227   : > { %3408 = vmatprep.mubr.msk.bf16.mxu1 %vm255_vm1, %v1427_v38 }
 0x22e   : > { %3409 = vmatmul.mubr.msk.bf16.vlgmr.msra.gmra.mrb[44].mxu1 %vm255_vm1, %v1428_v40 }
 0x22f   : > { %3412 = vmatprep.mubr.msk.bf16.mxu1 %vm255_vm1, %v1429_v41 }
 0x235   : > { %v3992_v43 = vpop.permute.xlu1 %1537 }
 0x236   : > { %3413 = vmatmul.mubr.msk.bf16.gmra.mrb[48].mxu1 %vm255_vm1, %v1430_v42  ;;  %v1129_v19 = vpop.trf.xlu0 }
 0x237   : > { %2788 = vmatprep.mubr.bf16.mxu1 %v5561_v4 }
 0x23a   : > { %v1130_v25 = vpop.trf.xlu0 }
 0x24c   : > { %v529_v44 = vpop.trf.xlu1 }
 0x24d   : > { %3318 = vmatprep.mubr.msk.bf16.mxu0 %vm255_vm1, %v529_v44 }
 0x250   : > { %v530_v45 = vpop.trf.xlu1 }
 0x251   : > { %3319 = vmatmul.mubr.msk.bf16.vlgmr.msra.gmra.mrb[8].mxu0 %vm255_vm1, %v530_v45 }
 0x252   : > { %3337 = vmatpush3.bf16.msra.mxu0 %v752_v46  ;;  %v1552_v46 = vsel %vm259_vm0, %v3992_v43, 0 }
 0x253   : > { %3431 = vmatprep.subr.msk.bf16.mxu0 %vm259_vm0, %v3976_v29 }
 0x254   : > { %v531_v48 = vpop.trf.xlu1 }
 0x255   : > { %3322 = vmatprep.mubr.msk.bf16.mxu0 %vm255_vm1, %v531_v48 }
 0x256   : > { %v4001_v49 = vpop.f32.mrb[4].mxu1 }
 0x257   : > { %v4003_v50 = vpop.f32.mrb[5].mxu1  ;;  %v1626_v51 = vsel %vm1619_vm2, %v4001_v49, -inf }
 0x258   : > { %v4007_v53 = vpop.f32.mrb[6].mxu1  ;;  %1627 = vmax.xlane.f32.xlu1 %v1626_v51  ;;  %v532_v54 = vpop.trf.xlu1  ;;  %v1620_v56 = vsel %vm1619_vm2, %v4003_v50, -inf }
 0x259   : > { %v4009_v55 = vpop.f32.mrb[7].mxu1  ;;  %3323 = vmatmul.mubr.msk.bf16.gmra.mrb[12].mxu0 %vm255_vm1, %v532_v54  ;;  %v1629_v59 = vsel %vm1619_vm2, %v4007_v53, -inf }
 0x25a   : > { %v1623_v57 = vsel %vm1619_vm2, %v4009_v55, -inf }
 0x25b   : > { %1624 = vmax.xlane.f32.xlu0 %v1623_v57 }
 0x25c   : > { %1621 = vmax.xlane.f32.xlu1 %v1620_v56  ;;  %v729_v58 = vpop.trf.xlu1 }
 0x25d   : > { %3338 = vmatprep.mubr.msk.bf16.mxu0 %vm255_vm1, %v729_v58 }
 0x25e   : > { %v4019_v60 = vpop.f32.mrb[8].mxu1 }
 0x25f   : > { %v1638_v62 = vsel %vm1619_vm2, %v4019_v60, -inf  ;;  %v4023_v63 = vpop.f32.mrb[9].mxu1 }
 0x260   : > { %1630 = vmax.xlane.f32.xlu1 %v1629_v59  ;;  %1639 = vmax.xlane.f32.xlu0 %v1638_v62  ;;  %v730_v0 = vpop.trf.xlu1  ;;  %v4025_v1 = vpop.f32.mrb[10].mxu1  ;;  %v1632_v5 = vsel %vm1619_vm2, %v4023_v63, -inf }
 0x261   : > { %3339 = vmatmul.mubr.msk.bf16.vlgmr.msra.gmra.mrb[16].mxu0 %vm255_vm1, %v730_v0  ;;  %v1641_v3 = vsel %vm1619_vm2, %v4025_v1, -inf  ;;  %v4034_v6 = vpop.f32.mrb[11].mxu1 }
 0x262   : > { %3357 = vmatpush3.bf16.msra.mxu0 %v952_v2  ;;  %v1635_v10 = vsel %vm1619_vm2, %v4034_v6, -inf }
 0x263   : > { %3433 = vmatprep.subr.msk.bf16.mxu0 %vm259_vm0, %v3978_v31  ;;  %v1131_v31 = vpop.trf.xlu0 }
 0x264   : > { %1642 = vmax.xlane.f32.xlu1 %v1641_v3  ;;  %1633 = vmax.xlane.f32.xlu0 %v1632_v5  ;;  %v731_v8 = vpop.trf.xlu1 }
 0x265   : > { %3342 = vmatprep.mubr.msk.bf16.mxu0 %vm255_vm1, %v731_v8 }
 0x266   : > { %v4041_v11 = vpop.f32.mrb[12].mxu1 }
 0x267   : > { %v1674_v12 = vsel %vm1619_vm2, %v4041_v11, -inf  ;;  %v4045_v13 = vpop.f32.mrb[13].mxu1  ;;  %v1132_v33 = vpop.trf.xlu0 }
 0x268   : > { %1636 = vmax.xlane.f32.xlu1 %v1635_v10  ;;  %1675 = vmax.xlane.f32.xlu0 %v1674_v12  ;;  %v732_v14 = vpop.trf.xlu1  ;;  %v4047_v15 = vpop.f32.mrb[14].mxu1  ;;  %v1668_v17 = vsel %vm1619_vm2, %v4045_v13, -inf }
 0x269   : > { %3343 = vmatmul.mubr.msk.bf16.gmra.mrb[20].mxu0 %vm255_vm1, %v732_v14  ;;  %v1677_v16 = vsel %vm1619_vm2, %v4047_v15, -inf  ;;  %v4054_v18 = vpop.f32.mrb[15].mxu1 }
 0x26a   : > { %3358 = vmatprep.mubr.msk.bf16.mxu0 %vm255_vm1, %v929_v47  ;;  %v1671_v20 = vsel %vm1619_vm2, %v4054_v18, -inf }
 0x26b   : > { %v1329_v35 = vpop.trf.xlu0 }
 0x26c   : > { %1678 = vmax.xlane.f32.xlu1 %v1677_v16  ;;  %1669 = vmax.xlane.f32.xlu0 %v1668_v17 }
 0x26e   : > { %v4059_v21 = vpop.f32.mrb[16].mxu1 }
 0x26f   : > { %v1686_v22 = vsel %vm1619_vm2, %v4059_v21, -inf  ;;  %v4063_v23 = vpop.f32.mrb[17].mxu1  ;;  %v1330_v36 = vpop.trf.xlu0 }
 0x270   : > { %1672 = vmax.xlane.f32.xlu1 %v1671_v20  ;;  %1687 = vmax.xlane.f32.xlu0 %v1686_v22  ;;  %v4065_v24 = vpop.f32.mrb[18].mxu1  ;;  %v1680_v28 = vsel %vm1619_vm2, %v4063_v23, -inf }
 0x271   : > { %3359 = vmatmul.mubr.msk.bf16.vlgmr.msra.gmra.mrb[24].mxu0 %vm255_vm1, %v930_v52  ;;  %v1689_v27 = vsel %vm1619_vm2, %v4065_v24, -inf  ;;  %v4074_v29 = vpop.f32.mrb[19].mxu1 }
 0x272   : > { %3377 = vmatpush3.bf16.msra.mxu0 %v1152_v26  ;;  %3362 = vmatprep.mubr.msk.bf16.mxu0 %vm255_vm1, %v931_v61  ;;  %v1683_v30 = vsel %vm1619_vm2, %v4074_v29, -inf }
 0x273   : > { %3435 = vmatprep.subr.msk.bf16.mxu0 %vm259_vm0, %v3980_v32  ;;  %v1331_v32 = vpop.trf.xlu0 }
 0x274   : > { %1690 = vmax.xlane.f32.xlu1 %v1689_v27  ;;  %1681 = vmax.xlane.f32.xlu0 %v1680_v28 }
 0x277   : > { %v1332_v47 = vpop.trf.xlu0 }
 0x278   : > { %1684 = vmax.xlane.f32.xlu1 %v1683_v30 }
 0x279   : > { %3363 = vmatmul.mubr.msk.bf16.gmra.mrb[28].mxu0 %vm255_vm1, %v932_v9 }
 0x27a   : > { %3378 = vmatprep.mubr.msk.bf16.mxu0 %vm255_vm1, %v1129_v19 }
 0x27b   : > { %v1529_v58 = vpop.trf.xlu0 }
 0x27f   : > { %v1530_v61 = vpop.trf.xlu0 }
 0x281   : > { %3379 = vmatmul.mubr.msk.bf16.vlgmr.msra.gmra.mrb[32].mxu0 %vm255_vm1, %v1130_v25 }
 0x282   : > { %3397 = vmatpush3.bf16.msra.mxu0 %v1352_v34  ;;  %3382 = vmatprep.mubr.msk.bf16.mxu0 %vm255_vm1, %v1131_v31 }
 0x283   : > { %3437 = vmatprep.subr.msk.bf16.mxu0 %vm259_vm0, %v3992_v43  ;;  %v1531_v62 = vpop.trf.xlu0 }
 0x287   : > { %v1532_v0 = vpop.trf.xlu0 }
 0x289   : > { %3383 = vmatmul.mubr.msk.bf16.gmra.mrb[36].mxu0 %vm255_vm1, %v1132_v33 }
 0x28a   : > { %3398 = vmatprep.mubr.msk.bf16.mxu0 %vm255_vm1, %v1329_v35 }
 0x28b   : > { %v4091_v37 = vpop.f32.mrb[20].mxu1 }
 0x28c   : > { %v4093_v38 = vpop.f32.mrb[21].mxu1  ;;  %v1722_v39 = vsel %vm1619_vm2, %v4091_v37, -inf }
 0x28d   : > { %v4097_v40 = vpop.f32.mrb[22].mxu1  ;;  %1723 = vmax.xlane.f32.xlu0 %v1722_v39  ;;  %v1716_v44 = vsel %vm1619_vm2, %v4093_v38, -inf }
 0x28e   : > { %v1725_v41 = vsel %vm1619_vm2, %v4097_v40, -inf  ;;  %v4101_v42 = vpop.f32.mrb[23].mxu1 }
 0x28f   : > { %1726 = vmax.xlane.f32.xlu1 %v1725_v41  ;;  %v1719_v45 = vsel %vm1619_vm2, %v4101_v42, -inf }
 0x291   : > { %1717 = vmax.xlane.f32.xlu0 %v1716_v44  ;;  %3399 = vmatmul.mubr.msk.bf16.vlgmr.msra.gmra.mrb[40].mxu0 %vm255_vm1, %v1330_v36 }
 0x292   : > { %3417 = vmatpush3.bf16.msra.mxu0 %v1552_v46  ;;  %3402 = vmatprep.mubr.msk.bf16.mxu0 %vm255_vm1, %v1331_v32 }
 0x293   : > { %1720 = vmax.xlane.f32.xlu1 %v1719_v45  ;;  %v4111_v48 = vpop.f32.mrb[24].mxu1 }
 0x294   : > { %v4113_v51 = vpop.f32.mrb[25].mxu1  ;;  %v1734_v52 = vsel %vm1619_vm2, %v4111_v48, -inf }
 0x295   : > { %v4117_v54 = vpop.f32.mrb[26].mxu1  ;;  %1735 = vmax.xlane.f32.xlu0 %v1734_v52  ;;  %v1728_v43 = vsel %vm1619_vm2, %v4113_v51, -inf }
 0x296   : > { %v1737_v56 = vsel %vm1619_vm2, %v4117_v54, -inf  ;;  %v4121_v57 = vpop.f32.mrb[27].mxu1 }
 0x297   : > { %1738 = vmax.xlane.f32.xlu1 %v1737_v56  ;;  %v1731_v59 = vsel %vm1619_vm2, %v4121_v57, -inf }
 0x299   : > { %1729 = vmax.xlane.f32.xlu0 %v1728_v43  ;;  %3403 = vmatmul.mubr.msk.bf16.gmra.mrb[44].mxu0 %vm255_vm1, %v1332_v47 }
 0x29a   : > { %3418 = vmatprep.mubr.msk.bf16.mxu0 %vm255_vm1, %v1529_v58 }
 0x29b   : > { %1732 = vmax.xlane.f32.xlu1 %v1731_v59 }
 0x2a1   : > { %3419 = vmatmul.mubr.msk.bf16.vlgmr.msra.gmra.mrb[48].mxu0 %vm255_vm1, %v1530_v61 }
 0x2a2   : > { %3422 = vmatprep.mubr.msk.bf16.mxu0 %vm255_vm1, %v1531_v62 }
 0x2a9   : > { %3423 = vmatmul.mubr.msk.bf16.gmra.mrb[52].mxu0 %vm255_vm1, %v1532_v0 }
 0x2aa   : > { %2870 = vmatprep.mubr.bf16.mxu0 %v5561_v4 }
 0x2be   : > { %v4133_v2 = vpop.f32.mrb[28].mxu1 }
 0x2bf   : > { %v4135_v3 = vpop.f32.mrb[29].mxu1  ;;  %v1770_v5 = vsel %vm1619_vm2, %v4133_v2, -inf }
 0x2c0   : > { %v4139_v8 = vpop.f32.mrb[30].mxu1  ;;  %1771 = vmax.xlane.f32.xlu0 %v1770_v5  ;;  %v1764_v12 = vsel %vm1619_vm2, %v4135_v3, -inf }
 0x2c1   : > { %v1773_v9 = vsel %vm1619_vm2, %v4139_v8, -inf  ;;  %v4143_v10 = vpop.f32.mrb[31].mxu1 }
 0x2c2   : > { %1774 = vmax.xlane.f32.xlu1 %v1773_v9  ;;  %v1767_v14 = vsel %vm1619_vm2, %v4143_v10, -inf }
 0x2c4   : > { %1765 = vmax.xlane.f32.xlu0 %v1764_v12 }
 0x2c6   : > { %1768 = vmax.xlane.f32.xlu1 %v1767_v14  ;;  %v4149_v16 = vpop.f32.mrb[32].mxu1 }
 0x2c7   : > { %v4151_v17 = vpop.f32.mrb[33].mxu1  ;;  %v1782_v19 = vsel %vm1619_vm2, %v4149_v16, -inf }
 0x2c8   : > { %v4155_v20 = vpop.f32.mrb[34].mxu1  ;;  %1783 = vmax.xlane.f32.xlu0 %v1782_v19  ;;  %v1776_v26 = vsel %vm1619_vm2, %v4151_v17, -inf }
 0x2c9   : > { %v1785_v22 = vsel %vm1619_vm2, %v4155_v20, -inf  ;;  %v4159_v25 = vpop.f32.mrb[35].mxu1 }
 0x2ca   : > { %1786 = vmax.xlane.f32.xlu1 %v1785_v22  ;;  %v1779_v27 = vsel %vm1619_vm2, %v4159_v25, -inf }
 0x2cc   : > { %1777 = vmax.xlane.f32.xlu0 %v1776_v26 }
 0x2ce   : > { %1780 = vmax.xlane.f32.xlu1 %v1779_v27 }
 0x2f1   : > { %v4165_v28 = vpop.f32.mrb[36].mxu1 }
 0x2f2   : > { %v4167_v30 = vpop.f32.mrb[37].mxu1  ;;  %v1818_v31 = vsel %vm1619_vm2, %v4165_v28, -inf }
 0x2f3   : > { %1819 = vmax.xlane.f32.xlu0 %v1818_v31  ;;  %v4171_v33 = vpop.f32.mrb[38].mxu1  ;;  %v1812_v35 = vsel %vm1619_vm2, %v4167_v30, -inf }
 0x2f4   : > { %v1821_v34 = vsel %vm1619_vm2, %v4171_v33, -inf  ;;  %v4177_v36 = vpop.f32.mrb[39].mxu1 }
 0x2f5   : > { %1822 = vmax.xlane.f32.xlu1 %v1821_v34  ;;  %v1815_v39 = vsel %vm1619_vm2, %v4177_v36, -inf }
 0x2f7   : > { %1813 = vmax.xlane.f32.xlu0 %v1812_v35 }
 0x2f9   : > { %1816 = vmax.xlane.f32.xlu1 %v1815_v39  ;;  %v4181_v32 = vpop.f32.mrb[40].mxu1 }
 0x2fa   : > { %v4183_v41 = vpop.f32.mrb[41].mxu1  ;;  %v1830_v44 = vsel %vm1619_vm2, %v4181_v32, -inf }
 0x2fb   : > { %1831 = vmax.xlane.f32.xlu0 %v1830_v44  ;;  %v4187_v45 = vpop.f32.mrb[42].mxu1  ;;  %v1824_v47 = vsel %vm1619_vm2, %v4183_v41, -inf }
 0x2fc   : > { %v1833_v46 = vsel %vm1619_vm2, %v4187_v45, -inf  ;;  %v4193_v52 = vpop.f32.mrb[43].mxu1 }
 0x2fd   : > { %1834 = vmax.xlane.f32.xlu1 %v1833_v46  ;;  %v1827_v56 = vsel %vm1619_vm2, %v4193_v52, -inf }
 0x2ff   : > { %1825 = vmax.xlane.f32.xlu0 %v1824_v47  ;;  %v1628_v47 = vpop.xlane.xlu1 %1627 }
 0x301   : > { %1828 = vmax.xlane.f32.xlu1 %v1827_v56  ;;  %v4197_v43 = vpop.f32.mrb[44].mxu1 }
 0x302   : > { %v4199_v58 = vpop.f32.mrb[45].mxu1  ;;  %v1866_v59 = vsel %vm1619_vm2, %v4197_v43, -inf }
 0x303   : > { %5679 = vst [vmem:[#allocation3_spill] sm:$0xff] %v4199_v58  ;;  %1867 = vmax.xlane.f32.xlu0 %v1866_v59  ;;  %v4203_v61 = vpop.f32.mrb[46].mxu1  ;;  %v1860_v0 = vsel %vm1619_vm2, %v4199_v58, -inf }
 0x304   : > { %v1869_v62 = vsel %vm1619_vm2, %v4203_v61, -inf  ;;  %v4209_v5 = vpop.f32.mrb[47].mxu1 }
 0x305   : > { %5680 = vst [vmem:[#allocation4_spill] sm:$0xff] %v4209_v5  ;;  %1870 = vmax.xlane.f32.xlu1 %v1869_v62  ;;  %v1863_v9 = vsel %vm1619_vm2, %v4209_v5, -inf }
 0x307   : > { %1861 = vmax.xlane.f32.xlu0 %v1860_v0 }
 0x309   : > { %1864 = vmax.xlane.f32.xlu1 %v1863_v9  ;;  %v4213_v12 = vpop.f32.mrb[48].mxu1 }
 0x30a   : > { %5681 = vst [vmem:[#allocation5_spill] sm:$0xff] %v4213_v12  ;;  %v4215_v14 = vpop.f32.mrb[49].mxu1  ;;  %v1878_v19 = vsel %vm1619_vm2, %v4213_v12, -inf }
 0x30b   : > { %5682 = vst [vmem:[#allocation6_spill] sm:$0xff] %v4215_v14  ;;  %1879 = vmax.xlane.f32.xlu0 %v1878_v19  ;;  %v4219_v22 = vpop.f32.mrb[50].mxu1  ;;  %v1872_v27 = vsel %vm1619_vm2, %v4215_v14, -inf  ;;  %v1622_v19 = vpop.xlane.xlu1 %1621 }
 0x30c   : > { %5683 = vst [vmem:[#allocation7_spill] sm:$0xff] %v4219_v22  ;;  %v1881_v26 = vsel %vm1619_vm2, %v4219_v22, -inf  ;;  %v4225_v31 = vpop.f32.mrb[51].mxu1  ;;  %v1908_v22 = vsub.f32 %v4003_v50, %v1622_v19 }
 0x30d   : > { %5684 = vst [vmem:[#allocation8_spill] sm:$0xff] %v4225_v31  ;;  %1882 = vmax.xlane.f32.xlu1 %v1881_v26  ;;  %v1875_v34 = vsel %vm1619_vm2, %v4225_v31, -inf }
 0x30e   : > { %v2004_v19 = vmul.f32 1.442695, %v1908_v22 }
 0x30f   : > { %1873 = vmax.xlane.f32.xlu0 %v1872_v27  ;;  %v1631_v4 = vpop.xlane.xlu1 %1630 }
 0x310   : > { %v1911_v31 = vsub.f32 %v4007_v53, %v1631_v4 }
 0x311   : > { %1876 = vmax.xlane.f32.xlu1 %v1875_v34 }
 0x312   : > { %v2010_v53 = vmul.f32 1.442695, %v1911_v31 }
 0x324   : > { %v4229_v35 = vpop.f32.mrb[8].mxu0 }
 0x325   : > { %5685 = vst [vmem:[#allocation9_spill] sm:$0xff] %v4229_v35  ;;  %v4231_v39 = vpop.f32.mrb[9].mxu0  ;;  %v1650_v44 = vsel %vm1619_vm2, %v4229_v35, -inf }
 0x326   : > { %5686 = vst [vmem:[#allocation10_spill] sm:$0xff] %v4231_v39  ;;  %1651 = vmax.xlane.f32.xlu0 %v1650_v44  ;;  %v4235_v46 = vpop.f32.mrb[10].mxu0  ;;  %v1644_v62 = vsel %vm1619_vm2, %v4231_v39, -inf }
 0x327   : > { %5687 = vst [vmem:[#allocation11_spill] sm:$0xff] %v4235_v46  ;;  %v4237_v56 = vpop.f32.mrb[11].mxu0  ;;  %v1653_v59 = vsel %vm1619_vm2, %v4235_v46, -inf }
 0x328   : > { %5688 = vst [vmem:[#allocation12_spill] sm:$0xff] %v4237_v56  ;;  %1654 = vmax.xlane.f32.xlu1 %v1653_v59  ;;  %v1647_v0 = vsel %vm1619_vm2, %v4237_v56, -inf }
 0x32a   : > { %1645 = vmax.xlane.f32.xlu0 %v1644_v62  ;;  %v1625_v62 = vpop.xlane.xlu0 %1624 }
 0x32b   : > { %v1909_v4 = vsub.f32 %v4009_v55, %v1625_v62 }
 0x32c   : > { %1648 = vmax.xlane.f32.xlu1 %v1647_v0  ;;  %v4245_v9 = vpop.f32.mrb[12].mxu0 }
 0x32d   : > { %5689 = vst [vmem:[#allocation13_spill] sm:$0xff] %v4245_v9  ;;  %v4247_v26 = vpop.f32.mrb[13].mxu0  ;;  %v1662_v27 = vsel %vm1619_vm2, %v4245_v9, -inf }
 0x32e   : > { %5690 = vst [vmem:[#allocation14_spill] sm:$0xff] %v4247_v26  ;;  %1663 = vmax.xlane.f32.xlu0 %v1662_v27  ;;  %v4251_v34 = vpop.f32.mrb[14].mxu0  ;;  %v1656_v0 = vsel %vm1619_vm2, %v4247_v26, -inf }
 0x32f   : > { %5691 = vst [vmem:[#allocation15_spill] sm:$0xff] %v4251_v34  ;;  %v4253_v44 = vpop.f32.mrb[15].mxu0  ;;  %v1665_v59 = vsel %vm1619_vm2, %v4251_v34, -inf }
 0x330   : > { %5692 = vst [vmem:[#allocation16_spill] sm:$0xff] %v4253_v44  ;;  %1666 = vmax.xlane.f32.xlu1 %v1665_v59  ;;  %v1659_v7 = vsel %vm1619_vm2, %v4253_v44, -inf  ;;  %v4269_v59 = vpop.xlane.xlu0 %1639  ;;  %v4275_v44 = vpop.xlane.xlu1 %1642 }
 0x332   : > { %1657 = vmax.xlane.f32.xlu0 %v1656_v0 }
 0x334   : > { %1660 = vmax.xlane.f32.xlu1 %v1659_v7  ;;  %v4261_v9 = vpop.f32.mrb[16].mxu0  ;;  %v4283_v26 = vpop.xlane.xlu0 %1633 }
 0x335   : > { %5693 = vst [vmem:[#allocation17_spill] sm:$0xff] %v4261_v9  ;;  %v4263_v27 = vpop.f32.mrb[17].mxu0  ;;  %v1698_v56 = vsel %vm1619_vm2, %v4261_v9, -inf  ;;  %v4291_v35 = vpop.xlane.xlu1 %1636 }
 0x336   : > { %5694 = vst [vmem:[#allocation18_spill] sm:$0xff] %v4263_v27  ;;  %1699 = vmax.xlane.f32.xlu0 %v1698_v56  ;;  %v4267_v34 = vpop.f32.mrb[18].mxu0  ;;  %v1692_v7 = vsel %vm1619_vm2, %v4263_v27, -inf }
 0x337   : > { %5695 = vst [vmem:[#allocation19_spill] sm:$0xff] %v4267_v34  ;;  %v4271_v39 = vpop.f32.mrb[19].mxu0  ;;  %v1701_v0 = vsel %vm1619_vm2, %v4267_v34, -inf }
 0x338   : > { %5696 = vst [vmem:[#allocation20_spill] sm:$0xff] %v4271_v39  ;;  %1702 = vmax.xlane.f32.xlu1 %v1701_v0  ;;  %v1695_v9 = vsel %vm1619_vm2, %v4271_v39, -inf }
 0x33a   : > { %1693 = vmax.xlane.f32.xlu0 %v1692_v7 }
 0x33c   : > { %1696 = vmax.xlane.f32.xlu1 %v1695_v9  ;;  %v4281_v56 = vpop.f32.mrb[20].mxu0  ;;  %v1910_v9 = vsub.f32 %v4001_v49, %v1628_v47 }
 0x33d   : > { %5697 = vst [vmem:[#allocation21_spill] sm:$0xff] %v4281_v56  ;;  %v4285_v46 = vpop.f32.mrb[21].mxu0  ;;  %v1710_v34 = vsel %vm1619_vm2, %v4281_v56, -inf  ;;  %v4301_v56 = vpop.xlane.xlu0 %1675 }
 0x33e   : > { %5698 = vst [vmem:[#allocation22_spill] sm:$0xff] %v4285_v46  ;;  %1711 = vmax.xlane.f32.xlu0 %v1710_v34  ;;  %v4289_v0 = vpop.f32.mrb[22].mxu0  ;;  %v1704_v39 = vsel %vm1619_vm2, %v4285_v46, -inf  ;;  %v2008_v14 = vmul.f32 1.442695, %v1910_v9 }
 0x33f   : > { %5699 = vst [vmem:[#allocation23_spill] sm:$0xff] %v4289_v0  ;;  %v4293_v27 = vpop.f32.mrb[23].mxu0  ;;  %v1713_v7 = vsel %vm1619_vm2, %v4289_v0, -inf  ;;  %v4308_v0 = vpop.xlane.xlu1 %1678 }
 0x340   : > { %5700 = vst [vmem:[#allocation24_spill] sm:$0xff] %v4293_v27  ;;  %1714 = vmax.xlane.f32.xlu1 %v1713_v7  ;;  %v1707_v34 = vsel %vm1619_vm2, %v4293_v27, -inf  ;;  %3467 = vpow2.f32 %v2008_v14 }
 0x341   : > { %v4321_v9 = vpop.xlane.xlu0 %1669  ;;  %3469 = vpow2.f32 %v2010_v53 }
 0x342   : > { %1705 = vmax.xlane.f32.xlu0 %v1704_v39  ;;  %3471 = vpow2.f32 %v2004_v19  ;;  %v1914_v19 = vsub.f32 %v4019_v60, %v4269_v59  ;;  %v1912_v60 = vsub.f32 %v4023_v63, %v4283_v26 }
 0x343   : > { %v4325_v55 = vpop.xlane.xlu1 %1672 }
 0x344   : > { %1708 = vmax.xlane.f32.xlu1 %v1707_v34  ;;  %v4306_v12 = vpop.f32.mrb[24].mxu0 }
 0x345   : > { %5701 = vst [vmem:[#allocation25_spill] sm:$0xff] %v4306_v12  ;;  %v4310_v49 = vpop.f32.mrb[25].mxu0  ;;  %v1746_v47 = vsel %vm1619_vm2, %v4306_v12, -inf  ;;  %v2006_v12 = vmul.f32 1.442695, %v1909_v4  ;;  %v4337_v4 = vpop.xlane.xlu0 %1687 }
 0x346   : > { %5702 = vst [vmem:[#allocation26_spill] sm:$0xff] %v4310_v49  ;;  %1747 = vmax.xlane.f32.xlu0 %v1746_v47  ;;  %v4315_v39 = vpop.f32.mrb[26].mxu0  ;;  %v1740_v34 = vsel %vm1619_vm2, %v4310_v49, -inf }
 0x347   : > { %5703 = vst [vmem:[#allocation27_spill] sm:$0xff] %v4315_v39  ;;  %v4317_v7 = vpop.f32.mrb[27].mxu0  ;;  %v1749_v50 = vsel %vm1619_vm2, %v4315_v39, -inf  ;;  %3473 = vpow2.f32 %v2006_v12 }
 0x348   : > { %5704 = vst [vmem:[#allocation28_spill] sm:$0xff] %v4317_v7  ;;  %1750 = vmax.xlane.f32.xlu1 %v1749_v50  ;;  %v1743_v31 = vsel %vm1619_vm2, %v4317_v7, -inf }
 0x34a   : > { %1741 = vmax.xlane.f32.xlu0 %v1740_v34  ;;  %v4345_v34 = vpop.xlane.xlu1 %1690  ;;  %v4349_v12 = vpop.eup %3467 }
 0x34b   : > { %5709 = vst [vmem:[#allocation33_spill] sm:$0xff] %v4349_v12  ;;  %v4355_v7 = vpop.eup %3469 }
 0x34c   : > { %1744 = vmax.xlane.f32.xlu1 %v1743_v31  ;;  %v4329_v62 = vpop.f32.mrb[28].mxu0  ;;  %5710 = vst [vmem:[#allocation34_spill] sm:$0xff] %v4355_v7  ;;  %v2205_v26 = vsel %vm1619_vm2, %v4355_v7, 0.0 }
 0x34d   : > { %5705 = vst [vmem:[#allocation29_spill] sm:$0xff] %v4329_v62  ;;  %v4331_v14 = vpop.f32.mrb[29].mxu0  ;;  %v1758_v22 = vsel %vm1619_vm2, %v4329_v62, -inf }
 0x34e   : > { %5706 = vst [vmem:[#allocation30_spill] sm:$0xff] %v4331_v14  ;;  %1759 = vmax.xlane.f32.xlu0 %v1758_v22  ;;  %v4335_v47 = vpop.f32.mrb[30].mxu0  ;;  %v1752_v31 = vsel %vm1619_vm2, %v4331_v14, -inf  ;;  %v1915_v22 = vsub.f32 %v4025_v1, %v4275_v44  ;;  %v2202_v14 = vsel %vm1619_vm2, %v4349_v12, 0.0  ;;  %v4367_v1 = vpop.eup %3471  ;;  %v2012_v12 = vmul.f32 1.442695, %v1912_v60 }
 0x34f   : > { %5707 = vst [vmem:[#allocation31_spill] sm:$0xff] %v4335_v47  ;;  %v4339_v53 = vpop.f32.mrb[31].mxu0  ;;  %v1761_v50 = vsel %vm1619_vm2, %v4335_v47, -inf  ;;  %v2016_v47 = vmul.f32 1.442695, %v1914_v19  ;;  %5713 = vst [vmem:[#allocation37_spill] sm:$0xff] %v4367_v1  ;;  %v4373_v63 = vpop.xlane.xlu1 %1684 }
 0x350   : > { %5708 = vst [vmem:[#allocation32_spill] sm:$0xff] %v4339_v53  ;;  %1762 = vmax.xlane.f32.xlu1 %v1761_v50  ;;  %v1755_v62 = vsel %vm1619_vm2, %v4339_v53, -inf  ;;  %v4361_v50 = vpop.xlane.xlu0 %1681  ;;  %v2018_v44 = vmul.f32 1.442695, %v1915_v22 }
 0x351   : > { %v4379_v53 = vpop.eup %3473  ;;  %3475 = vpow2.f32 %v2016_v47 }
 0x352   : > { %1753 = vmax.xlane.f32.xlu0 %v1752_v31  ;;  %v1913_v31 = vsub.f32 %v4034_v6, %v4291_v35  ;;  %5716 = vst [vmem:[#allocation40_spill] sm:$0xff] %v4379_v53  ;;  %v2196_v6 = vsel %vm1619_vm2, %v4367_v1, 0.0  ;;  %3477 = vpow2.f32 %v2018_v44  ;;  %v2199_v22 = vsel %vm1619_vm2, %v4379_v53, 0.0 }
 0x353   : > { %3479 = vpow2.f32 %v2012_v12 }
 0x354   : > { %1756 = vmax.xlane.f32.xlu1 %v1755_v62  ;;  %v4359_v59 = vpop.f32.mrb[32].mxu0  ;;  %v4381_v39 = vpop.xlane.xlu0 %1723  ;;  %v2014_v35 = vmul.f32 1.442695, %v1913_v31 }
 0x355   : > { %5711 = vst [vmem:[#allocation35_spill] sm:$0xff] %v4359_v59  ;;  %v4365_v49 = vpop.f32.mrb[33].mxu0  ;;  %v1794_v7 = vsel %vm1619_vm2, %v4359_v59, -inf  ;;  %v1926_v59 = vsub.f32 %v4041_v11, %v4301_v56  ;;  %v1924_v11 = vsub.f32 %v4045_v13, %v4321_v9 }
 0x356   : > { %5712 = vst [vmem:[#allocation36_spill] sm:$0xff] %v4365_v49  ;;  %2203 = vadd.xlane.f32.xlu0 %v2202_v14  ;;  %v4371_v19 = vpop.f32.mrb[34].mxu0  ;;  %v4385_v14 = vpop.xlane.xlu1 %1726  ;;  %3481 = vpow2.f32 %v2014_v35 }
 0x357   : > { %5714 = vst [vmem:[#allocation38_spill] sm:$0xff] %v4371_v19  ;;  %v4377_v62 = vpop.f32.mrb[35].mxu0  ;;  %v1797_v31 = vsel %vm1619_vm2, %v4371_v19, -inf  ;;  %v2040_v1 = vmul.f32 1.442695, %v1926_v59 }
 0x358   : > { %5715 = vst [vmem:[#allocation39_spill] sm:$0xff] %v4377_v62  ;;  %2206 = vadd.xlane.f32.xlu1 %v2205_v26  ;;  %v4397_v44 = vpop.xlane.xlu0 %1717  ;;  %v1791_v19 = vsel %vm1619_vm2, %v4377_v62, -inf }
 0x359   : > { %3483 = vpow2.f32 %v2040_v1 }
 0x35a   : > { %2197 = vadd.xlane.f32.xlu0 %v2196_v6  ;;  %v4405_v12 = vpop.xlane.xlu1 %1720 }
 0x35b   : > { %v4409_v35 = vpop.eup %3475 }
 0x35c   : > { %2200 = vadd.xlane.f32.xlu1 %v2199_v22  ;;  %v4391_v47 = vpop.f32.mrb[36].mxu0  ;;  %v1788_v22 = vsel %vm1619_vm2, %v4365_v49, -inf  ;;  %5721 = vst [vmem:[#allocation45_spill] sm:$0xff] %v4409_v35  ;;  %v4415_v53 = vpop.eup %3477  ;;  %v2214_v49 = vsel %vm1619_vm2, %v4409_v35, 0.0  ;;  %v2036_v35 = vmul.f32 1.442695, %v1924_v11 }
 0x35d   : > { %5717 = vst [vmem:[#allocation41_spill] sm:$0xff] %v4391_v47  ;;  %v4393_v60 = vpop.f32.mrb[37].mxu0  ;;  %5722 = vst [vmem:[#allocation46_spill] sm:$0xff] %v4415_v53  ;;  %v2217_v9 = vsel %vm1619_vm2, %v4415_v53, 0.0  ;;  %v1806_v53 = vsel %vm1619_vm2, %v4391_v47, -inf }
 0x35e   : > { %5718 = vst [vmem:[#allocation42_spill] sm:$0xff] %v4393_v60  ;;  %1795 = vmax.xlane.f32.xlu0 %v1794_v7  ;;  %v4395_v26 = vpop.f32.mrb[38].mxu0  ;;  %v1927_v7 = vsub.f32 %v4047_v15, %v4308_v0  ;;  %v4427_v15 = vpop.eup %3479  ;;  %v1800_v47 = vsel %vm1619_vm2, %v4393_v60, -inf }
 0x35f   : > { %5719 = vst [vmem:[#allocation43_spill] sm:$0xff] %v4395_v26  ;;  %v4401_v6 = vpop.f32.mrb[39].mxu0  ;;  %5725 = vst [vmem:[#allocation49_spill] sm:$0xff] %v4427_v15  ;;  %v4433_v13 = vpop.xlane.xlu1 %1738 }
 0x360   : > { %5720 = vst [vmem:[#allocation44_spill] sm:$0xff] %v4401_v6  ;;  %1798 = vmax.xlane.f32.xlu1 %v1797_v31  ;;  %v4421_v31 = vpop.xlane.xlu0 %1735  ;;  %v2042_v0 = vmul.f32 1.442695, %v1927_v7  ;;  %v4439_v62 = vpop.eup %3481  ;;  %v2208_v7 = vsel %vm1619_vm2, %v4427_v15, 0.0 }
 0x361   : > { %5728 = vst [vmem:[#allocation52_spill] sm:$0xff] %v4439_v62 }
 0x362   : > { %1789 = vmax.xlane.f32.xlu0 %v1788_v22  ;;  %v1925_v22 = vsub.f32 %v4054_v18, %v4325_v55  ;;  %3485 = vpow2.f32 %v2042_v0  ;;  %v2211_v55 = vsel %vm1619_vm2, %v4439_v62, 0.0 }
 0x363   : > { %3487 = vpow2.f32 %v2036_v35  ;;  %v4451_v1 = vpop.xlane.xlu1 %1732  ;;  %v1930_v35 = vsub.f32 %v4059_v21, %v4337_v4  ;;  %v1928_v21 = vsub.f32 %v4063_v23, %v4361_v50 }
 0x364   : > { %1792 = vmax.xlane.f32.xlu1 %v1791_v19  ;;  %v4419_v56 = vpop.f32.mrb[40].mxu0  ;;  %v2038_v18 = vmul.f32 1.442695, %v1925_v22 }
 0x365   : > { %5723 = vst [vmem:[#allocation47_spill] sm:$0xff] %v4419_v56  ;;  %v4425_v27 = vpop.f32.mrb[41].mxu0  ;;  %v2048_v15 = vmul.f32 1.442695, %v1930_v35 }
 0x366   : > { %5724 = vst [vmem:[#allocation48_spill] sm:$0xff] %v4425_v27  ;;  %2215 = vadd.xlane.f32.xlu0 %v2214_v49  ;;  %v4431_v59 = vpop.f32.mrb[42].mxu0  ;;  %v4443_v49 = vpop.xlane.xlu0 %1729  ;;  %3489 = vpow2.f32 %v2038_v18 }
 0x367   : > { %5726 = vst [vmem:[#allocation50_spill] sm:$0xff] %v4431_v59  ;;  %v4437_v19 = vpop.f32.mrb[43].mxu0  ;;  %v4469_v18 = vpop.eup %3483  ;;  %3491 = vpow2.f32 %v2048_v15 }
 0x368   : > { %5727 = vst [vmem:[#allocation51_spill] sm:$0xff] %v4437_v19  ;;  %2218 = vadd.xlane.f32.xlu1 %v2217_v9  ;;  %v1809_v9 = vsel %vm1619_vm2, %v4395_v26, -inf  ;;  %5729 = vst [vmem:[#allocation53_spill] sm:$0xff] %v4469_v18  ;;  %v1803_v26 = vsel %vm1619_vm2, %v4401_v6, -inf  ;;  %v2250_v60 = vsel %vm1619_vm2, %v4469_v18, 0.0 }
 0x369   : > { %v2044_v18 = vmul.f32 1.442695, %v1928_v21 }
 0x36a   : > { %2209 = vadd.xlane.f32.xlu0 %v2208_v7  ;;  %v4457_v22 = vpop.xlane.xlu0 %1771 }
 0x36c   : > { %2212 = vadd.xlane.f32.xlu1 %v2211_v55  ;;  %v4449_v46 = vpop.f32.mrb[44].mxu0  ;;  %v4465_v55 = vpop.xlane.xlu1 %1774 }
 0x36d   : > { %v4453_v11 = vpop.f32.mrb[45].mxu0  ;;  %v4475_v62 = vpop.eup %3485 }
 0x36e   : > { %1807 = vmax.xlane.f32.xlu0 %v1806_v53  ;;  %v4455_v0 = vpop.f32.mrb[46].mxu0  ;;  %v1931_v53 = vsub.f32 %v4065_v24, %v4345_v34  ;;  %5730 = vst [vmem:[#allocation54_spill] sm:$0xff] %v4475_v62  ;;  %v4487_v24 = vpop.eup %3487  ;;  %v2253_v50 = vsel %vm1619_vm2, %v4475_v62, 0.0  ;;  %v1842_v62 = vsel %vm1619_vm2, %v4419_v56, -inf }
 0x36f   : > { %v4461_v7 = vpop.f32.mrb[47].mxu0  ;;  %5731 = vst [vmem:[#allocation55_spill] sm:$0xff] %v4487_v24 }
 0x370   : > { %1810 = vmax.xlane.f32.xlu1 %v1809_v9  ;;  %v4481_v9 = vpop.xlane.xlu0 %1765  ;;  %v2050_v34 = vmul.f32 1.442695, %v1931_v53  ;;  %v4493_v23 = vpop.xlane.xlu1 %1768  ;;  %v2244_v53 = vsel %vm1619_vm2, %v4487_v24, 0.0 }
 0x371   : > { %v4499_v6 = vpop.eup %3489 }
 0x372   : > { %1801 = vmax.xlane.f32.xlu0 %v1800_v47  ;;  %v1929_v47 = vsub.f32 %v4074_v29, %v4373_v63  ;;  %5732 = vst [vmem:[#allocation56_spill] sm:$0xff] %v4499_v6  ;;  %3493 = vpow2.f32 %v2050_v34  ;;  %v4527_v24 = vpop.eup %3491 }
 0x373   : > { %3495 = vpow2.f32 %v2044_v18  ;;  %5733 = vst [vmem:[#allocation57_spill] sm:$0xff] %v4527_v24 }
 0x374   : > { %1804 = vmax.xlane.f32.xlu1 %v1803_v26  ;;  %v4479_v4 = vpop.f32.mrb[48].mxu0  ;;  %v2046_v29 = vmul.f32 1.442695, %v1929_v47  ;;  %v4503_v63 = vpop.xlane.xlu0 %1783  ;;  %v1845_v47 = vsel %vm1619_vm2, %v4431_v59, -inf }
 0x375   : > { %v4485_v5 = vpop.f32.mrb[49].mxu0  ;;  %v4511_v15 = vpop.xlane.xlu1 %1786 }
 0x376   : > { %2251 = vadd.xlane.f32.xlu0 %v2250_v60  ;;  %v4491_v35 = vpop.f32.mrb[50].mxu0  ;;  %v2247_v60 = vsel %vm1619_vm2, %v4499_v6, 0.0  ;;  %3497 = vpow2.f32 %v2046_v29  ;;  %v1839_v6 = vsel %vm1619_vm2, %v4437_v19, -inf }
 0x377   : > { %v4497_v26 = vpop.f32.mrb[51].mxu0 }
 0x378   : > { %2254 = vadd.xlane.f32.xlu1 %v2253_v50  ;;  %v4523_v18 = vpop.xlane.xlu0 %1777 }
 0x379   : > { %v4531_v29 = vpop.xlane.xlu1 %1780 }
 0x37a   : > { %2245 = vadd.xlane.f32.xlu0 %v2244_v53  ;;  %v1942_v53 = vsub.f32 %v4091_v37, %v4381_v39  ;;  %v1940_v39 = vsub.f32 %v4093_v38, %v4397_v44 }
 0x37c   : > { %2248 = vadd.xlane.f32.xlu1 %v2247_v60  ;;  %v4509_v58 = vpop.f32.mrb[52].mxu0  ;;  %v1836_v60 = vsel %vm1619_vm2, %v4425_v27, -inf  ;;  %v4535_v59 = vpop.eup %3493  ;;  %v2072_v37 = vmul.f32 1.442695, %v1942_v53  ;;  %v2262_v27 = vsel %vm1619_vm2, %v4527_v24, 0.0 }
 0x37d   : > { %v4513_v21 = vpop.f32.mrb[53].mxu0  ;;  %5734 = vst [vmem:[#allocation58_spill] sm:$0xff] %v4535_v59  ;;  %v4543_v56 = vpop.eup %3495  ;;  %v2265_v53 = vsel %vm1619_vm2, %v4535_v59, 0.0  ;;  %v2068_v38 = vmul.f32 1.442695, %v1940_v39  ;;  %v1946_v39 = vsub.f32 %v4111_v48, %v4421_v31  ;;  %v1944_v31 = vsub.f32 %v4113_v51, %v4443_v49 }
 0x37e   : > { %1843 = vmax.xlane.f32.xlu0 %v1842_v62  ;;  %v4515_v34 = vpop.f32.mrb[54].mxu0  ;;  %v1943_v62 = vsub.f32 %v4097_v40, %v4385_v14  ;;  %5735 = vst [vmem:[#allocation59_spill] sm:$0xff] %v4543_v56  ;;  %v1941_v14 = vsub.f32 %v4101_v42, %v4405_v12  ;;  %3499 = vpow2.f32 %v2072_v37  ;;  %v2256_v44 = vsel %vm1619_vm2, %v4543_v56, 0.0 }
 0x37f   : > { %v4519_v50 = vpop.f32.mrb[55].mxu0  ;;  %v1857_v37 = vsel %vm1619_vm2, %v4455_v0, -inf  ;;  %v2080_v48 = vmul.f32 1.442695, %v1946_v39  ;;  %v2076_v51 = vmul.f32 1.442695, %v1944_v31 }
 0x380   : > { %1846 = vmax.xlane.f32.xlu1 %v1845_v47  ;;  %v4539_v47 = vpop.xlane.xlu0 %1819  ;;  %v2074_v40 = vmul.f32 1.442695, %v1943_v62  ;;  %v4551_v19 = vpop.eup %3497  ;;  %v1893_v31 = vsel %vm1619_vm2, %v4491_v35, -inf }
 0x381   : > { %5736 = vst [vmem:[#allocation60_spill] sm:$0xff] %v4551_v19  ;;  %v2259_v42 = vsel %vm1619_vm2, %v4551_v19, 0.0 }
 0x382   : > { %1837 = vmax.xlane.f32.xlu0 %v1836_v60  ;;  %v4547_v60 = vpop.xlane.xlu1 %1822  ;;  %3501 = vpow2.f32 %v2074_v40 }
 0x383   : > { %3503 = vpow2.f32 %v2068_v38  ;;  %v1947_v38 = vsub.f32 %v4117_v54, %v4433_v13  ;;  %v1945_v54 = vsub.f32 %v4121_v57, %v4451_v1  ;;  %v1890_v1 = vsel %vm1619_vm2, %v4479_v4, -inf }
 0x384   : > { %1840 = vmax.xlane.f32.xlu1 %v1839_v6  ;;  %v2070_v6 = vmul.f32 1.442695, %v1941_v14  ;;  %v4555_v62 = vpop.xlane.xlu0 %1813  ;;  %v1848_v14 = vsel %vm1619_vm2, %v4453_v11, -inf }
 0x385   : > { %v2082_v24 = vmul.f32 1.442695, %v1947_v38  ;;  %v2078_v38 = vmul.f32 1.442695, %v1945_v54  ;;  %v1884_v54 = vsel %vm1619_vm2, %v4485_v5, -inf }
 0x386   : > { %2263 = vadd.xlane.f32.xlu0 %v2262_v27  ;;  %v1854_v27 = vsel %vm1619_vm2, %v4449_v46, -inf  ;;  %v4561_v12 = vpop.xlane.xlu1 %1816  ;;  %3505 = vpow2.f32 %v2070_v6  ;;  %v1851_v6 = vsel %vm1619_vm2, %v4461_v7, -inf }
 0x387   : > { %3507 = vpow2.f32 %v2080_v48 }
 0x388   : > { %2266 = vadd.xlane.f32.xlu1 %v2265_v53  ;;  %v4567_v40 = vpop.xlane.xlu0 %1831  ;;  %v4571_v53 = vpop.eup %3499  ;;  %3509 = vpow2.f32 %v2082_v24  ;;  %v1958_v24 = vsub.f32 %v4133_v2, %v4457_v22  ;;  %v1956_v2 = vsub.f32 %v4135_v3, %v4481_v9  ;;  %v1962_v9 = vsub.f32 %v4149_v16, %v4503_v63 }
 0x389   : > { %5737 = vst [vmem:[#allocation61_spill] sm:$0xff] %v4571_v53  ;;  %3511 = vpow2.f32 %v2076_v51  ;;  %v1959_v51 = vsub.f32 %v4139_v8, %v4465_v55  ;;  %v1957_v55 = vsub.f32 %v4143_v10, %v4493_v23  ;;  %v1963_v10 = vsub.f32 %v4155_v20, %v4511_v15 }
 0x38a   : > { %2257 = vadd.xlane.f32.xlu0 %v2256_v44  ;;  %v4575_v44 = vpop.xlane.xlu1 %1834  ;;  %3513 = vpow2.f32 %v2078_v38  ;;  %v1887_v38 = vsel %vm1619_vm2, %v4497_v26, -inf  ;;  %v2100_v3 = vmul.f32 1.442695, %v1956_v2  ;;  %v1902_v16 = vsel %vm1619_vm2, %v4509_v58, -inf }
 0x38b   : > { %v2106_v8 = vmul.f32 1.442695, %v1959_v51  ;;  %v2102_v56 = vmul.f32 1.442695, %v1957_v55  ;;  %v2112_v63 = vmul.f32 1.442695, %v1962_v9  ;;  %v1960_v2 = vsub.f32 %v4151_v17, %v4523_v18 }
 0x38c   : > { %2260 = vadd.xlane.f32.xlu1 %v2259_v42  ;;  %v4579_v42 = vpop.eup %3501  ;;  %v4589_v13 = vpop.xlane.xlu0 %1825  ;;  %v1961_v20 = vsub.f32 %v4159_v25, %v4531_v29  ;;  %v1896_v17 = vsel %vm1619_vm2, %v4513_v21, -inf  ;;  %v1975_v18 = vsub.f32 %v4171_v33, %v4547_v60  ;;  %v1899_v9 = vsel %vm1619_vm2, %v4519_v50, -inf }
 0x38d   : > { %5738 = vst [vmem:[#allocation62_spill] sm:$0xff] %v4579_v42  ;;  %v2108_v55 = vmul.f32 1.442695, %v1960_v2 }
 0x38e   : > { %1855 = vmax.xlane.f32.xlu0 %v1854_v27  ;;  %v2298_v27 = vsel %vm1619_vm2, %v4571_v53, 0.0  ;;  %v4595_v49 = vpop.xlane.xlu1 %1828  ;;  %v2110_v25 = vmul.f32 1.442695, %v1961_v20  ;;  %v2138_v60 = vmul.f32 1.442695, %v1975_v18 }
 0x390   : > { %1858 = vmax.xlane.f32.xlu1 %v1857_v37  ;;  %v4585_v37 = vpop.eup %3503 }
 0x391   : > { %v4593_v39 = vpop.eup %3505 }
 0x392   : > { %1849 = vmax.xlane.f32.xlu0 %v1848_v14  ;;  %v2301_v14 = vsel %vm1619_vm2, %v4579_v42, 0.0  ;;  %v2295_v57 = vsel %vm1619_vm2, %v4593_v39, 0.0  ;;  %v4605_v48 = vpop.xlane.xlu1 %1870 }
 0x394   : > { %1852 = vmax.xlane.f32.xlu1 %v1851_v6  ;;  %v2292_v6 = vsel %vm1619_vm2, %v4585_v37, 0.0 }
 0x396   : > { %2299 = vadd.xlane.f32.xlu0 %v2298_v27  ;;  %v4603_v27 = vpop.xlane.xlu0 %1867  ;;  %v4625_v22 = vpop.xlane.xlu1 %1864 }
 0x398   : > { %2302 = vadd.xlane.f32.xlu1 %v2301_v14  ;;  %v4613_v14 = vpop.eup %3507 }
 0x399   : > { %5739 = vst [vmem:[#allocation63_spill] sm:$0xff] %v4613_v14 }
 0x39a   : > { %2293 = vadd.xlane.f32.xlu0 %v2292_v6  ;;  %v4617_v6 = vpop.xlane.xlu0 %1861  ;;  %v4645_v23 = vpop.xlane.xlu1 %1882 }
 0x39c   : > { %2296 = vadd.xlane.f32.xlu1 %v2295_v57  ;;  %v4621_v57 = vpop.eup %3509 }
 0x39d   : > { %5740 = vst [vmem:[#allocation64_spill] sm:$0xff] %v4621_v57  ;;  %v4629_v59 = vpop.eup %3511 }
 0x39e   : > { %1891 = vmax.xlane.f32.xlu0 %v1890_v1  ;;  %v2104_v1 = vmul.f32 1.442695, %v1958_v24  ;;  %5741 = vst [vmem:[#allocation65_spill] sm:$0xff] %v4629_v59  ;;  %v4635_v24 = vpop.eup %3513  ;;  %v2304_v51 = vsel %vm1619_vm2, %v4629_v59, 0.0 }
 0x39f   : > { %5742 = vst [vmem:[#allocation66_spill] sm:$0xff] %v4635_v24 }
 0x3a0   : > { %1894 = vmax.xlane.f32.xlu1 %v1893_v31  ;;  %v2310_v31 = vsel %vm1619_vm2, %v4613_v14, 0.0  ;;  %3515 = vpow2.f32 %v2104_v1  ;;  %v2307_v1 = vsel %vm1619_vm2, %v4635_v24, 0.0 }
 0x3a1   : > { %3517 = vpow2.f32 %v2106_v8  ;;  %v1905_v8 = vsel %vm1619_vm2, %v4515_v34, -inf }
 0x3a2   : > { %1885 = vmax.xlane.f32.xlu0 %v1884_v54  ;;  %v2313_v54 = vsel %vm1619_vm2, %v4621_v57, 0.0  ;;  %3519 = vpow2.f32 %v2100_v3  ;;  %v4661_v3 = vpop.xlane.xlu1 %1876 }
 0x3a3   : > { %3521 = vpow2.f32 %v2102_v56 }
 0x3a4   : > { %1888 = vmax.xlane.f32.xlu1 %v1887_v38  ;;  %v4639_v38 = vpop.xlane.xlu0 %1879  ;;  %3523 = vpow2.f32 %v2112_v63 }
 0x3a6   : > { %2311 = vadd.xlane.f32.xlu0 %v2310_v31  ;;  %v2114_v31 = vmul.f32 1.442695, %v1963_v10 }
 0x3a8   : > { %2314 = vadd.xlane.f32.xlu1 %v2313_v54  ;;  %v4655_v15 = vpop.xlane.xlu0 %1873  ;;  %v1974_v54 = vsub.f32 %v4165_v28, %v4539_v47  ;;  %3525 = vpow2.f32 %v2114_v31  ;;  %v1978_v31 = vsub.f32 %v4181_v32, %v4567_v40 }
 0x3a9   : > { %3527 = vpow2.f32 %v2108_v55  ;;  %v1979_v55 = vsub.f32 %v4187_v45, %v4575_v44 }
 0x3aa   : > { %2305 = vadd.xlane.f32.xlu0 %v2304_v51  ;;  %v4665_v56 = vpop.eup %3515  ;;  %v2136_v47 = vmul.f32 1.442695, %v1974_v54  ;;  %v1972_v51 = vsub.f32 %v4167_v30, %v4555_v62  ;;  %3529 = vpow2.f32 %v2110_v25  ;;  %v2144_v40 = vmul.f32 1.442695, %v1978_v31 }
 0x3ab   : > { %v4673_v28 = vpop.eup %3517  ;;  %v1976_v25 = vsub.f32 %v4183_v41, %v4589_v13  ;;  %v2146_v44 = vmul.f32 1.442695, %v1979_v55 }
 0x3ac   : > { %2308 = vadd.xlane.f32.xlu1 %v2307_v1  ;;  %v2346_v1 = vsel %vm1619_vm2, %v4665_v56, 0.0  ;;  %v4681_v33 = vpop.eup %3519  ;;  %v2349_v2 = vsel %vm1619_vm2, %v4673_v28, 0.0  ;;  %3531 = vpow2.f32 %v2136_v47  ;;  %v2132_v62 = vmul.f32 1.442695, %v1972_v51 }
 0x3ad   : > { %v4689_v30 = vpop.eup %3521  ;;  %3533 = vpow2.f32 %v2138_v60  ;;  %v1977_v47 = vsub.f32 %v4193_v52, %v4595_v49  ;;  %v2140_v13 = vmul.f32 1.442695, %v1976_v25  ;;  %v1990_v60 = vsub.f32 %v4197_v43, %v4603_v27  ;;  %v5744_v25 = vld [vmem:[#allocation4_spill] sm:$0xff] }
 0x3ae   : > { %1903 = vmax.xlane.f32.xlu0 %v1902_v16  ;;  %v1973_v16 = vsub.f32 %v4177_v36, %v4561_v12  ;;  %v4697_v36 = vpop.eup %3523  ;;  %3535 = vpow2.f32 %v2132_v62  ;;  %v1991_v62 = vsub.f32 %v4203_v61, %v4605_v48 }
 0x3af   : > { %v2142_v49 = vmul.f32 1.442695, %v1977_v47  ;;  %v2168_v27 = vmul.f32 1.442695, %v1990_v60 }
 0x3b0   : > { %1906 = vmax.xlane.f32.xlu1 %v1905_v8  ;;  %v2340_v8 = vsel %vm1619_vm2, %v4681_v33, 0.0  ;;  %v2134_v12 = vmul.f32 1.442695, %v1973_v16  ;;  %v2170_v48 = vmul.f32 1.442695, %v1991_v62 }
 0x3b2   : > { %1897 = vmax.xlane.f32.xlu0 %v1896_v17  ;;  %v2343_v17 = vsel %vm1619_vm2, %v4689_v30, 0.0  ;;  %v4705_v32 = vpop.eup %3525  ;;  %3537 = vpow2.f32 %v2134_v12  ;;  %v5743_v12 = vld [vmem:[#allocation3_spill] sm:$0xff] }
 0x3b3   : > { %v4669_v29 = vpop.xlane.xlu0 %1651  ;;  %v4713_v45 = vpop.eup %3527  ;;  %3539 = vpow2.f32 %v2144_v40  ;;  %v1988_v55 = vsub.f32 %v5743_v12, %v4617_v6 }
 0x3b4   : > { %1900 = vmax.xlane.f32.xlu1 %v1899_v9  ;;  %v2358_v9 = vsel %vm1619_vm2, %v4697_v36, 0.0  ;;  %v4721_v41 = vpop.eup %3529  ;;  %3541 = vpow2.f32 %v2146_v44 }
 0x3b5   : > { %v4677_v10 = vpop.xlane.xlu1 %1654  ;;  %3543 = vpow2.f32 %v2140_v13  ;;  %v5745_v13 = vld [vmem:[#allocation5_spill] sm:$0xff] }
 0x3b6   : > { %2347 = vadd.xlane.f32.xlu0 %v2346_v1  ;;  %v2361_v1 = vsel %vm1619_vm2, %v4705_v32, 0.0  ;;  %v4729_v52 = vpop.eup %3531  ;;  %3545 = vpow2.f32 %v2142_v49  ;;  %v1994_v60 = vsub.f32 %v5745_v13, %v4639_v38 }
 0x3b7   : > { %v4685_v63 = vpop.xlane.xlu0 %1645  ;;  %v4737_v43 = vpop.eup %3533  ;;  %v2394_v40 = vsel %vm1619_vm2, %v4729_v52, 0.0  ;;  %3547 = vpow2.f32 %v2168_v27 }
 0x3b8   : > { %2350 = vadd.xlane.f32.xlu1 %v2349_v2  ;;  %v2352_v2 = vsel %vm1619_vm2, %v4713_v45, 0.0  ;;  %v4745_v61 = vpop.eup %3535  ;;  %v2397_v47 = vsel %vm1619_vm2, %v4737_v43, 0.0  ;;  %3549 = vpow2.f32 %v2170_v48 }
 0x3b9   : > { %v4693_v20 = vpop.xlane.xlu1 %1648  ;;  %v2388_v49 = vsel %vm1619_vm2, %v4745_v61, 0.0 }
 0x3ba   : > { %2341 = vadd.xlane.f32.xlu0 %v2340_v8  ;;  %v2355_v8 = vsel %vm1619_vm2, %v4721_v41, 0.0 }
 0x3bb   : > { %v4701_v54 = vpop.xlane.xlu0 %1663 }
 0x3bc   : > { %2344 = vadd.xlane.f32.xlu1 %v2343_v17  ;;  %v4753_v6 = vpop.eup %3537 }
 0x3bd   : > { %v4709_v18 = vpop.xlane.xlu1 %1666  ;;  %v2391_v27 = vsel %vm1619_vm2, %v4753_v6, 0.0 }
 0x3be   : > { %2359 = vadd.xlane.f32.xlu0 %v2358_v9  ;;  %v1989_v9 = vsub.f32 %v5744_v25, %v4625_v22  ;;  %v4761_v22 = vpop.eup %3539  ;;  %v5747_v25 = vld [vmem:[#allocation6_spill] sm:$0xff] }
 0x3bf   : > { %v4717_v51 = vpop.xlane.xlu0 %1657  ;;  %v4769_v38 = vpop.eup %3541  ;;  %v2406_v48 = vsel %vm1619_vm2, %v4761_v22, 0.0 }
 0x3c0   : > { %2362 = vadd.xlane.f32.xlu1 %v2361_v1  ;;  %v2164_v1 = vmul.f32 1.442695, %v1988_v55  ;;  %v2166_v62 = vmul.f32 1.442695, %v1989_v9  ;;  %v2176_v55 = vmul.f32 1.442695, %v1994_v60 }
 0x3c1   : > { %v4725_v16 = vpop.xlane.xlu1 %1660 }
 0x3c2   : > { %2353 = vadd.xlane.f32.xlu0 %v2352_v2  ;;  %3551 = vpow2.f32 %v2164_v1  ;;  %v2409_v1 = vsel %vm1619_vm2, %v4769_v38, 0.0 }
 0x3c3   : > { %v4733_v31 = vpop.xlane.xlu0 %1699  ;;  %3553 = vpow2.f32 %v2166_v62 }
 0x3c4   : > { %2356 = vadd.xlane.f32.xlu1 %v2355_v8  ;;  %v5746_v8 = vld [vmem:[#allocation7_spill] sm:$0xff]  ;;  %3555 = vpow2.f32 %v2176_v55 }
 0x3c5   : > { %v4741_v17 = vpop.xlane.xlu1 %1702  ;;  %v1995_v12 = vsub.f32 %v5746_v8, %v4645_v23  ;;  %v4777_v23 = vpop.eup %3543 }
 0x3c6   : > { %2395 = vadd.xlane.f32.xlu0 %v2394_v40  ;;  %v2400_v62 = vsel %vm1619_vm2, %v4777_v23, 0.0 }
 0x3c7   : > { %v4749_v44 = vpop.xlane.xlu0 %1693  ;;  %v2178_v9 = vmul.f32 1.442695, %v1995_v12 }
 0x3c8   : > { %2398 = vadd.xlane.f32.xlu1 %v2397_v47  ;;  %v1992_v47 = vsub.f32 %v5747_v25, %v4655_v15  ;;  %v4785_v15 = vpop.eup %3545 }
 0x3c9   : > { %v4757_v2 = vpop.xlane.xlu1 %1696  ;;  %3557 = vpow2.f32 %v2178_v9  ;;  %v2403_v55 = vsel %vm1619_vm2, %v4785_v15, 0.0 }
 0x3ca   : > { %2389 = vadd.xlane.f32.xlu0 %v2388_v49  ;;  %v5748_v49 = vld [vmem:[#allocation8_spill] sm:$0xff]  ;;  %v2172_v60 = vmul.f32 1.442695, %v1992_v47 }
 0x3cb   : > { %v4765_v40 = vpop.xlane.xlu0 %1711  ;;  %v1993_v8 = vsub.f32 %v5748_v49, %v4661_v3  ;;  %v4793_v3 = vpop.eup %3547 }
 0x3cc   : > { %2392 = vadd.xlane.f32.xlu1 %v2391_v27  ;;  %v5749_v27 = vld [vmem:[#allocation9_spill] sm:$0xff]  ;;  %3559 = vpow2.f32 %v2172_v60  ;;  %v2442_v9 = vsel %vm1619_vm2, %v4793_v3, 0.0 }
 0x3cd   : > { %v4773_v13 = vpop.xlane.xlu1 %1714  ;;  %v1918_v25 = vsub.f32 %v5749_v27, %v4669_v29  ;;  %v2174_v12 = vmul.f32 1.442695, %v1993_v8  ;;  %v4801_v29 = vpop.eup %3549 }
 0x3ce   : > { %2407 = vadd.xlane.f32.xlu0 %v2406_v48  ;;  %v5750_v48 = vld [vmem:[#allocation11_spill] sm:$0xff]  ;;  %v2445_v60 = vsel %vm1619_vm2, %v4801_v29, 0.0 }
 0x3cf   : > { %v4781_v19 = vpop.xlane.xlu0 %1705  ;;  %v1919_v49 = vsub.f32 %v5750_v48, %v4677_v10  ;;  %v2024_v47 = vmul.f32 1.442695, %v1918_v25  ;;  %v4809_v10 = vpop.eup %3551  ;;  %3561 = vpow2.f32 %v2174_v12 }
 0x3d0   : > { %2410 = vadd.xlane.f32.xlu1 %v2409_v1  ;;  %v5751_v1 = vld [vmem:[#allocation10_spill] sm:$0xff]  ;;  %5752 = vst [vmem:[#allocation3_spill] sm:$0xff] %v4809_v10  ;;  %v2436_v12 = vsel %vm1619_vm2, %v4809_v10, 0.0  ;;  %v5759_v10 = vld [vmem:[#allocation16_spill] sm:$0xff] }
 0x3d1   : > { %v4789_v14 = vpop.xlane.xlu1 %1708  ;;  %v1916_v27 = vsub.f32 %v5751_v1, %v4685_v63  ;;  %v2026_v8 = vmul.f32 1.442695, %v1919_v49  ;;  %v4817_v63 = vpop.eup %3553  ;;  %3563 = vpow2.f32 %v2024_v47  ;;  %v5758_v47 = vld [vmem:[#allocation14_spill] sm:$0xff] }
 0x3d2   : > { %2401 = vadd.xlane.f32.xlu0 %v2400_v62  ;;  %v5753_v62 = vld [vmem:[#allocation12_spill] sm:$0xff]  ;;  %5754 = vst [vmem:[#allocation4_spill] sm:$0xff] %v4817_v63 }
 0x3d3   : > { %v4797_v57 = vpop.xlane.xlu0 %1747  ;;  %v1917_v48 = vsub.f32 %v5753_v62, %v4693_v20  ;;  %v2020_v25 = vmul.f32 1.442695, %v1916_v27  ;;  %v4825_v20 = vpop.eup %3555  ;;  %3565 = vpow2.f32 %v2026_v8  ;;  %v1920_v27 = vsub.f32 %v5758_v47, %v4717_v51 }
 0x3d4   : > { %2404 = vadd.xlane.f32.xlu1 %v2403_v55  ;;  %v5755_v55 = vld [vmem:[#allocation13_spill] sm:$0xff]  ;;  %5756 = vst [vmem:[#allocation5_spill] sm:$0xff] %v4825_v20  ;;  %v1921_v8 = vsub.f32 %v5759_v10, %v4725_v16 }
 0x3d5   : > { %v4805_v59 = vpop.xlane.xlu1 %1750  ;;  %v1922_v1 = vsub.f32 %v5755_v55, %v4701_v54  ;;  %v2022_v49 = vmul.f32 1.442695, %v1917_v48  ;;  %v2439_v54 = vsel %vm1619_vm2, %v4817_v63, 0.0  ;;  %3567 = vpow2.f32 %v2020_v25 }
 0x3d6   : > { %2443 = vadd.xlane.f32.xlu0 %v2442_v9  ;;  %v5757_v9 = vld [vmem:[#allocation15_spill] sm:$0xff]  ;;  %v2028_v63 = vmul.f32 1.442695, %v1920_v27 }
 0x3d7   : > { %v4813_v24 = vpop.xlane.xlu0 %1741  ;;  %v1923_v62 = vsub.f32 %v5757_v9, %v4709_v18  ;;  %v2032_v55 = vmul.f32 1.442695, %v1922_v1  ;;  %v2454_v18 = vsel %vm1619_vm2, %v4825_v20, 0.0  ;;  %3569 = vpow2.f32 %v2022_v49  ;;  %v5761_v9 = vld [vmem:[#allocation17_spill] sm:$0xff] }
 0x3d8   : > { %2446 = vadd.xlane.f32.xlu1 %v2445_v60  ;;  %v4835_v60 = vpop.eup %3557  ;;  %v1934_v47 = vsub.f32 %v5761_v9, %v4733_v31  ;;  %v2030_v1 = vmul.f32 1.442695, %v1921_v8 }
 0x3d9   : > { %v4821_v53 = vpop.xlane.xlu1 %1744  ;;  %v2034_v51 = vmul.f32 1.442695, %v1923_v62  ;;  %v2457_v16 = vsel %vm1619_vm2, %v4835_v60, 0.0  ;;  %3571 = vpow2.f32 %v2032_v55 }
 0x3da   : > { %2437 = vadd.xlane.f32.xlu0 %v2436_v12  ;;  %v4843_v12 = vpop.eup %3559  ;;  %v2056_v27 = vmul.f32 1.442695, %v1934_v47 }
 0x3db   : > { %v4831_v42 = vpop.xlane.xlu0 %1759  ;;  %5760 = vst [vmem:[#allocation7_spill] sm:$0xff] %v4843_v12  ;;  %v4851_v10 = vpop.eup %3561  ;;  %v2448_v31 = vsel %vm1619_vm2, %v4843_v12, 0.0  ;;  %3573 = vpow2.f32 %v2034_v51  ;;  %v5782_v12 = vld [vmem:[#allocation34_spill] sm:$0xff] }
 0x3dc   : > { %2440 = vadd.xlane.f32.xlu1 %v2439_v54  ;;  %5762 = vst [vmem:[#allocation6_spill] sm:$0xff] %v4851_v10  ;;  %v5763_v54 = vld [vmem:[#allocation19_spill] sm:$0xff]  ;;  %v4859_v62 = vpop.eup %3563  ;;  %3575 = vpow2.f32 %v2028_v63  ;;  %v2451_v55 = vsel %vm1619_vm2, %v4851_v10, 0.0  ;;  %v5768_v63 = vld [vmem:[#allocation20_spill] sm:$0xff] }
 0x3dd   : > { %v4839_v48 = vpop.xlane.xlu1 %1762  ;;  %v1935_v20 = vsub.f32 %v5763_v54, %v4741_v17  ;;  %5764 = vst [vmem:[#allocation8_spill] sm:$0xff] %v4859_v62  ;;  %v4863_v8 = vpop.eup %3565  ;;  %3577 = vpow2.f32 %v2030_v1  ;;  %v5766_v17 = vld [vmem:[#allocation18_spill] sm:$0xff]  ;;  %v2226_v51 = vsel %vm1619_vm2, %v4859_v62, 0.0 }
 0x3de   : > { %2455 = vadd.xlane.f32.xlu0 %v2454_v18  ;;  %5765 = vst [vmem:[#allocation9_spill] sm:$0xff] %v4863_v8  ;;  %v1932_v9 = vsub.f32 %v5766_v17, %v4749_v44  ;;  %v2229_v1 = vsel %vm1619_vm2, %v4863_v8, 0.0 }
 0x3df   : > { %v4847_v25 = vpop.xlane.xlu0 %1753  ;;  %v4869_v47 = vpop.eup %3567 }
 0x3e0   : > { %2458 = vadd.xlane.f32.xlu1 %v2457_v16  ;;  %v2058_v16 = vmul.f32 1.442695, %v1935_v20  ;;  %5767 = vst [vmem:[#allocation11_spill] sm:$0xff] %v4869_v47  ;;  %v2052_v20 = vmul.f32 1.442695, %v1932_v9  ;;  %v5773_v9 = vld [vmem:[#allocation22_spill] sm:$0xff] }
 0x3e1   : > { %v4855_v49 = vpop.xlane.xlu1 %1756  ;;  %v4875_v44 = vpop.eup %3569  ;;  %v1936_v8 = vsub.f32 %v5773_v9, %v4781_v19 }
 0x3e2   : > { %2449 = vadd.xlane.f32.xlu0 %v2448_v31  ;;  %v1933_v31 = vsub.f32 %v5768_v63, %v4757_v2  ;;  %5769 = vst [vmem:[#allocation10_spill] sm:$0xff] %v4875_v44 }
 0x3e3   : > { %v2204_v18 = vpop.xlane.xlu0 %2203  ;;  %v4881_v2 = vpop.eup %3571 }
 0x3e4   : > { %2452 = vadd.xlane.f32.xlu1 %v2451_v55  ;;  %3579 = vrcp.f32 %v2204_v18  ;;  %v5770_v18 = vld [vmem:[#allocation21_spill] sm:$0xff]  ;;  %5771 = vst [vmem:[#allocation12_spill] sm:$0xff] %v4881_v2  ;;  %v2238_v19 = vsel %vm1619_vm2, %v4881_v2, 0.0 }
 0x3e5   : > { %v2207_v54 = vpop.xlane.xlu1 %2206  ;;  %3581 = vpow2.f32 %v2056_v27  ;;  %v1938_v55 = vsub.f32 %v5770_v18, %v4765_v40  ;;  %v2220_v27 = vsel %vm1619_vm2, %v4869_v47, 0.0  ;;  %v2223_v40 = vsel %vm1619_vm2, %v4875_v44, 0.0 }
 0x3e6   : > { %2227 = vadd.xlane.f32.xlu0 %v2226_v51  ;;  %3583 = vrcp.f32 %v2207_v54  ;;  %v2054_v54 = vmul.f32 1.442695, %v1933_v31  ;;  %v5772_v51 = vld [vmem:[#allocation23_spill] sm:$0xff] }
 0x3e7   : > { %v2198_v10 = vpop.xlane.xlu0 %2197  ;;  %v1939_v63 = vsub.f32 %v5772_v51, %v4773_v13  ;;  %v5778_v51 = vld [vmem:[#allocation25_spill] sm:$0xff] }
 0x3e8   : > { %3585 = vrcp.f32 %v2198_v10  ;;  %2230 = vadd.xlane.f32.xlu1 %v2229_v1  ;;  %v4891_v10 = vpop.eup %3573  ;;  %v5775_v1 = vld [vmem:[#allocation24_spill] sm:$0xff]  ;;  %v1950_v9 = vsub.f32 %v5778_v51, %v4797_v57  ;;  %v5780_v51 = vld [vmem:[#allocation33_spill] sm:$0xff] }
 0x3e9   : > { %3587 = vpow2.f32 %v2058_v16  ;;  %v2201_v17 = vpop.xlane.xlu1 %2200  ;;  %5774 = vst [vmem:[#allocation13_spill] sm:$0xff] %v4891_v10  ;;  %v2064_v16 = vmul.f32 1.442695, %v1938_v55  ;;  %v1937_v31 = vsub.f32 %v5775_v1, %v4789_v14  ;;  %v4895_v18 = vpop.eup %3575  ;;  %v2060_v55 = vmul.f32 1.442695, %v1936_v8 }
 0x3ea   : > { %3589 = vrcp.f32 %v2201_v17  ;;  %2221 = vadd.xlane.f32.xlu0 %v2220_v27  ;;  %5776 = vst [vmem:[#allocation15_spill] sm:$0xff] %v4895_v18  ;;  %v4901_v17 = vpop.eup %3577  ;;  %v2066_v27 = vmul.f32 1.442695, %v1939_v63  ;;  %v2241_v14 = vsel %vm1619_vm2, %v4891_v10, 0.0  ;;  %v2232_v57 = vsel %vm1619_vm2, %v4895_v18, 0.0  ;;  %v5784_v18 = vld [vmem:[#allocation26_spill] sm:$0xff] }
 0x3eb   : > { %v4887_v62 = vpop.xlane.xlu0 %1795  ;;  %3591 = vpow2.f32 %v2052_v20  ;;  %5777 = vst [vmem:[#allocation14_spill] sm:$0xff] %v4901_v17  ;;  %v2062_v1 = vmul.f32 1.442695, %v1937_v31 }
 0x3ec   : > { %2224 = vadd.xlane.f32.xlu1 %v2223_v40  ;;  %3593 = vpow2.f32 %v2054_v54  ;;  %v5779_v54 = vld [vmem:[#allocation27_spill] sm:$0xff] }
 0x3ed   : > { %v4897_v13 = vpop.xlane.xlu1 %1798  ;;  %3595 = vpow2.f32 %v2064_v16  ;;  %v1951_v63 = vsub.f32 %v5779_v54, %v4805_v59  ;;  %v2235_v59 = vsel %vm1619_vm2, %v4901_v17, 0.0 }
 0x3ee   : > { %2239 = vadd.xlane.f32.xlu0 %v2238_v19  ;;  %v3580_v20 = vpop.eup %3579  ;;  %3597 = vpow2.f32 %v2066_v27  ;;  %v2088_v19 = vmul.f32 1.442695, %v1950_v9  ;;  %v1948_v27 = vsub.f32 %v5784_v18, %v4813_v24  ;;  %v5789_v24 = vld [vmem:[#allocation28_spill] sm:$0xff] }
 0x3ef   : > { %v4905_v44 = vpop.xlane.xlu0 %1789  ;;  %v4909_v40 = vpop.eup %3581  ;;  %v4918_v10 = vmul.f32 %v3580_v20, %v5780_v51  ;;  %3599 = vpow2.f32 %v2060_v55  ;;  %v5785_v55 = vld [vmem:[#allocation37_spill] sm:$0xff]  ;;  %v5787_v51 = vld [vmem:[#allocation40_spill] sm:$0xff]  ;;  %v1949_v18 = vsub.f32 %v5789_v24, %v4821_v53  ;;  %v5792_v53 = vld [vmem:[#allocation31_spill] sm:$0xff] }
 0x3f0   : > { %2242 = vadd.xlane.f32.xlu1 %v2241_v14  ;;  %v3584_v2 = vpop.eup %3583  ;;  %3601 = vpow2.f32 %v2062_v1  ;;  %v2274_v9 = vsel %vm1619_vm2, %v4909_v40, 0.0 }
 0x3f1   : > { %v4913_v47 = vpop.xlane.xlu1 %1792  ;;  %5781 = vst [vmem:[#allocation16_spill] sm:$0xff] %v4918_v10  ;;  %v4921_v16 = vmul.f32 %v3584_v2, %v5782_v12  ;;  %v2090_v2 = vmul.f32 1.442695, %v1951_v63  ;;  %v2086_v12 = vmul.f32 1.442695, %v1949_v18 }
 0x3f2   : > { %v3586_v8 = vpop.eup %3585  ;;  %2233 = vadd.xlane.f32.xlu0 %v2232_v57 }
 0x3f3   : > { %5783 = vst [vmem:[#allocation17_spill] sm:$0xff] %v4921_v16  ;;  %v4923_v31 = vpop.eup %3587  ;;  %v2216_v14 = vpop.xlane.xlu0 %2215  ;;  %v4934_v57 = vmul.f32 %v3586_v8, %v5785_v55  ;;  %v2084_v55 = vmul.f32 1.442695, %v1948_v27 }
 0x3f4   : > { %v3590_v54 = vpop.eup %3589  ;;  %2236 = vadd.xlane.f32.xlu1 %v2235_v59  ;;  %3603 = vrcp.f32 %v2216_v14  ;;  %v2277_v63 = vsel %vm1619_vm2, %v4923_v31, 0.0 }
 0x3f5   : > { %v2219_v20 = vpop.xlane.xlu1 %2218  ;;  %5786 = vst [vmem:[#allocation19_spill] sm:$0xff] %v4934_v57  ;;  %v4937_v17 = vmul.f32 %v3590_v54, %v5787_v51  ;;  %v4939_v1 = vpop.eup %3591  ;;  %3605 = vpow2.f32 %v2088_v19  ;;  %v5791_v54 = vld [vmem:[#allocation29_spill] sm:$0xff]  ;;  %v1955_v19 = vsub.f32 %v5792_v53, %v4839_v48  ;;  %v5795_v48 = vld [vmem:[#allocation30_spill] sm:$0xff] }
 0x3f6   : > { %2275 = vadd.xlane.f32.xlu0 %v2274_v9  ;;  %3607 = vrcp.f32 %v2219_v20  ;;  %v4947_v8 = vpop.eup %3593  ;;  %v1954_v51 = vsub.f32 %v5791_v54, %v4831_v42  ;;  %v2268_v20 = vsel %vm1619_vm2, %v4939_v1, 0.0 }
 0x3f7   : > { %5788 = vst [vmem:[#allocation18_spill] sm:$0xff] %v4937_v17  ;;  %v2210_v59 = vpop.xlane.xlu0 %2209  ;;  %5790 = vst [vmem:[#allocation20_spill] sm:$0xff] %v4947_v8  ;;  %v4955_v24 = vpop.eup %3595  ;;  %v2271_v42 = vsel %vm1619_vm2, %v4947_v8, 0.0  ;;  %v2098_v54 = vmul.f32 1.442695, %v1955_v19  ;;  %v5799_v17 = vld [vmem:[#allocation38_spill] sm:$0xff] }
 0x3f8   : > { %3609 = vrcp.f32 %v2210_v59  ;;  %2278 = vadd.xlane.f32.xlu1 %v2277_v63  ;;  %5793 = vst [vmem:[#allocation21_spill] sm:$0xff] %v4955_v24  ;;  %v4961_v27 = vpop.eup %3597  ;;  %v1952_v59 = vsub.f32 %v5795_v48, %v4847_v25  ;;  %v2286_v18 = vsel %vm1619_vm2, %v4955_v24, 0.0  ;;  %v5798_v48 = vld [vmem:[#allocation35_spill] sm:$0xff]  ;;  %v5800_v24 = vld [vmem:[#allocation45_spill] sm:$0xff] }
 0x3f9   : > { %3611 = vpow2.f32 %v2090_v2  ;;  %v2213_v9 = vpop.xlane.xlu1 %2212  ;;  %5794 = vst [vmem:[#allocation23_spill] sm:$0xff] %v4961_v27  ;;  %v2096_v2 = vmul.f32 1.442695, %v1954_v51  ;;  %v4965_v63 = vpop.eup %3599  ;;  %v2289_v25 = vsel %vm1619_vm2, %v4961_v27, 0.0  ;;  %v1966_v16 = vsub.f32 %v5798_v48, %v4887_v62 }
 0x3fa   : > { %3613 = vrcp.f32 %v2213_v9  ;;  %2269 = vadd.xlane.f32.xlu0 %v2268_v20  ;;  %5796 = vst [vmem:[#allocation22_spill] sm:$0xff] %v4965_v63  ;;  %v4971_v9 = vpop.eup %3601  ;;  %v5797_v20 = vld [vmem:[#allocation32_spill] sm:$0xff]  ;;  %v2092_v19 = vmul.f32 1.442695, %v1952_v59  ;;  %v1967_v27 = vsub.f32 %v5799_v17, %v4897_v13  ;;  %v5802_v59 = vld [vmem:[#allocation46_spill] sm:$0xff] }
 0x3fb   : > { %v4957_v14 = vpop.xlane.xlu0 %1807  ;;  %3615 = vpow2.f32 %v2084_v55  ;;  %v1953_v10 = vsub.f32 %v5797_v20, %v4855_v49  ;;  %v2280_v49 = vsel %vm1619_vm2, %v4965_v63, 0.0  ;;  %v5805_v63 = vld [vmem:[#allocation36_spill] sm:$0xff] }
 0x3fc   : > { %2272 = vadd.xlane.f32.xlu1 %v2271_v42  ;;  %3617 = vpow2.f32 %v2086_v12  ;;  %v1964_v13 = vsub.f32 %v5805_v63, %v4905_v44  ;;  %v5811_v44 = vld [vmem:[#allocation39_spill] sm:$0xff] }
 0x3fd   : > { %v4967_v53 = vpop.xlane.xlu1 %1810  ;;  %3619 = vpow2.f32 %v2096_v2  ;;  %v2094_v20 = vmul.f32 1.442695, %v1953_v10  ;;  %v2120_v10 = vmul.f32 1.442695, %v1966_v16  ;;  %v2122_v16 = vmul.f32 1.442695, %v1967_v27 }
 0x3fe   : > { %2287 = vadd.xlane.f32.xlu0 %v2286_v18  ;;  %v3604_v55 = vpop.eup %3603  ;;  %3621 = vpow2.f32 %v2098_v54  ;;  %v1965_v63 = vsub.f32 %v5811_v44, %v4913_v47 }
 0x3ff   : > { %v4975_v51 = vpop.xlane.xlu0 %1801  ;;  %v4979_v42 = vpop.eup %3605  ;;  %v4990_v2 = vmul.f32 %v3604_v55, %v5800_v24  ;;  %3623 = vpow2.f32 %v2092_v19  ;;  %v5807_v55 = vld [vmem:[#allocation49_spill] sm:$0xff] }
 0x400   : > { %2290 = vadd.xlane.f32.xlu1 %v2289_v25  ;;  %v3608_v57 = vpop.eup %3607  ;;  %v2283_v25 = vsel %vm1619_vm2, %v4971_v9, 0.0  ;;  %3625 = vpow2.f32 %v2094_v20  ;;  %v2118_v44 = vmul.f32 1.442695, %v1965_v63 }
 0x401   : > { %v4983_v12 = vpop.xlane.xlu1 %1804  ;;  %5801 = vst [vmem:[#allocation24_spill] sm:$0xff] %v4990_v2  ;;  %v4993_v8 = vmul.f32 %v3608_v57, %v5802_v59  ;;  %v2322_v57 = vsel %vm1619_vm2, %v4979_v42, 0.0  ;;  %v5809_v59 = vld [vmem:[#allocation52_spill] sm:$0xff]  ;;  %3627 = vpow2.f32 %v2120_v10  ;;  %v5815_v2 = vld [vmem:[#allocation43_spill] sm:$0xff] }
 0x402   : > { %v3610_v18 = vpop.eup %3609  ;;  %2281 = vadd.xlane.f32.xlu0 %v2280_v49  ;;  %3629 = vpow2.f32 %v2122_v16 }
 0x403   : > { %5803 = vst [vmem:[#allocation25_spill] sm:$0xff] %v4993_v8  ;;  %v4995_v62 = vpop.eup %3611  ;;  %v4997_v54 = vpop.xlane.xlu0 %2251  ;;  %v5010_v49 = vmul.f32 %v3610_v18, %v5807_v55  ;;  %v1971_v18 = vsub.f32 %v5815_v2, %v4967_v53  ;;  %v5817_v2 = vld [vmem:[#allocation44_spill] sm:$0xff] }
 0x404   : > { %5804 = vst [vmem:[#allocation27_spill] sm:$0xff] %v4997_v54  ;;  %v3614_v48 = vpop.eup %3613  ;;  %2284 = vadd.xlane.f32.xlu1 %v2283_v25  ;;  %v2325_v17 = vsel %vm1619_vm2, %v4995_v62, 0.0 }
 0x405   : > { %v5005_v24 = vpop.xlane.xlu1 %2254  ;;  %5808 = vst [vmem:[#allocation34_spill] sm:$0xff] %v5010_v49  ;;  %v5013_v54 = vmul.f32 %v3614_v48, %v5809_v59  ;;  %v5015_v19 = vpop.eup %3615  ;;  %v2116_v48 = vmul.f32 1.442695, %v1964_v13  ;;  %v5813_v59 = vld [vmem:[#allocation41_spill] sm:$0xff]  ;;  %v2130_v53 = vmul.f32 1.442695, %v1971_v18 }
 0x406   : > { %5806 = vst [vmem:[#allocation33_spill] sm:$0xff] %v5005_v24  ;;  %2323 = vadd.xlane.f32.xlu0 %v2322_v57  ;;  %v5025_v55 = vpop.eup %3617  ;;  %v1970_v20 = vsub.f32 %v5813_v59, %v4957_v14  ;;  %v2316_v47 = vsel %vm1619_vm2, %v5015_v19, 0.0 }
 0x407   : > { %5810 = vst [vmem:[#allocation26_spill] sm:$0xff] %v5013_v54  ;;  %v5019_v25 = vpop.xlane.xlu0 %2245  ;;  %v5033_v57 = vpop.eup %3619  ;;  %v2319_v14 = vsel %vm1619_vm2, %v5025_v55, 0.0  ;;  %3631 = vpow2.f32 %v2116_v48 }
 0x408   : > { %5812 = vst [vmem:[#allocation37_spill] sm:$0xff] %v5019_v25  ;;  %2326 = vadd.xlane.f32.xlu1 %v2325_v17  ;;  %v5037_v8 = vpop.eup %3621  ;;  %v2128_v13 = vmul.f32 1.442695, %v1970_v20  ;;  %v5816_v17 = vld [vmem:[#allocation42_spill] sm:$0xff]  ;;  %v2334_v16 = vsel %vm1619_vm2, %v5033_v57, 0.0  ;;  %3633 = vpow2.f32 %v2118_v44 }
 0x409   : > { %v5029_v27 = vpop.xlane.xlu1 %2248  ;;  %v1968_v59 = vsub.f32 %v5816_v17, %v4975_v51  ;;  %v5045_v63 = vpop.eup %3623  ;;  %v2337_v48 = vsel %vm1619_vm2, %v5037_v8, 0.0 }
 0x40a   : > { %5814 = vst [vmem:[#allocation40_spill] sm:$0xff] %v5029_v27  ;;  %2317 = vadd.xlane.f32.xlu0 %v2316_v47  ;;  %v1969_v47 = vsub.f32 %v5817_v2, %v4983_v12  ;;  %v5051_v20 = vpop.eup %3625  ;;  %3635 = vpow2.f32 %v2128_v13  ;;  %v2328_v44 = vsel %vm1619_vm2, %v5045_v63, 0.0 }
 0x40b   : > { %v1844_v10 = vpop.xlane.xlu0 %1843  ;;  %v2124_v51 = vmul.f32 1.442695, %v1968_v59  ;;  %v5056_v18 = vpop.eup %3627  ;;  %3637 = vpow2.f32 %v2130_v53  ;;  %v2331_v13 = vsel %vm1619_vm2, %v5051_v20, 0.0 }
 0x40c   : > { %2320 = vadd.xlane.f32.xlu1 %v2319_v14  ;;  %v5818_v14 = vld [vmem:[#allocation47_spill] sm:$0xff]  ;;  %5819 = vst [vmem:[#allocation28_spill] sm:$0xff] %v5056_v18  ;;  %v2126_v12 = vmul.f32 1.442695, %v1969_v47  ;;  %v5063_v59 = vpop.eup %3629  ;;  %v2370_v53 = vsel %vm1619_vm2, %v5056_v18, 0.0 }
 0x40d   : > { %v1847_v49 = vpop.xlane.xlu1 %1846  ;;  %v1982_v17 = vsub.f32 %v5818_v14, %v1844_v10  ;;  %3639 = vpow2.f32 %v2124_v51  ;;  %v2373_v51 = vsel %vm1619_vm2, %v5063_v59, 0.0 }
 0x40e   : > { %2335 = vadd.xlane.f32.xlu0 %v2334_v16  ;;  %v5820_v16 = vld [vmem:[#allocation50_spill] sm:$0xff]  ;;  %3641 = vpow2.f32 %v2126_v12 }
 0x40f   : > { %v1838_v54 = vpop.xlane.xlu0 %1837  ;;  %v1983_v2 = vsub.f32 %v5820_v16, %v1847_v49  ;;  %v2152_v10 = vmul.f32 1.442695, %v1982_v17 }
 0x410   : > { %2338 = vadd.xlane.f32.xlu1 %v2337_v48  ;;  %v5822_v48 = vld [vmem:[#allocation48_spill] sm:$0xff] }
 0x411   : > { %v1841_v25 = vpop.xlane.xlu1 %1840  ;;  %v1980_v14 = vsub.f32 %v5822_v48, %v1838_v54  ;;  %v5070_v47 = vpop.eup %3631  ;;  %v2154_v49 = vmul.f32 1.442695, %v1983_v2  ;;  %3643 = vpow2.f32 %v2152_v10 }
 0x412   : > { %2329 = vadd.xlane.f32.xlu0 %v2328_v44  ;;  %v5824_v44 = vld [vmem:[#allocation51_spill] sm:$0xff]  ;;  %v5077_v17 = vpop.eup %3633  ;;  %v2364_v48 = vsel %vm1619_vm2, %v5070_v47, 0.0 }
 0x413   : > { %v5059_v27 = vpop.xlane.xlu0 %2263  ;;  %v1981_v16 = vsub.f32 %v5824_v44, %v1841_v25  ;;  %v2148_v54 = vmul.f32 1.442695, %v1980_v14  ;;  %3645 = vpow2.f32 %v2154_v49 }
 0x414   : > { %5821 = vst [vmem:[#allocation29_spill] sm:$0xff] %v5059_v27  ;;  %2332 = vadd.xlane.f32.xlu1 %v2331_v13  ;;  %v5083_v12 = vpop.eup %3635 }
 0x415   : > { %v5066_v24 = vpop.xlane.xlu1 %2266  ;;  %5827 = vst [vmem:[#allocation35_spill] sm:$0xff] %v5083_v12  ;;  %v2150_v25 = vmul.f32 1.442695, %v1981_v16  ;;  %v5087_v44 = vpop.eup %3637  ;;  %3647 = vpow2.f32 %v2148_v54 }
 0x416   : > { %5823 = vst [vmem:[#allocation31_spill] sm:$0xff] %v5066_v24  ;;  %2371 = vadd.xlane.f32.xlu0 %v2370_v53  ;;  %v2367_v53 = vsel %vm1619_vm2, %v5077_v17, 0.0  ;;  %5828 = vst [vmem:[#allocation38_spill] sm:$0xff] %v5087_v44 }
 0x417   : > { %v5073_v27 = vpop.xlane.xlu0 %2257  ;;  %v5092_v24 = vpop.eup %3639  ;;  %3649 = vpow2.f32 %v2150_v25 }
 0x418   : > { %5825 = vst [vmem:[#allocation30_spill] sm:$0xff] %v5073_v27  ;;  %2374 = vadd.xlane.f32.xlu1 %v2373_v51  ;;  %v2382_v51 = vsel %vm1619_vm2, %v5083_v12, 0.0  ;;  %5829 = vst [vmem:[#allocation45_spill] sm:$0xff] %v5092_v24  ;;  %v2385_v27 = vsel %vm1619_vm2, %v5087_v44, 0.0 }
 0x419   : > { %v5079_v13 = vpop.xlane.xlu1 %2260 }
 0x41a   : > { %5826 = vst [vmem:[#allocation32_spill] sm:$0xff] %v5079_v13  ;;  %2365 = vadd.xlane.f32.xlu0 %v2364_v48  ;;  %v5097_v13 = vpop.eup %3641 }
 0x41b   : > { %v1856_v2 = vpop.xlane.xlu0 %1855  ;;  %5830 = vst [vmem:[#allocation46_spill] sm:$0xff] %v5097_v13  ;;  %v5102_v25 = vpop.eup %3643 }
 0x41c   : > { %v1986_v10 = vsub.f32 %v4449_v46, %v1856_v2  ;;  %2368 = vadd.xlane.f32.xlu1 %v2367_v53  ;;  %v2376_v53 = vsel %vm1619_vm2, %v5092_v24, 0.0  ;;  %5831 = vst [vmem:[#allocation36_spill] sm:$0xff] %v5102_v25 }
 0x41d   : > { %v1859_v14 = vpop.xlane.xlu1 %1858 }
 0x41e   : > { %v2160_v49 = vmul.f32 1.442695, %v1986_v10  ;;  %v1987_v16 = vsub.f32 %v4455_v0, %v1859_v14  ;;  %2383 = vadd.xlane.f32.xlu0 %v2382_v51  ;;  %v2379_v51 = vsel %vm1619_vm2, %v5097_v13, 0.0 }
 0x41f   : > { %v1850_v48 = vpop.xlane.xlu0 %1849 }
 0x420   : > { %3651 = vpow2.f32 %v2160_v49  ;;  %v2162_v46 = vmul.f32 1.442695, %v1987_v16  ;;  %v1984_v54 = vsub.f32 %v4453_v11, %v1850_v48  ;;  %2386 = vadd.xlane.f32.xlu1 %v2385_v27  ;;  %v5109_v49 = vpop.eup %3645  ;;  %v2418_v16 = vsel %vm1619_vm2, %v5102_v25, 0.0 }
 0x421   : > { %v1853_v2 = vpop.xlane.xlu1 %1852  ;;  %5832 = vst [vmem:[#allocation49_spill] sm:$0xff] %v5109_v49  ;;  %v5115_v48 = vpop.eup %3647 }
 0x422   : > { %3653 = vpow2.f32 %v2162_v46  ;;  %v2156_v0 = vmul.f32 1.442695, %v1984_v54  ;;  %v1985_v10 = vsub.f32 %v4461_v7, %v1853_v2  ;;  %2377 = vadd.xlane.f32.xlu0 %v2376_v53  ;;  %5833 = vst [vmem:[#allocation52_spill] sm:$0xff] %v5115_v48  ;;  %v2421_v46 = vsel %vm1619_vm2, %v5109_v49, 0.0  ;;  %v5119_v54 = vpop.eup %3649 }
 0x423   : > { %v5105_v14 = vpop.xlane.xlu0 %2299  ;;  %5834 = vst [vmem:[#allocation39_spill] sm:$0xff] %v5119_v54  ;;  %v2412_v53 = vsel %vm1619_vm2, %v5115_v48, 0.0 }
 0x424   : > { %3655 = vpow2.f32 %v2156_v0  ;;  %v2158_v11 = vmul.f32 1.442695, %v1985_v10  ;;  %2380 = vadd.xlane.f32.xlu1 %v2379_v51  ;;  %v2415_v51 = vsel %vm1619_vm2, %v5119_v54, 0.0 }
 0x425   : > { %v5111_v27 = vpop.xlane.xlu1 %2302 }
 0x426   : > { %3657 = vpow2.f32 %v2158_v11  ;;  %2419 = vadd.xlane.f32.xlu0 %v2418_v16 }
 0x427   : > { %v2294_v7 = vpop.xlane.xlu0 %2293 }
 0x428   : > { %2422 = vadd.xlane.f32.xlu1 %v2421_v46 }
 0x429   : > { %v2297_v2 = vpop.xlane.xlu1 %2296 }
 0x42a   : > { %v5123_v0 = vpop.eup %3651  ;;  %2413 = vadd.xlane.f32.xlu0 %v2412_v53 }
 0x42b   : > { %5835 = vst [vmem:[#allocation41_spill] sm:$0xff] %v5123_v0  ;;  %v1892_v10 = vpop.xlane.xlu0 %1891  ;;  %v2430_v46 = vsel %vm1619_vm2, %v5123_v0, 0.0 }
 0x42c   : > { %v5127_v11 = vpop.eup %3653  ;;  %v1998_v16 = vsub.f32 %v4479_v4, %v1892_v10  ;;  %2416 = vadd.xlane.f32.xlu1 %v2415_v51 }
 0x42d   : > { %5836 = vst [vmem:[#allocation43_spill] sm:$0xff] %v5127_v11  ;;  %v5130_v49 = vpop.xlane.xlu1 %1894  ;;  %v2433_v53 = vsel %vm1619_vm2, %v5127_v11, 0.0 }
 0x42e   : > { %v5134_v25 = vpop.eup %3655  ;;  %v2184_v48 = vmul.f32 1.442695, %v1998_v16  ;;  %2431 = vadd.xlane.f32.xlu0 %v2430_v46 }
 0x42f   : > { %5837 = vst [vmem:[#allocation42_spill] sm:$0xff] %v5134_v25  ;;  %v1886_v12 = vpop.xlane.xlu0 %1885  ;;  %v2424_v10 = vsel %vm1619_vm2, %v5134_v25, 0.0 }
 0x430   : > { %v5138_v44 = vpop.eup %3657  ;;  %3659 = vpow2.f32 %v2184_v48  ;;  %v1996_v54 = vsub.f32 %v4485_v5, %v1886_v12  ;;  %2434 = vadd.xlane.f32.xlu1 %v2433_v53 }
 0x431   : > { %5838 = vst [vmem:[#allocation44_spill] sm:$0xff] %v5138_v44  ;;  %v5141_v4 = vpop.xlane.xlu1 %1888  ;;  %3661 = vrcp.f32 %v2297_v2  ;;  %v2427_v46 = vsel %vm1619_vm2, %v5138_v44, 0.0 }
 0x432   : > { %v2180_v51 = vmul.f32 1.442695, %v1996_v54  ;;  %2425 = vadd.xlane.f32.xlu0 %v2424_v10  ;;  %3663 = vrcp.f32 %v2294_v7 }
 0x433   : > { %v5145_v16 = vpop.xlane.xlu0 %2311 }
 0x434   : > { %3665 = vpow2.f32 %v2180_v51  ;;  %2428 = vadd.xlane.f32.xlu1 %v2427_v46 }
 0x435   : > { %v5149_v48 = vpop.xlane.xlu1 %2314 }
 0x437   : > { %v5151_v5 = vpop.xlane.xlu0 %2305 }
 0x439   : > { %v5153_v12 = vpop.xlane.xlu1 %2308 }
 0x43a   : > { %v5155_v53 = vpop.eup %3659 }
 0x43b   : > { %5839 = vst [vmem:[#allocation47_spill] sm:$0xff] %v5155_v53  ;;  %v1904_v0 = vpop.xlane.xlu0 %1903  ;;  %v2466_v54 = vsel %vm1619_vm2, %v5155_v53, 0.0  ;;  %v3662_v7 = vpop.eup %3661 }
 0x43c   : > { %v2002_v2 = vsub.f32 %v4509_v58, %v1904_v0  ;;  %2467 = vadd.xlane.f32.xlu0 %v2466_v54  ;;  %v3664_v10 = vpop.eup %3663  ;;  %v2613_v13 = vmul.f32 %v3662_v7, %v4593_v39 }
 0x43d   : > { %v5160_v11 = vpop.xlane.xlu1 %1906  ;;  %v2612_v58 = vmul.f32 %v3664_v10, %v4585_v37 }
 0x43e   : > { %v5162_v51 = vpop.eup %3665  ;;  %v2192_v46 = vmul.f32 1.442695, %v2002_v2 }
 0x43f   : > { %5840 = vst [vmem:[#allocation50_spill] sm:$0xff] %v5162_v51  ;;  %v1898_v25 = vpop.xlane.xlu0 %1897  ;;  %v2460_v44 = vsel %vm1619_vm2, %v5162_v51, 0.0  ;;  %v2692_v18 = vpack.c.bf16 %v2613_v13, %v2612_v58 }
 0x440   : > { %3667 = vpow2.f32 %v2192_v46  ;;  %v2000_v24 = vsub.f32 %v4513_v21, %v1898_v25  ;;  %2461 = vadd.xlane.f32.xlu0 %v2460_v44 }
 0x441   : > { %v5168_v53 = vpop.xlane.xlu1 %1900 }
 0x442   : > { %v2188_v0 = vmul.f32 1.442695, %v2000_v24 }
 0x443   : > { %v2348_v54 = vpop.xlane.xlu0 %2347 }
 0x444   : > { %3669 = vpow2.f32 %v2188_v0 }
 0x445   : > { %3671 = vrcp.f32 %v2348_v54  ;;  %2729 = vrot.lane.b32.xlu1 %v2692_v18, %s3861_s25  ;;  %v2351_v2 = vpop.xlane.xlu1 %2350  ;;  %v1999_v54 = vsub.f32 %v4491_v35, %v5130_v49  ;;  %v5855_v49 = vld [vmem:[#allocation11_spill] sm:$0xff] }
 0x446   : > { %3673 = vrcp.f32 %v2351_v2 }
 0x447   : > { %v2342_v51 = vpop.xlane.xlu0 %2341 }
 0x448   : > { %3675 = vrcp.f32 %v2342_v51 }
 0x449   : > { %v2345_v39 = vpop.xlane.xlu1 %2344 }
 0x44a   : > { %v5172_v7 = vpop.eup %3667  ;;  %3677 = vrcp.f32 %v2345_v39 }
 0x44b   : > { %5841 = vst [vmem:[#allocation48_spill] sm:$0xff] %v5172_v7  ;;  %v2360_v21 = vpop.xlane.xlu0 %2359  ;;  %v2478_v44 = vsel %vm1619_vm2, %v5172_v7, 0.0 }
 0x44c   : > { %3679 = vrcp.f32 %v2360_v21  ;;  %2479 = vadd.xlane.f32.xlu0 %v2478_v44 }
 0x44d   : > { %v2363_v37 = vpop.xlane.xlu1 %2362 }
 0x44e   : > { %v5176_v24 = vpop.eup %3669  ;;  %3681 = vrcp.f32 %v2363_v37 }
 0x44f   : > { %v3672_v13 = vpop.eup %3671  ;;  %v2354_v18 = vpop.xlane.xlu0 %2353  ;;  %v2472_v25 = vsel %vm1619_vm2, %v5176_v24, 0.0 }
 0x450   : > { %3683 = vrcp.f32 %v2354_v18  ;;  %2473 = vadd.xlane.f32.xlu0 %v2472_v25  ;;  %v3674_v10 = vpop.eup %3673  ;;  %v5181_v58 = vmul.f32 %v3672_v13, %v4665_v56  ;;  %v1997_v13 = vsub.f32 %v4497_v26, %v5141_v4  ;;  %v2003_v26 = vsub.f32 %v4515_v34, %v5160_v11 }
 0x451   : > { %v2357_v51 = vpop.xlane.xlu1 %2356  ;;  %v5184_v0 = vmul.f32 %v3674_v10, %v4673_v28  ;;  %v2186_v28 = vmul.f32 1.442695, %v1999_v54  ;;  %v2001_v34 = vsub.f32 %v4519_v50, %v5168_v53  ;;  %v5849_v54 = vld [vmem:[#allocation7_spill] sm:$0xff] }
 0x452   : > { %v3676_v46 = vpop.eup %3675  ;;  %3685 = vrcp.f32 %v2357_v51 }
 0x453   : > { %v2396_v2 = vpop.xlane.xlu0 %2395  ;;  %v5191_v37 = vmul.f32 %v3676_v46, %v4681_v33  ;;  %v2182_v46 = vmul.f32 1.442695, %v1997_v13 }
 0x454   : > { %v3678_v39 = vpop.eup %3677  ;;  %3687 = vrcp.f32 %v2396_v2 }
 0x455   : > { %v2399_v44 = vpop.xlane.xlu1 %2398  ;;  %v5194_v18 = vmul.f32 %v3678_v39, %v4689_v30 }
 0x456   : > { %v3680_v56 = vpop.eup %3679  ;;  %3689 = vrcp.f32 %v2399_v44 }
 0x457   : > { %v2390_v35 = vpop.xlane.xlu0 %2389  ;;  %v5201_v51 = vmul.f32 %v3680_v56, %v4697_v36  ;;  %v2194_v56 = vmul.f32 1.442695, %v2003_v26 }
 0x458   : > { %v3682_v25 = vpop.eup %3681  ;;  %3691 = vrcp.f32 %v2390_v35 }
 0x459   : > { %v2393_v10 = vpop.xlane.xlu1 %2392  ;;  %v5204_v33 = vmul.f32 %v3682_v25, %v4705_v32 }
 0x45a   : > { %v3684_v30 = vpop.eup %3683  ;;  %3693 = vrcp.f32 %v2393_v10  ;;  %v2190_v10 = vmul.f32 1.442695, %v2001_v34 }
 0x45b   : > { %3695 = vpow2.f32 %v2186_v28  ;;  %v2408_v4 = vpop.xlane.xlu0 %2407  ;;  %v5211_v36 = vmul.f32 %v3684_v30, %v4713_v45  ;;  %v5853_v28 = vld [vmem:[#allocation8_spill] sm:$0xff] }
 0x45c   : > { %v3686_v2 = vpop.eup %3685  ;;  %3697 = vrcp.f32 %v2408_v4 }
 0x45d   : > { %v2411_v39 = vpop.xlane.xlu1 %2410  ;;  %v5214_v32 = vmul.f32 %v3686_v2, %v4721_v41 }
 0x45e   : > { %v3688_v44 = vpop.eup %3687  ;;  %3699 = vrcp.f32 %v2411_v39 }
 0x45f   : > { %3701 = vpow2.f32 %v2182_v46  ;;  %v2402_v11 = vpop.xlane.xlu0 %2401  ;;  %v5221_v45 = vmul.f32 %v3688_v44, %v4729_v52 }
 0x460   : > { %v3690_v13 = vpop.eup %3689  ;;  %3703 = vrcp.f32 %v2402_v11 }
 0x461   : > { %v2405_v35 = vpop.xlane.xlu1 %2404  ;;  %v5224_v41 = vmul.f32 %v3690_v13, %v4737_v43 }
 0x462   : > { %v3692_v25 = vpop.eup %3691  ;;  %3705 = vrcp.f32 %v2405_v35 }
 0x463   : > { %3707 = vpow2.f32 %v2194_v56  ;;  %v2444_v30 = vpop.xlane.xlu0 %2443  ;;  %v2644_v4 = vmul.f32 %v3692_v25, %v4745_v61  ;;  %v5846_v25 = vld [vmem:[#allocation5_spill] sm:$0xff] }
 0x464   : > { %v3694_v53 = vpop.eup %3693  ;;  %3709 = vrcp.f32 %v2444_v30 }
 0x465   : > { %v5228_v46 = vpop.eup %3695  ;;  %v2447_v26 = vpop.xlane.xlu1 %2446  ;;  %v2645_v52 = vmul.f32 %v3694_v53, %v4753_v6 }
 0x466   : > { %v3698_v2 = vpop.eup %3697  ;;  %3711 = vrcp.f32 %v2447_v26  ;;  %v2469_v56 = vsel %vm1619_vm2, %v5228_v46, 0.0 }
 0x467   : > { %3713 = vpow2.f32 %v2190_v10  ;;  %v2438_v43 = vpop.xlane.xlu0 %2437  ;;  %v2708_v39 = vpack.c.bf16 %v2645_v52, %v2644_v4  ;;  %v5237_v13 = vmul.f32 %v3698_v2, %v4761_v22 }
 0x468   : > { %v3700_v44 = vpop.eup %3699  ;;  %3715 = vrcp.f32 %v2438_v43 }
 0x469   : > { %v5234_v34 = vpop.eup %3701  ;;  %2470 = vadd.xlane.f32.xlu1 %v2469_v56  ;;  %2756 = vmatprep.subr.bf16.mxu1 %v2708_v39  ;;  %v2441_v11 = vpop.xlane.xlu1 %2440  ;;  %v5240_v61 = vmul.f32 %v3700_v44, %v4769_v38 }
 0x46a   : > { %v3704_v6 = vpop.eup %3703  ;;  %3717 = vrcp.f32 %v2441_v11  ;;  %v2463_v30 = vsel %vm1619_vm2, %v5234_v34, 0.0 }
 0x46b   : > { %v2456_v35 = vpop.xlane.xlu0 %2455  ;;  %v5249_v22 = vmul.f32 %v3704_v6, %v4777_v23 }
 0x46c   : > { %v3706_v10 = vpop.eup %3705  ;;  %3719 = vrcp.f32 %v2456_v35 }
 0x46d   : > { %v5246_v53 = vpop.eup %3707  ;;  %2464 = vadd.xlane.f32.xlu1 %v2463_v30  ;;  %v2459_v26 = vpop.xlane.xlu1 %2458  ;;  %v5252_v38 = vmul.f32 %v3706_v10, %v4785_v15 }
 0x46e   : > { %v3710_v4 = vpop.eup %3709  ;;  %3721 = vrcp.f32 %v2459_v26  ;;  %v2481_v39 = vsel %vm1619_vm2, %v5246_v53, 0.0 }
 0x46f   : > { %v2450_v52 = vpop.xlane.xlu0 %2449  ;;  %v5261_v23 = vmul.f32 %v3710_v4, %v4793_v3  ;;  %v5845_v3 = vld [vmem:[#allocation4_spill] sm:$0xff] }
 0x470   : > { %v3712_v43 = vpop.eup %3711  ;;  %3723 = vrcp.f32 %v2450_v52  ;;  %v5844_v52 = vld [vmem:[#allocation3_spill] sm:$0xff] }
 0x471   : > { %v5258_v44 = vpop.eup %3713  ;;  %2482 = vadd.xlane.f32.xlu1 %v2481_v39  ;;  %v2453_v56 = vpop.xlane.xlu1 %2452  ;;  %5842 = vst [vmem:[#allocation51_spill] sm:$0xff] %v5261_v23  ;;  %v5264_v15 = vmul.f32 %v3712_v43, %v4801_v29 }
 0x472   : > { %v3716_v11 = vpop.eup %3715  ;;  %3725 = vrcp.f32 %v2453_v56  ;;  %v2475_v30 = vsel %vm1619_vm2, %v5258_v44, 0.0 }
 0x473   : > { %5843 = vst [vmem:[#allocation67_spill] sm:$0xff] %v5264_v15  ;;  %v2228_v6 = vpop.xlane.xlu0 %2227  ;;  %v5271_v39 = vmul.f32 %v3716_v11, %v5844_v52  ;;  %v5864_v15 = vld [vmem:[#allocation23_spill] sm:$0xff] }
 0x474   : > { %v3718_v10 = vpop.eup %3717  ;;  %3727 = vrcp.f32 %v2228_v6 }
 0x475   : > { %2476 = vadd.xlane.f32.xlu1 %v2475_v30  ;;  %v2231_v26 = vpop.xlane.xlu1 %2230  ;;  %v5274_v4 = vmul.f32 %v3718_v10, %v5845_v3 }
 0x476   : > { %v3720_v29 = vpop.eup %3719  ;;  %3729 = vrcp.f32 %v2231_v26 }
 0x477   : > { %v2222_v43 = vpop.xlane.xlu0 %2221  ;;  %v5279_v2 = vmul.f32 %v3720_v29, %v5846_v25 }
 0x478   : > { %v3722_v35 = vpop.eup %3721  ;;  %3731 = vrcp.f32 %v2222_v43  ;;  %v5851_v43 = vld [vmem:[#allocation6_spill] sm:$0xff] }
 0x479   : > { %v2225_v6 = vpop.xlane.xlu1 %2224  ;;  %5847 = vst [vmem:[#allocation3_spill] sm:$0xff] %v5279_v2  ;;  %v5282_v30 = vmul.f32 %v3722_v35, %v4835_v60 }
 0x47a   : > { %v3724_v11 = vpop.eup %3723  ;;  %3733 = vrcp.f32 %v2225_v6 }
 0x47b   : > { %5848 = vst [vmem:[#allocation4_spill] sm:$0xff] %v5282_v30  ;;  %v2240_v52 = vpop.xlane.xlu0 %2239  ;;  %v5287_v56 = vmul.f32 %v3724_v11, %v5849_v54  ;;  %v5857_v30 = vld [vmem:[#allocation12_spill] sm:$0xff] }
 0x47c   : > { %v3726_v26 = vpop.eup %3725  ;;  %3735 = vrcp.f32 %v2240_v52  ;;  %v5854_v52 = vld [vmem:[#allocation9_spill] sm:$0xff] }
 0x47d   : > { %v2243_v3 = vpop.xlane.xlu1 %2242  ;;  %5850 = vst [vmem:[#allocation5_spill] sm:$0xff] %v5287_v56  ;;  %v5290_v50 = vmul.f32 %v3726_v26, %v5851_v43 }
 0x47e   : > { %v3728_v25 = vpop.eup %3727  ;;  %3737 = vrcp.f32 %v2243_v3 }
 0x47f   : > { %5852 = vst [vmem:[#allocation7_spill] sm:$0xff] %v5290_v50  ;;  %v2234_v29 = vpop.xlane.xlu0 %2233  ;;  %v5295_v10 = vmul.f32 %v3728_v25, %v5853_v28  ;;  %v5859_v50 = vld [vmem:[#allocation15_spill] sm:$0xff] }
 0x480   : > { %v3730_v35 = vpop.eup %3729  ;;  %3739 = vrcp.f32 %v2234_v29  ;;  %v5856_v29 = vld [vmem:[#allocation10_spill] sm:$0xff] }
 0x481   : > { %v2237_v6 = vpop.xlane.xlu1 %2236  ;;  %v5298_v21 = vmul.f32 %v3730_v35, %v5854_v52 }
 0x482   : > { %v3732_v54 = vpop.eup %3731  ;;  %3741 = vrcp.f32 %v2237_v6 }
 0x483   : > { %v2276_v11 = vpop.xlane.xlu0 %2275  ;;  %v5303_v60 = vmul.f32 %v3732_v54, %v5855_v49 }
 0x484   : > { %v3734_v3 = vpop.eup %3733  ;;  %3743 = vrcp.f32 %v2276_v11  ;;  %v5858_v11 = vld [vmem:[#allocation13_spill] sm:$0xff] }
 0x485   : > { %v2279_v43 = vpop.xlane.xlu1 %2278  ;;  %v5306_v2 = vmul.f32 %v3734_v3, %v5856_v29 }
 0x486   : > { %v3736_v28 = vpop.eup %3735  ;;  %3745 = vrcp.f32 %v2279_v43 }
 0x487   : > { %v2270_v25 = vpop.xlane.xlu0 %2269  ;;  %v5311_v26 = vmul.f32 %v3736_v28, %v5857_v30 }
 0x488   : > { %v3738_v6 = vpop.eup %3737  ;;  %3747 = vrcp.f32 %v2270_v25  ;;  %v5860_v25 = vld [vmem:[#allocation14_spill] sm:$0xff] }
 0x489   : > { %v2273_v52 = vpop.xlane.xlu1 %2272  ;;  %v5314_v56 = vmul.f32 %v3738_v6, %v5858_v11 }
 0x48a   : > { %v3740_v49 = vpop.eup %3739  ;;  %3749 = vrcp.f32 %v2273_v52 }
 0x48b   : > { %v2288_v54 = vpop.xlane.xlu0 %2287  ;;  %v5319_v35 = vmul.f32 %v3740_v49, %v5859_v50 }
 0x48c   : > { %v3742_v43 = vpop.eup %3741  ;;  %3751 = vrcp.f32 %v2288_v54 }
 0x48d   : > { %v2291_v29 = vpop.xlane.xlu1 %2290  ;;  %v5322_v7 = vmul.f32 %v3742_v43, %v5860_v25  ;;  %v5862_v43 = vld [vmem:[#allocation21_spill] sm:$0xff] }
 0x48e   : > { %v3744_v30 = vpop.eup %3743  ;;  %3753 = vrcp.f32 %v2291_v29 }
 0x48f   : > { %v2282_v28 = vpop.xlane.xlu0 %2281  ;;  %v5327_v3 = vmul.f32 %v3744_v30, %v4909_v40 }
 0x490   : > { %v3746_v52 = vpop.eup %3745  ;;  %3755 = vrcp.f32 %v2282_v28  ;;  %v5861_v28 = vld [vmem:[#allocation20_spill] sm:$0xff] }
 0x491   : > { %v2285_v11 = vpop.xlane.xlu1 %2284  ;;  %v5330_v54 = vmul.f32 %v3746_v52, %v4923_v31 }
 0x492   : > { %v3748_v50 = vpop.eup %3747  ;;  %3757 = vrcp.f32 %v2285_v11 }
 0x493   : > { %v2324_v49 = vpop.xlane.xlu0 %2323  ;;  %v5335_v6 = vmul.f32 %v3748_v50, %v4939_v1 }
 0x494   : > { %v3750_v29 = vpop.eup %3749  ;;  %3759 = vrcp.f32 %v2324_v49 }
 0x495   : > { %v2327_v25 = vpop.xlane.xlu1 %2326  ;;  %v5338_v23 = vmul.f32 %v3750_v29, %v5861_v28 }
 0x496   : > { %v3752_v40 = vpop.eup %3751  ;;  %3761 = vrcp.f32 %v2327_v25 }
 0x497   : > { %v2318_v30 = vpop.xlane.xlu0 %2317  ;;  %v5344_v49 = vmul.f32 %v3752_v40, %v5862_v43 }
 0x498   : > { %v3754_v52 = vpop.eup %3753  ;;  %3763 = vrcp.f32 %v2318_v30 }
 0x499   : > { %3765 = vrcp.f32 %v5111_v27  ;;  %v2321_v11 = vpop.xlane.xlu1 %2320  ;;  %5863 = vst [vmem:[#allocation6_spill] sm:$0xff] %v5344_v49  ;;  %v5347_v1 = vmul.f32 %v3754_v52, %v5864_v15  ;;  %v5866_v27 = vld [vmem:[#allocation22_spill] sm:$0xff] }
 0x49a   : > { %v3756_v50 = vpop.eup %3755  ;;  %3767 = vrcp.f32 %v2321_v11 }
 0x49b   : > { %5865 = vst [vmem:[#allocation8_spill] sm:$0xff] %v5347_v1  ;;  %v2336_v29 = vpop.xlane.xlu0 %2335  ;;  %3769 = vrcp.f32 %v5105_v14  ;;  %v5354_v31 = vmul.f32 %v3756_v50, %v5866_v27 }
 0x49c   : > { %v3758_v28 = vpop.eup %3757  ;;  %3771 = vrcp.f32 %v5149_v48 }
 0x49d   : > { %v2339_v30 = vpop.xlane.xlu1 %2338  ;;  %5867 = vst [vmem:[#allocation9_spill] sm:$0xff] %v5354_v31  ;;  %v5357_v43 = vmul.f32 %v3758_v28, %v4971_v9  ;;  %3773 = vrcp.f32 %v5153_v12 }
 0x49e   : > { %v3760_v15 = vpop.eup %3759  ;;  %3775 = vrcp.f32 %v5151_v5 }
 0x49f   : > { %v2330_v40 = vpop.xlane.xlu0 %2329  ;;  %v2622_v48 = vmul.f32 %v3760_v15, %v4979_v42 }
 0x4a0   : > { %v3762_v11 = vpop.eup %3761  ;;  %3777 = vrcp.f32 %v2330_v40 }
 0x4a1   : > { %3779 = vrcp.f32 %v2339_v30  ;;  %v2333_v14 = vpop.xlane.xlu1 %2332  ;;  %v2623_v50 = vmul.f32 %v3762_v11, %v4995_v62  ;;  %v5868_v11 = vld [vmem:[#allocation62_spill] sm:$0xff] }
 0x4a2   : > { %v3764_v27 = vpop.eup %3763  ;;  %3781 = vrcp.f32 %v2333_v14 }
 0x4a3   : > { %v3766_v9 = vpop.eup %3765  ;;  %3783 = vrcp.f32 %v5145_v16  ;;  %v2372_v12 = vpop.xlane.xlu0 %2371  ;;  %v2697_v28 = vpack.c.bf16 %v2623_v50, %v2622_v48  ;;  %v2620_v40 = vmul.f32 %v3764_v27, %v5015_v19  ;;  %v5869_v48 = vld [vmem:[#allocation61_spill] sm:$0xff] }
 0x4a4   : > { %v3768_v5 = vpop.eup %3767  ;;  %3785 = vrcp.f32 %v2336_v29  ;;  %v2615_v14 = vmul.f32 %v3766_v9, %v5868_v11 }
 0x4a5   : > { %2803 = vrot.lane.b32.xlu1 %v2697_v28, %s3861_s25  ;;  %v2375_v25 = vpop.xlane.xlu1 %2374  ;;  %v2621_v30 = vmul.f32 %v3768_v5, %v5025_v55  ;;  %v3770_v52 = vpop.eup %3769  ;;  %v5870_v5 = vld [vmem:[#allocation66_spill] sm:$0xff] }
 0x4a6   : > { %v3772_v42 = vpop.eup %3771  ;;  %v2614_v50 = vmul.f32 %v3770_v52, %v5869_v48 }
 0x4a7   : > { %v2366_v15 = vpop.xlane.xlu0 %2365  ;;  %v2696_v62 = vpack.c.bf16 %v2621_v30, %v2620_v40  ;;  %v3774_v49 = vpop.eup %3773 }
 0x4a8   : > { %3787 = vrcp.f32 %v2366_v15  ;;  %v3776_v16 = vpop.eup %3775  ;;  %v2693_v27 = vpack.c.bf16 %v2615_v14, %v2614_v50  ;;  %v2617_v1 = vmul.f32 %v3774_v49, %v5870_v5  ;;  %v5872_v14 = vld [vmem:[#allocation64_spill] sm:$0xff] }
 0x4a9   : > { %3789 = vrcp.f32 %v2375_v25  ;;  %2801 = vrot.lane.b32.xlu0 %v2696_v62, %s3861_s25  ;;  %v2369_v29 = vpop.xlane.xlu1 %2368  ;;  %v5871_v25 = vld [vmem:[#allocation65_spill] sm:$0xff]  ;;  %v2619_v50 = vmul.f32 %v3772_v42, %v5872_v14  ;;  %v5387_v42 = vld [vmem:[%s212_s29] sm:$0xf] }
 0x4aa   : > { %v3778_v28 = vpop.eup %3777  ;;  %3791 = vrcp.f32 %v2369_v29  ;;  %v2616_v15 = vmul.f32 %v3776_v16, %v5871_v25 }
 0x4ab   : > { %v3780_v19 = vpop.eup %3779  ;;  %v2384_v55 = vpop.xlane.xlu0 %2383  ;;  %3793 = vrcp.f32 %v2372_v12  ;;  %v2624_v62 = vmul.f32 %v3778_v28, %v5045_v63 }
 0x4ac   : > { %v3782_v40 = vpop.eup %3781  ;;  %v2694_v48 = vpack.c.bf16 %v2617_v1, %v2616_v15  ;;  %v2627_v49 = vmul.f32 %v3780_v19, %v5037_v8 }
 0x4ad   : > { %v3784_v9 = vpop.eup %3783  ;;  %2731 = vrot.lane.b32.xlu0 %v2693_v27, %s3861_s25  ;;  %v2387_v30 = vpop.xlane.xlu1 %2386  ;;  %v2625_v52 = vmul.f32 %v3782_v40, %v5051_v20  ;;  %v5873_v20 = vld [vmem:[#allocation63_spill] sm:$0xff]  ;;  %v5874_v40 = vld [vmem:[#allocation2_spill] sm:$0xff] }
 0x4ae   : > { %v3786_v11 = vpop.eup %3785  ;;  %v2618_v12 = vmul.f32 %v3784_v9, %v5873_v20  ;;  %v2832_v9 = vrot.slane %v5387_v42, %v5874_v40  ;;  %v5882_v40 = vld [vmem:[#allocation36_spill] sm:$0xff] }
 0x4af   : > { %v2378_v29 = vpop.xlane.xlu0 %2377  ;;  %v2698_v31 = vpack.c.bf16 %v2625_v52, %v2624_v62  ;;  %v2626_v1 = vmul.f32 %v3786_v11, %v5033_v57  ;;  %v5875_v11 = vld [vmem:[#allocation28_spill] sm:$0xff] }
 0x4b0   : > { %3795 = vrcp.f32 %v2378_v29  ;;  %v2695_v19 = vpack.c.bf16 %v2619_v50, %v2618_v12  ;;  %v5878_v12 = vld [vmem:[#allocation46_spill] sm:$0xff] }
 0x4b1   : > { %3797 = vrcp.f32 %v2387_v30  ;;  %2733 = vrot.lane.b32.xlu0 %v2694_v48, %s3861_s25  ;;  %2805 = vrot.lane.b32.xlu1 %v2698_v31, %s3861_s25  ;;  %v2381_v63 = vpop.xlane.xlu1 %2380  ;;  %v2699_v27 = vpack.c.bf16 %v2627_v49, %v2626_v1 }
 0x4b2   : > { %v3788_v16 = vpop.eup %3787  ;;  %3799 = vrcp.f32 %v2381_v63  ;;  %v5877_v63 = vld [vmem:[#allocation45_spill] sm:$0xff] }
 0x4b3   : > { %v3790_v8 = vpop.eup %3789  ;;  %3801 = vrcp.f32 %v2384_v55  ;;  %v2420_v28 = vpop.xlane.xlu0 %2419  ;;  %v2636_v57 = vmul.f32 %v3788_v16, %v5070_v47 }
 0x4b4   : > { %v3792_v5 = vpop.eup %3791  ;;  %3803 = vrcp.f32 %v2420_v28  ;;  %v2639_v62 = vmul.f32 %v3790_v8, %v5063_v59  ;;  %v5876_v59 = vpack.c.bf16 %v5194_v18, %v5191_v37  ;;  %v5879_v28 = vld [vmem:[#allocation38_spill] sm:$0xff]  ;;  %v5881_v37 = vld [vmem:[#allocation35_spill] sm:$0xff] }
 0x4b5   : > { %2735 = vrot.lane.b32.xlu0 %v2695_v19, %s3861_s25  ;;  %2807 = vrot.lane.b32.xlu1 %v2699_v27, %s3861_s25  ;;  %v2423_v31 = vpop.xlane.xlu1 %2422  ;;  %v2637_v30 = vmul.f32 %v3792_v5, %v5077_v17  ;;  %v3794_v25 = vpop.eup %3793  ;;  %v5880_v5 = vpack.c.bf16 %v5184_v0, %v5181_v58  ;;  %v5420_v0 = vcombine.high %v2832_v9, %v2832_v9 }
 0x4b6   : > { %3805 = vrcp.f32 %v2423_v31  ;;  %v2638_v29 = vmul.f32 %v3794_v25, %v5875_v11  ;;  %v5884_v11 = vpack.c.bf16 %v5214_v32, %v5211_v36  ;;  %v5890_v36 = vpack.c.bf16 %v5224_v41, %v5221_v45 }
 0x4b7   : > { %v2414_v55 = vpop.xlane.xlu0 %2413  ;;  %v2704_v15 = vpack.c.bf16 %v2637_v30, %v2636_v57  ;;  %v5883_v30 = vld [vmem:[#allocation49_spill] sm:$0xff]  ;;  %v5891_v32 = vpack.c.bf16 %v5204_v33, %v5201_v51  ;;  %v5892_v51 = vld [vmem:[#allocation27_spill] sm:$0xff] }
 0x4b8   : > { %3807 = vrcp.f32 %v2414_v55  ;;  %v2705_v47 = vpack.c.bf16 %v2639_v62, %v2638_v29  ;;  %v5885_v29 = vld [vmem:[#allocation52_spill] sm:$0xff] }
 0x4b9   : > { %2833 = vrot.lane.b32.xlu0 %v2832_v9, %s3861_s25  ;;  %2956 = vrot.lane.b32.xlu1 %v2704_v15, %s3861_s25  ;;  %v2417_v52 = vpop.xlane.xlu1 %2416 }
 0x4ba   : > { %v3796_v48 = vpop.eup %3795  ;;  %3809 = vrcp.f32 %v2417_v52 }
 0x4bb   : > { %v3798_v14 = vpop.eup %3797  ;;  %v2640_v20 = vmul.f32 %v3796_v48, %v5877_v63  ;;  %v2432_v9 = vpop.xlane.xlu0 %2431 }
 0x4bc   : > { %v3800_v50 = vpop.eup %3799  ;;  %v2643_v19 = vmul.f32 %v3798_v14, %v5879_v28  ;;  %v5886_v14 = vld [vmem:[#allocation39_spill] sm:$0xff] }
 0x4bd   : > { %v3802_v17 = vpop.eup %3801  ;;  %2958 = vrot.lane.b32.xlu0 %v2705_v47, %s3861_s25  ;;  %2883 = vrot.lane.b32.xlu1 %v5876_v59, %s3861_s25  ;;  %v2435_v49 = vpop.xlane.xlu1 %2434  ;;  %v2641_v1 = vmul.f32 %v3800_v50, %v5878_v12  ;;  %v5887_v50 = vld [vmem:[#allocation18_spill] sm:$0xff] }
 0x4be   : > { %v3804_v16 = vpop.eup %3803  ;;  %v2642_v18 = vmul.f32 %v3802_v17, %v5881_v37  ;;  %v5888_v17 = vld [vmem:[#allocation19_spill] sm:$0xff] }
 0x4bf   : > { %v2706_v8 = vpack.c.bf16 %v2641_v1, %v2640_v20  ;;  %v2654_v57 = vmul.f32 %v3804_v16, %v5882_v40  ;;  %v5889_v59 = vpack.c.bf16 %v5887_v50, %v5888_v17  ;;  %v2426_v12 = vpop.xlane.xlu0 %2425  ;;  %v5894_v40 = vld [vmem:[#allocation40_spill] sm:$0xff] }
 0x4c0   : > { %v3806_v27 = vpop.eup %3805  ;;  %v2707_v15 = vpack.c.bf16 %v2643_v19, %v2642_v18 }
 0x4c1   : > { %2885 = vrot.lane.b32.xlu1 %v5880_v5, %s3861_s25  ;;  %2960 = vrot.lane.b32.xlu0 %v2706_v8, %s3861_s25  ;;  %v2429_v31 = vpop.xlane.xlu1 %2428  ;;  %v2655_v25 = vmul.f32 %v3806_v27, %v5883_v30  ;;  %v5893_v5 = vld [vmem:[#allocation33_spill] sm:$0xff] }
 0x4c2   : > { %v3808_v55 = vpop.eup %3807  ;;  %3811 = vrcp.f32 %v2429_v31  ;;  %v5895_v31 = vpack.c.bf16 %v5306_v2, %v5303_v60  ;;  %v5900_v60 = vld [vmem:[#allocation17_spill] sm:$0xff] }
 0x4c3   : > { %v2713_v62 = vpack.c.bf16 %v2655_v25, %v2654_v57  ;;  %v2652_v48 = vmul.f32 %v3808_v55, %v5885_v29  ;;  %3813 = vrcp.f32 %v2426_v12  ;;  %v5896_v57 = vld [vmem:[#allocation44_spill] sm:$0xff] }
 0x4c4   : > { %v3810_v52 = vpop.eup %3809  ;;  %3815 = vrcp.f32 %v2435_v49 }
 0x4c5   : > { %2887 = vrot.lane.b32.xlu1 %v5884_v11, %s3861_s25  ;;  %2962 = vrot.lane.b32.xlu0 %v2707_v15, %s3861_s25  ;;  %v2730_v58 = vpop.permute.xlu1 %2729  ;;  %v2653_v47 = vmul.f32 %v3810_v52, %v5886_v14  ;;  %3817 = vrcp.f32 %v2432_v9  ;;  %v5897_v15 = vld [vmem:[#allocation37_spill] sm:$0xff]  ;;  %v5898_v52 = vld [vmem:[#allocation42_spill] sm:$0xff]  ;;  %v5901_v14 = vld [vmem:[#allocation16_spill] sm:$0xff] }
 0x4c6   : > { %v2739_v63 = vsel %vm1619_vm2, %v5889_v59, %v2730_v58  ;;  %v5903_v59 = vld [vmem:[#allocation43_spill] sm:$0xff] }
 0x4c7   : > { %2757 = vmatpush1.bf16.msra.mxu1 %v2739_v63  ;;  %v2712_v20 = vpack.c.bf16 %v2653_v47, %v2652_v48  ;;  %v5899_v48 = vpack.c.bf16 %v5298_v21, %v5295_v10  ;;  %v5902_v47 = vpack.c.bf16 %v5900_v60, %v5901_v14  ;;  %v5905_v21 = vpack.c.bf16 %v5252_v38, %v5249_v22  ;;  %v5906_v10 = vld [vmem:[#allocation41_spill] sm:$0xff] }
 0x4c8   : > { %2758 = vmatprep.subr.bf16.mxu1 %v5890_v36  ;;  %v5904_v36 = vld [vmem:[#allocation32_spill] sm:$0xff] }
 0x4c9   : > { %2889 = vrot.lane.b32.xlu1 %v5891_v32, %s3861_s25  ;;  %2980 = vrot.lane.b32.xlu0 %v5420_v0, %s3861_s25  ;;  %v2468_v1 = vpop.xlane.xlu0 %2467 }
 0x4ca   : > { %2838 = vmatprep.subr.bf16.mxu0 %v2712_v20 }
 0x4cc   : > { %v3812_v33 = vpop.eup %3811 }
 0x4cd   : > { %v2462_v8 = vpop.xlane.xlu0 %2461  ;;  %v3814_v37 = vpop.eup %3813  ;;  %v2657_v30 = vmul.f32 %v3812_v33, %v5896_v57  ;;  %v5910_v33 = vpack.c.bf16 %v5322_v7, %v5319_v35 }
 0x4ce   : > { %v3816_v25 = vpop.eup %3815  ;;  %v2656_v11 = vmul.f32 %v3814_v37, %v5898_v52  ;;  %v5911_v37 = vpack.c.bf16 %v5240_v61, %v5237_v13 }
 0x4cf   : > { %v3818_v58 = vpop.eup %3817  ;;  %v2659_v63 = vmul.f32 %v3816_v25, %v5903_v59  ;;  %v5924_v59 = vpack.c.bf16 %v5338_v23, %v5335_v6 }
 0x4d0   : > { %v2714_v17 = vpack.c.bf16 %v2657_v30, %v2656_v11  ;;  %v2658_v32 = vmul.f32 %v3818_v58, %v5906_v10  ;;  %v5914_v30 = vld [vmem:[#allocation25_spill] sm:$0xff]  ;;  %v5918_v11 = vld [vmem:[#allocation31_spill] sm:$0xff]  ;;  %v5919_v58 = vpack.c.bf16 %v5274_v4, %v5271_v39 }
 0x4d2   : > { %v2715_v22 = vpack.c.bf16 %v2659_v63, %v2658_v32  ;;  %v5926_v32 = vld [vmem:[#allocation54_spill] sm:$0xff] }
 0x4d9   : > { %v2480_v19 = vpop.xlane.xlu0 %2479 }
 0x4dd   : > { %v2474_v41 = vpop.xlane.xlu0 %2473 }
 0x4f6   : > { %v2471_v16 = vpop.xlane.xlu1 %2470 }
 0x4fa   : > { %v2465_v28 = vpop.xlane.xlu1 %2464 }
 0x4fb   : > { %3819 = vrcp.f32 %v2465_v28  ;;  %v5908_v28 = vld [vmem:[#allocation34_spill] sm:$0xff] }
 0x4fc   : > { %3821 = vrcp.f32 %v5892_v51 }
 0x4fd   : > { %3823 = vrcp.f32 %v2462_v8  ;;  %v5907_v8 = vld [vmem:[#allocation26_spill] sm:$0xff] }
 0x4fe   : > { %v2483_v45 = vpop.xlane.xlu1 %2482  ;;  %3825 = vrcp.f32 %v5893_v5 }
 0x4ff   : > { %3827 = vrcp.f32 %v2471_v16 }
 0x500   : > { %3829 = vrcp.f32 %v5894_v40 }
 0x501   : > { %3831 = vrcp.f32 %v2468_v1 }
 0x502   : > { %v2477_v27 = vpop.xlane.xlu1 %2476  ;;  %3833 = vrcp.f32 %v5897_v15 }
 0x503   : > { %3835 = vrcp.f32 %v2477_v27 }
 0x504   : > { %3837 = vrcp.f32 %v2474_v41  ;;  %v5909_v41 = vpack.c.bf16 %v5907_v8, %v5908_v28 }
 0x505   : > { %v3820_v20 = vpop.eup %3819  ;;  %3839 = vrcp.f32 %v5904_v36  ;;  %v5925_v36 = vmov 0  }
 0x506   : > { %3841 = vrcp.f32 %v2483_v45  ;;  %v2669_v38 = vmul.f32 %v3820_v20, %v5234_v34  ;;  %v5915_v34 = vld [vmem:[#allocation24_spill] sm:$0xff] }
 0x507   : > { %3843 = vrcp.f32 %v2480_v19  ;;  %v5916_v25 = vpack.c.bf16 %v5914_v30, %v5915_v34  ;;  %v5937_v30 = vld [vmem:[#allocation7_spill] sm:$0xff]  ;;  %v5938_v34 = vld [vmem:[#allocation5_spill] sm:$0xff] }
 0x517   : > { %v2804_v55 = vpop.permute.xlu1 %2803 }
 0x518   : > { %v2815_v2 = vsel %vm1619_vm2, %v5899_v48, %v2804_v55  ;;  %v5917_v55 = vpack.c.bf16 %v5314_v56, %v5311_v26  ;;  %v5922_v26 = vld [vmem:[#allocation29_spill] sm:$0xff] }
 0x51b   : > { %v2802_v18 = vpop.permute.xlu0 %2801 }
 0x51c   : > { %v2811_v49 = vsel %vm1619_vm2, %v5895_v31, %v2802_v18  ;;  %v5912_v18 = vld [vmem:[#allocation50_spill] sm:$0xff] }
 0x51d   : > { %2839 = vmatpush1.bf16.msra.mxu0 %v2811_v49  ;;  %v5913_v49 = vld [vmem:[#allocation30_spill] sm:$0xff] }
 0x51e   : > { %2840 = vmatprep.subr.bf16.mxu0 %v2713_v62  ;;  %v3822_v62 = vpop.eup %3821  ;;  %3845 = vrcp.f32 %v5913_v49 }
 0x51f   : > { %v2732_v29 = vpop.permute.xlu0 %2731  ;;  %v3824_v9 = vpop.eup %3823  ;;  %3847 = vrcp.f32 %v5918_v11 }
 0x520   : > { %v2743_v50 = vsel %vm1619_vm2, %v5902_v47, %v2732_v29  ;;  %v3826_v16 = vpop.eup %3825  ;;  %v2668_v40 = vmul.f32 %v3824_v9, %v5912_v18  ;;  %v5920_v29 = vld [vmem:[#allocation47_spill] sm:$0xff]  ;;  %3849 = vrcp.f32 %v5922_v26  ;;  %v5934_v18 = vld [vmem:[#allocation9_spill] sm:$0xff] }
 0x521   : > { %2759 = vmatpush1.bf16.msra.mxu1 %v2743_v50  ;;  %2841 = vmatpush1.bf16.msra.mxu0 %v2815_v2  ;;  %v3828_v5 = vpop.eup %3827  ;;  %v5921_v2 = vld [vmem:[#allocation56_spill] sm:$0xff]  ;;  %v2599_v23 = vmul.f32 %v3826_v16, %v5926_v32  ;;  %v5929_v16 = vld [vmem:[#allocation67_spill] sm:$0xff] }
 0x522   : > { %2760 = vmatprep.subr.bf16.mxu1 %v5905_v21  ;;  %2842 = vmatprep.subr.bf16.mxu0 %v2714_v17  ;;  %v3830_v45 = vpop.eup %3829  ;;  %v2720_v61 = vpack.c.bf16 %v2669_v38, %v2668_v40  ;;  %v2671_v15 = vmul.f32 %v3828_v5, %v5228_v46  ;;  %v5923_v46 = vld [vmem:[#allocation55_spill] sm:$0xff]  ;;  %v5933_v5 = vld [vmem:[#allocation60_spill] sm:$0xff]  ;;  %v5935_v40 = vpack.c.bf16 %v5357_v43, %v5934_v18 }
 0x523   : > { %v2734_v12 = vpop.permute.xlu0 %2733  ;;  %v2806_v1 = vpop.permute.xlu1 %2805  ;;  %v2597_v60 = vmul.f32 %v3830_v45, %v5921_v2 }
 0x524   : > { %v2747_v51 = vsel %vm1619_vm2, %v5909_v41, %v2734_v12  ;;  %v2819_v27 = vsel %vm1619_vm2, %v5910_v33, %v2806_v1  ;;  %v3832_v31 = vpop.eup %3831  ;;  %v5927_v1 = vld [vmem:[#allocation53_spill] sm:$0xff]  ;;  %v5930_v33 = vld [vmem:[#allocation51_spill] sm:$0xff] }
 0x525   : > { %2761 = vmatpush1.bf16.msra.mxu1 %v2747_v51  ;;  %2843 = vmatpush1.bf16.msra.mxu0 %v2819_v27  ;;  %v3834_v57 = vpop.eup %3833  ;;  %v2670_v48 = vmul.f32 %v3832_v31, %v5920_v29  ;;  %v5931_v27 = vpack.c.bf16 %v5929_v16, %v5930_v33 }
 0x526   : > { %2762 = vmatprep.subr.bf16.mxu1 %v5911_v37  ;;  %2844 = vmatprep.subr.bf16.mxu0 %v2715_v22  ;;  %v3836_v52 = vpop.eup %3835  ;;  %v2596_v50 = vmul.f32 %v3834_v57, %v5923_v46 }
 0x527   : > { %v2736_v7 = vpop.permute.xlu0 %2735  ;;  %v2808_v35 = vpop.permute.xlu1 %2807  ;;  %v2721_v39 = vpack.c.bf16 %v2671_v15, %v2670_v48  ;;  %v2673_v4 = vmul.f32 %v3836_v52, %v5258_v44  ;;  %v5928_v44 = vpack.c.bf16 %v5330_v54, %v5327_v3  ;;  %v5941_v15 = vld [vmem:[#allocation8_spill] sm:$0xff]  ;;  %v5942_v52 = vld [vmem:[#allocation6_spill] sm:$0xff]  ;;  %v5944_v48 = vld [vmem:[#allocation57_spill] sm:$0xff] }
 0x528   : > { %v2751_v19 = vsel %vm1619_vm2, %v5916_v25, %v2736_v7  ;;  %v2823_v13 = vsel %vm1619_vm2, %v5917_v55, %v2808_v35  ;;  %v3838_v56 = vpop.eup %3837  ;;  %v2684_v21 = vpack.c.bf16 %v2597_v60, %v2596_v50  ;;  %v5936_v7 = vld [vmem:[#allocation59_spill] sm:$0xff]  ;;  %v5939_v25 = vpack.c.bf16 %v5937_v30, %v5938_v34  ;;  %v5940_v55 = vld [vmem:[#allocation58_spill] sm:$0xff]  ;;  %v5945_v60 = vld [vmem:[#allocation4_spill] sm:$0xff] }
 0x529   : > { %2763 = vmatpush1.bf16.msra.mxu1 %v2751_v19  ;;  %2845 = vmatpush1.bf16.msra.mxu0 %v2823_v13  ;;  %v3840_v17 = vpop.eup %3839  ;;  %v2672_v10 = vmul.f32 %v3838_v56, %v5176_v24  ;;  %v5943_v11 = vpack.c.bf16 %v5941_v15, %v5942_v52  ;;  %v5946_v56 = vld [vmem:[#allocation3_spill] sm:$0xff] }
 0x52a   : > { %2911 = vmatprep.subr.bf16.mxu1 %v5919_v58  ;;  %2985 = vmatprep.subr.bf16.mxu0 %v2720_v61  ;;  %v3842_v20 = vpop.eup %3841  ;;  %v2601_v3 = vmul.f32 %v3840_v17, %v5933_v5  ;;  %v5947_v26 = vpack.c.bf16 %v5945_v60, %v5946_v56 }
 0x52b   : > { %v2834_v14 = vpop.permute.xlu0 %2833  ;;  %v2957_v47 = vpop.permute.xlu1 %2956  ;;  %v2722_v41 = vpack.c.bf16 %v2673_v4, %v2672_v10  ;;  %v2675_v51 = vmul.f32 %v3842_v20, %v5246_v53 }
 0x52c   : > { %v2966_v63 = vsel %vm1619_vm2, %v5924_v59, %v2957_v47  ;;  %3232 = vmatmul.mubr.msk.bf16.vlgmr.msra.gmra.mrb[56].mxu0 %vm1619_vm2, %v2834_v14  ;;  %3231 = vmatmul.mubr.msk.bf16.vlgmr.msra.gmra.mrb[52].mxu1 %vm1619_vm2, %v5387_v42  ;;  %v3844_v6 = vpop.eup %3843  ;;  %v2598_v42 = vmul.f32 %v3822_v62, %v5927_v1  ;;  %v5932_v62 = vld [vmem:[#allocation48_spill] sm:$0xff] }
 0x52d   : > { %2986 = vmatpush1.bf16.msra.mxu0 %v2966_v63  ;;  %3017 = vmatprep.mubr.bf16.mxu0 %v5925_v36  ;;  %v3846_v24 = vpop.eup %3845  ;;  %v2674_v38 = vmul.f32 %v3844_v6, %v5932_v62 }
 0x52e   : > { %2987 = vmatprep.subr.bf16.mxu0 %v2721_v39  ;;  %2943 = vmatprep.mubr.bf16.mxu1 %v5925_v36  ;;  %v2685_v22 = vpack.c.bf16 %v2599_v23, %v2598_v42  ;;  %v3848_v54 = vpop.eup %3847  ;;  %v2600_v35 = vmul.f32 %v3846_v24, %v5936_v7 }
 0x52f   : > { %v2959_v9 = vpop.permute.xlu0 %2958  ;;  %v2884_v12 = vpop.permute.xlu1 %2883  ;;  %v2723_v49 = vpack.c.bf16 %v2675_v51, %v2674_v38  ;;  %v2603_v13 = vmul.f32 %v3848_v54, %v5940_v55 }
 0x530   : > { %v2970_v8 = vsel %vm1619_vm2, %v5928_v44, %v2959_v9  ;;  %v2893_v28 = vsel %vm1619_vm2, %v2684_v21, %v2884_v12  ;;  %v3850_v57 = vpop.eup %3849  ;;  %v2686_v19 = vpack.c.bf16 %v2601_v3, %v2600_v35 }
 0x531   : > { %2912 = vmatpush1.bf16.msra.mxu1 %v2893_v28  ;;  %2988 = vmatpush1.bf16.msra.mxu0 %v2970_v8  ;;  %v2602_v2 = vmul.f32 %v3850_v57, %v5944_v48 }
 0x532   : > { %2913 = vmatprep.subr.bf16.mxu1 %v5931_v27  ;;  %2989 = vmatprep.subr.bf16.mxu0 %v2722_v41 }
 0x533   : > { %v2961_v45 = vpop.permute.xlu0 %2960  ;;  %v2886_v37 = vpop.permute.xlu1 %2885  ;;  %v2687_v14 = vpack.c.bf16 %v2603_v13, %v2602_v2 }
 0x534   : > { %v2974_v53 = vsel %vm1619_vm2, %v5935_v40, %v2961_v45  ;;  %v2897_v31 = vsel %vm1619_vm2, %v2685_v22, %v2886_v37 }
 0x535   : > { %2914 = vmatpush1.bf16.msra.mxu1 %v2897_v31  ;;  %2990 = vmatpush1.bf16.msra.mxu0 %v2974_v53 }
 0x536   : > { %2915 = vmatprep.subr.bf16.mxu1 %v5939_v25  ;;  %2991 = vmatprep.subr.bf16.mxu0 %v2723_v49 }
 0x537   : > { %v2963_v61 = vpop.permute.xlu0 %2962  ;;  %v2888_v43 = vpop.permute.xlu1 %2887 }
 0x538   : > { %v2978_v58 = vsel %vm1619_vm2, %v5943_v11, %v2963_v61  ;;  %v2901_v29 = vsel %vm1619_vm2, %v2686_v19, %v2888_v43 }
 0x539   : > { %2916 = vmatpush1.bf16.msra.mxu1 %v2901_v29  ;;  %2992 = vmatpush1.bf16.msra.mxu0 %v2978_v58 }
 0x53a   : > { %2917 = vmatprep.subr.bf16.mxu1 %v5947_v26 }
 0x53b   : > { %v2981_v47 = vpop.permute.xlu0 %2980  ;;  %v2890_v46 = vpop.permute.xlu1 %2889 }
 0x53c   : > { %v2905_v50 = vsel %vm1619_vm2, %v2687_v14, %v2890_v46  ;;  %3234 = vmatmul.mubr.msk.bf16.vlgmr.msra.gmra.mrb[60].mxu0 %vm1619_vm2, %v2981_v47 }
 0x53d   : > { %2918 = vmatpush1.bf16.msra.mxu1 %v2905_v50 }
 0x540   : > { %3233 = vmatmul.mubr.msk.bf16.vlgmr.msra.gmra.mrb[56].mxu1 %vm1619_vm2, %v5420_v0 }
 0x5ff   : > { %v2872_v17 = vpop.f32.mrb[56].mxu0  ;;  %v2790_v59 = vpop.f32.mrb[52].mxu1 }
 0x600   : > { %v2874_v63 = vpop.f32.mrb[57].mxu0  ;;  %v2792_v39 = vpop.f32.mrb[53].mxu1 }
 0x601   : > { %v2876_v4 = vpop.f32.mrb[58].mxu0  ;;  %v2794_v20 = vpop.f32.mrb[54].mxu1 }
 0x602   : > { %v2877_v36 = vpop.f32.mrb[59].mxu0  ;;  %v2795_v21 = vpop.f32.mrb[55].mxu1 }
 0x60f   : > { %v3019_v10 = vpop.f32.mrb[60].mxu0 }
 0x610   : > { %v3451_v32 = vpack.i.bf16 %v3019_v10, %v2872_v17  ;;  %v3021_v23 = vpop.f32.mrb[61].mxu0 }
 0x611   : > { %v3461_v6 = vpack.i.bf16 %v3021_v23, %v2874_v63  ;;  %v3023_v9 = vpop.f32.mrb[62].mxu0 }
 0x612   : > { %3452 = vrot.lane.b32.xlu1 %v3451_v32, %s3861_s25  ;;  %v3024_v12 = vpop.f32.mrb[63].mxu0 }
 0x613   : > { %v2945_v1 = vpop.f32.mrb[56].mxu1 }
 0x614   : > { %v3456_v42 = vpack.i.bf16 %v2945_v1, %v2790_v59  ;;  %v2947_v0 = vpop.f32.mrb[57].mxu1 }
 0x615   : > { %v2949_v44 = vpop.f32.mrb[58].mxu1 }
 0x616   : > { %3462 = vrot.lane.b32.xlu1 %v3461_v6, %s3861_s25  ;;  %3457 = vrot.lane.b32.xlu0 %v3456_v42, %s3861_s25  ;;  %v2950_v8 = vpop.f32.mrb[59].mxu1 }
 0x684   : > { %v3453_v28 = vpop.permute.xlu1 %3452 }
 0x685   : > { %v3455_v41 = vunpack.i.h.bf16 %v3453_v28  ;;  %v3454_v51 = vunpack.i.l.bf16 %v3453_v28 }
 0x687   : > { %v3035_v24 = vsel %vm1619_vm2, %v2945_v1, %v3455_v41  ;;  %v3034_v16 = vsel %vm1619_vm2, %v2790_v59, %v3454_v51 }
 0x688   : > { %v3235_v33 = vpack.c.bf16 %v3035_v24, %v3034_v16  ;;  %v3458_v27 = vpop.permute.xlu0 %3457  ;;  %v3463_v22 = vpop.permute.xlu1 %3462 }
 0x689   : > { %v3460_v62 = vunpack.i.h.bf16 %v3458_v27  ;;  %v3459_v38 = vunpack.i.l.bf16 %v3458_v27  ;;  %v3465_v5 = vunpack.i.h.bf16 %v3463_v22  ;;  %v3464_v3 = vunpack.i.l.bf16 %v3463_v22 }
 0x68a   : > { %3236 = vst.sshfl [vmem:[%s217_s6] sm:$0x33 pattern:$0x76325410] %v3235_v33 }
 0x68b   : > { %v3059_v54 = vsel %vm1619_vm2, %v3460_v62, %v3019_v10  ;;  %v3058_v45 = vsel %vm1619_vm2, %v3459_v38, %v2872_v17  ;;  %v3084_v37 = vsel %vm1619_vm2, %v2947_v0, %v3465_v5  ;;  %v3083_v18 = vsel %vm1619_vm2, %v2792_v39, %v3464_v3 }
 0x68c   : > { %v3237_v40 = vpack.c.bf16 %v3059_v54, %v3058_v45  ;;  %v3239_v53 = vpack.c.bf16 %v3084_v37, %v3083_v18 }
 0x68e   : > { %3244 = vst.sshfl [vmem:[%s217_s6 + $0x4] sm:$0x33 pattern:$0x76325410] %v3237_v40 }
 0x68f   : > { %3245 = vst.sshfl [vmem:[%s217_s6 + $0x8] sm:$0x33 pattern:$0x76325410] %v3239_v53 }
 0x690 PF: > { %s14_s15 = sadd.s32 1, %s3857_s15  }
 0x691   : > { %p11_p4 = scmp.ge.s32.totalorder %s14_s15, 4  }
 0x693   :  { %13 = sbr.rel (!%p11_p4) target bundleno = 1 (0x1), region = 71 }

// kernel: pan_att_block.3
= control target key start
LH: loop header
LB: loop body
LE: loop exit
PB: predicated region body
PF: predicated region fallthrough
CT: control target
= control target key end

     0   :  { %s559_s15 = smov 0   ;;  %s561_s16 = smov 0   ;;  %s601_s0 = inlined_call_operand.vmem [shape: bf16[2,12,256], index: 0, kind: input, shape index: {}]   ;;  %s602_s1 = inlined_call_operand.vmem [shape: f32[2,4,256], index: 1, kind: input, shape index: {}]   ;;  %s603_s2 = inlined_call_operand.vmem [shape: bf16[4,12], index: 2, kind: input, shape index: {}]   ;;  %s604_s3 = inlined_call_operand.vmem [shape: f32[4,1], index: 3, kind: input, shape index: {}]   ;;  %s605_s4 = inlined_call_operand.vmem [shape: f32[2,4,256], index: 4, kind: output, shape index: {}]  }
   0x1   :  { %s563_s17 = smov 0  }
   0x2 LB: > { %s26_s18 = sadd.s32 1, %s527_s16  ;;  %p463_p0 = scmp.ge.s32.totalorder %s531_s17, 1  ;;  %s531_s17 = sphi %s563_s17, %s14_s17   ;;  %s527_s16 = sphi %s561_s16, %s607_s16   ;;  %s523_s15 = sphi %s559_s15, %s606_s15  }
   0x3   : > { %p28_p1 = scmp.ge.s32.totalorder %s26_s18, 2  ;;  %p200_p2 = scmp.lt.s32.totalorder %s531_s17, 3 }
   0x5   : > { %s609_s18 = smov (%p28_p1, %s26_s18), 0  ;;  %p201_p3 = pnand %p463_p0, %p200_p2 }
   0x6   : > { %p244_p4 = scmp.lt.s32.totalorder (!%p201_p3), %s523_s15, 1  ;;  %v533_v0 = vmov (!%p201_p3), 0   ;;  %v277_v1 = vld [vmem:[%s604_s3] sm:$0xf] (!%p201_p3)  ;;  %vm295_vm0 = vcmask (!%p201_p3), 1045504   ;;  %vm291_vm1 = vcmask (!%p201_p3), 97280  }
   0x7   : > { %204 = sbr.rel (%p201_p3) target bundleno = 242 (0xf2), region = 36  ;;  %334 = vmatprep.mubr.bf16.mxu0 (!%p201_p3), %v533_v0  ;;  %504 = vset.pattern.permute.xlu0 (!%p201_p3), %v533_v0  ;;  %v274_v5 = vld [vmem:[%s603_s2] sm:$0x3] (!%p201_p3) }
   0x8   : > { %280 = vperm.xlu0 (!%p201_p3), %504, %v277_v1  }
   0xe   : > { %s611_s15 = smov (!%p244_p4, %s523_s15), 1 }
   0xf   : > { %s476_s21 = sshll.u32 %s611_s15, 4  ;;  %s477_s27 = sshll.u32 %s611_s15, 3 }
  0x10   : > { %s251_s24 = scalar_lea.vmem %s601_s0, %s476_s21  ;;  %s261_s30 = scalar_lea.vmem %s602_s1, %s477_s27 }
  0x11   : > { %v505_v2 = vld [vmem:[%s251_s24 + $0x4] ss:$8 sps:$4 sm:$0x3f]   ;;  %v507_v3 = vld [vmem:[%s251_s24] ss:$8 sps:$4 sm:$0x3f]   ;;  %s271_s7 = scalar_lea.vmem %s605_s4, %s477_s27 }
  0x12   : > { %472 = vmatprep.subr.msk.bf16.mxu0 %vm295_vm0, %v505_v2  ;;  %v297_v4 = vsel %vm295_vm0, %v507_v3, 0  ;;  %v343_v6 = vld [vmem:[%s261_s30] sm:$0xff] }
  0x13   : > { %303 = vmatpush1.bf16.msra.mxu0 %v297_v4  ;;  %v345_v9 = vcombine.high %v343_v6, %v343_v6 }
  0x16   : > { %473 = vmatmul.mubr.msk.bf16.vlgmr.msra.gmra.mrb[0].mxu0 %vm291_vm1, %v274_v5 }
  0x87   : > { %v281_v7 = vpop.permute.xlu0 %280 }
  0xe9   : > { %v336_v8 = vpop.f32.mrb[0].mxu0 }
  0xea   : > { %v337_v10 = vadd.f32 %v336_v8, %v281_v7  ;;  %v338_v11 = vpop.f32.mrb[1].mxu0 }
  0xeb   : > { %v339_v12 = vadd.f32 %v338_v11, %v281_v7  ;;  %v340_v13 = vpop.f32.mrb[2].mxu0 }
  0xec   : > { %v347_v14 = vadd.f32 %v343_v6, %v337_v10  ;;  %v341_v15 = vpop.f32.mrb[3].mxu0 }
  0xed   : > { %v348_v16 = vadd.f32 %v345_v9, %v339_v12 }
  0xef   : > { %v351_v17 = vcombine.low %v347_v14, %v348_v16 }
  0xf1   : > { %353 = vst [vmem:[%s271_s7] sm:$0xff] %v351_v17 }
  0xf2 PF: > { %s14_s17 = sadd.s32 1, %s531_s17   ;;  %s606_s15 = smov %s527_s16 }
  0xf3   : > { %p11_p5 = scmp.ge.s32.totalorder %s14_s17, 4   ;;  %s607_s16 = smov %s609_s18 }
  0xf5   :  { %13 = sbr.rel (!%p11_p5) target bundleno = 2 (0x2), region = 69 }

</bundles_post_ra>
